<compile_context>
chip_gen: v5e
topology: v5e:2x2
jax: 0.10.0
libtpu: 0.0.40
codegen_flags: <defaults>
</compile_context>

<pallas_src>
import numpy as np
import jax
import jax.numpy as jnp
from jax.experimental import pallas as pl
from jax.experimental.pallas import tpu as pltpu


# ----------------------------------------------------------------------------
# Fixed geometry (cfg.in_ch=4, cfg.out_ch=8, cfg.f_size=3, 16x16 input, batch 2)
# ----------------------------------------------------------------------------
N_IMG = 2                 # batch
C_IN = 4                  # cfg.in_ch
C_LAT = 8                 # cfg.out_ch
H = W = 16                # input / output spatial
HL = WL = 8               # latent spatial (after the stride-2 conv)
HP = WP = 10              # zero-padded latent grid (1-pixel ring)
P = 128                   # lane-dense padded latent columns (10*10 real + 28 zero)
HW = H * W                # 256 flattened output columns
RL = N_IMG * C_LAT        # 16 latent rows  (image, channel)
RO = N_IMG * C_IN         # 8  output rows  (image, channel)

# Column shifts that implement the 9 taps of the stride-1 3x3 conv on the
# padded latent grid (tap (dy, dx) reads column c + (dy-1)*WP + (dx-1)).
TAP_SHIFTS = [(dy - 1) * WP + (dx - 1) for dy in range(3) for dx in range(3)]

# Roll-safety invariant: for every interior column and every tap shift the
# source column stays inside the real padded grid [0, 100) -- so the circular
# wrap of pltpu.roll can only pollute ring / padding columns, which are masked.
_INTERIOR = [(y + 1) * WP + (x + 1) for y in range(HL) for x in range(WL)]
assert all(0 <= c + s < HP * WP for c in _INTERIOR for s in TAP_SHIFTS)


# ----------------------------------------------------------------------------
# The single fused Pallas kernel
# ----------------------------------------------------------------------------
def _ae_fused_kernel(x_ref, l1_ref, s1_ref, b1_ref,
                     l2_ref, b2_ref,
                     l3_ref, s3_ref, b3_ref,
                     mask_ref, out_ref):
    f32 = jnp.float32
    bf16 = jnp.bfloat16

    x = x_ref[...]            # (RO, 256) bf16   rows = (n, ci), cols = h*16+w
    mask = mask_ref[...]      # (1, P)    f32    1 on interior latent cols, else 0

    # ---- enc[0]: Conv2d(4, 8, 3, stride=2, pad=1) + ReLU ---------------------
    # Route first (9 small M=8 matmuls against 0/1 selection matrices), then a
    # single fat K=72 channel-mix matmul.
    route1 = jnp.concatenate(
        [jnp.dot(x, s1_ref[t], preferred_element_type=f32) for t in range(9)],
        axis=0).astype(bf16)                                        # (72, P)
    acc1 = jnp.dot(l1_ref[...], route1, preferred_element_type=f32)  # (RL, P)
    h1 = mask * jnp.maximum(acc1 + b1_ref[...], 0.0)                 # ring = 0

    # ---- enc[2]: Conv2d(8, 8, 3, stride=1, pad=1) + Sigmoid ------------------
    # Taps are pure column shifts on the padded grid -> XLU rolls, then a single
    # K=144 channel-mix matmul.  Wrap-around only hits masked-out columns.
    shifted = [h1 if s == 0 else pltpu.roll(h1, (-s) % P, 1) for s in TAP_SHIFTS]
    stacked = jnp.concatenate(shifted, axis=0).astype(bf16)          # (144, P)
    acc2 = jnp.dot(l2_ref[...], stacked, preferred_element_type=f32)  # (RL, P)
    h2 = mask * jax.nn.sigmoid(acc2 + b2_ref[...])                    # ring = 0

    # ---- dec[0]: ConvTranspose2d(8, 4, 4, stride=2, pad=1) + Sigmoid ---------
    # Mix first (C_out < C_lat), then subpixel routing via S3 (parity + padding
    # baked into the 0/1 routing matrices, K=128 aligned contractions).
    z3 = jnp.dot(l3_ref[...], h2.astype(bf16),
                 preferred_element_type=f32)                          # (16*RO, P)
    acc3 = jnp.dot(z3[0:RO].astype(bf16), s3_ref[0],
                   preferred_element_type=f32)                        # (RO, 256)
    for t in range(1, 16):
        acc3 = acc3 + jnp.dot(z3[t * RO:(t + 1) * RO].astype(bf16), s3_ref[t],
                              preferred_element_type=f32)
    # (RO, 256) lane-dense, unmasked store; reshape to NCHW is free in the wrapper.
    out_ref[...] = jax.nn.sigmoid(acc3 + b3_ref[...])


# ----------------------------------------------------------------------------
# Constant 0/1 routing matrices (built once, in numpy, shipped as bf16)
# ----------------------------------------------------------------------------
def _build_selection_constants():
    def q(y, x):                      # padded-flat latent column index
        return (y + 1) * WP + (x + 1)

    mask = np.zeros((1, P), np.float32)
    for y in range(HL):
        for x in range(WL):
            mask[0, q(y, x)] = 1.0

    # S1[t]: flattened 16x16 input -> tap t of the stride-2 3x3 conv (pad folded in).
    s1 = np.zeros((9, HW, P), np.float32)
    for dy in range(3):
        for dx in range(3):
            t = dy * 3 + dx
            for y in range(HL):
                for x in range(WL):
                    iy, ix = 2 * y + dy - 1, 2 * x + dx - 1
                    if 0 <= iy < H and 0 <= ix < W:
                        s1[t, iy * W + ix, q(y, x)] = 1.0

    # S3[t]: subpixel routing for ConvTranspose2d(k=4, s=2, p=1).
    # Output (Y, X) gets tap (ky, kx) iff parities match; source latent index
    # iy = (Y+1-ky)/2 in [-1, 8] lands on the zero ring when out of range.
    s3 = np.zeros((16, P, HW), np.float32)
    for ky in range(4):
        for kx in range(4):
            t = ky * 4 + kx
            for Y in range(H):
                if (Y + 1 - ky) % 2:
                    continue
                iy = (Y + 1 - ky) // 2
                for X in range(W):
                    if (X + 1 - kx) % 2:
                        continue
                    ix = (X + 1 - kx) // 2
                    s3[t, (iy + 1) * WP + (ix + 1), Y * W + X] = 1.0

    return {"mask": jnp.asarray(mask),                       # f32 (VPU math)
            "S1": jnp.asarray(s1, dtype=jnp.bfloat16),       # 0/1 exact in bf16
            "S3": jnp.asarray(s3, dtype=jnp.bfloat16)}


# ----------------------------------------------------------------------------
# Parameters: init + packing into per-tap block-diagonal channel-mix matrices
# ----------------------------------------------------------------------------
def init_params(key):
    k = jax.random.split(key, 6)
    f = 3
    return {
        "w1": 0.3 * jax.random.normal(k[0], (C_LAT, C_IN, f, f), jnp.float32),
        "b1": 0.1 * jax.random.normal(k[1], (C_LAT,), jnp.float32),
        "w2": 0.3 * jax.random.normal(k[2], (C_LAT, C_LAT, f, f), jnp.float32),
        "b2": 0.1 * jax.random.normal(k[3], (C_LAT,), jnp.float32),
        # PyTorch ConvTranspose2d weight layout: (in_ch=8, out_ch=4, 4, 4)
        "wt": 0.3 * jax.random.normal(k[4], (C_LAT, C_IN, f + 1, f + 1), jnp.float32),
        "bt": 0.1 * jax.random.normal(k[5], (C_IN,), jnp.float32),
    }


def pack_params(params):
    """Concatenate per-tap block-diagonal (over the batch) channel-mix blocks."""
    eye = jnp.eye(N_IMG, dtype=jnp.float32)
    taps3 = [(dy, dx) for dy in range(3) for dx in range(3)]
    # Layer 1/2: route-first layout -> blocks concatenated along the K axis.
    l1 = jnp.concatenate([jnp.kron(eye, params["w1"][:, :, dy, dx])
                          for dy, dx in taps3], axis=1)             # (RL, 9*RO)
    l2 = jnp.concatenate([jnp.kron(eye, params["w2"][:, :, dy, dx])
                          for dy, dx in taps3], axis=1)             # (RL, 9*RL)
    # Layer 3: mix-first layout -> blocks stacked along the M axis.
    l3 = jnp.concatenate([jnp.kron(eye, params["wt"][:, :, ky, kx].T)
                          for ky in range(4) for kx in range(4)], axis=0)  # (16*RO, RL)
    b1 = jnp.tile(params["b1"], N_IMG).reshape(RL, 1)
    b2 = jnp.tile(params["b2"], N_IMG).reshape(RL, 1)
    bt = jnp.tile(params["bt"], N_IMG).reshape(RO, 1)
    return {"L1": l1.astype(jnp.bfloat16), "L2": l2.astype(jnp.bfloat16),
            "L3": l3.astype(jnp.bfloat16), "b1": b1, "b2": b2, "bt": bt}


# ----------------------------------------------------------------------------
# Forward pass: two free reshapes + ONE pallas_call (no grid -> no double-buffer)
# ----------------------------------------------------------------------------
def ae_forward(x, packed, consts):
    n = x.shape[0]
    assert n == N_IMG and x.shape[1:] == (C_IN, H, W)
    x2d = x.reshape(RO, HW).astype(jnp.bfloat16)   # rows (n, ci), cols h*W+w

    out2d = pl.pallas_call(
        _ae_fused_kernel,
        out_shape=jax.ShapeDtypeStruct((RO, HW), jnp.float32),
        cost_estimate=pl.CostEstimate(flops=15_000_000,
                                      transcendentals=4_096,
                                      bytes_accessed=1_700_000),
    )(x2d, packed["L1"], consts["S1"], packed["b1"],
      packed["L2"], packed["b2"],
      packed["L3"], consts["S3"], packed["bt"], consts["mask"])

    return out2d.reshape(n, C_IN, H, W)   # (n*4+co, Y*16+X) -> NCHW, free reshape


# ----------------------------------------------------------------------------
# Plain-JAX reference (independent formulation) for a correctness check
# ----------------------------------------------------------------------------
def ae_reference(x, params):
    prec = jax.lax.Precision.HIGHEST
    dn = ("NCHW", "OIHW", "NCHW")
    h = jax.lax.conv_general_dilated(x, params["w1"], (2, 2), ((1, 1), (1, 1)),
                                     dimension_numbers=dn, precision=prec)
    h = jnp.maximum(h + params["b1"][None, :, None, None], 0.0)
    h = jax.lax.conv_general_dilated(h, params["w2"], (1, 1), ((1, 1), (1, 1)),
                                     dimension_numbers=dn, precision=prec)
    h = jax.nn.sigmoid(h + params["b2"][None, :, None, None])
    # ConvTranspose2d(k=4, s=2, p=1) == lhs-dilated conv with flipped/swapped kernel.
    wt_conv = jnp.flip(params["wt"], axis=(2, 3)).transpose(1, 0, 2, 3)
    y = jax.lax.conv_general_dilated(h, wt_conv, (1, 1), ((2, 2), (2, 2)),
                                     lhs_dilation=(2, 2), dimension_numbers=dn,
                                     precision=prec)
    return jax.nn.sigmoid(y + params["bt"][None, :, None, None])


if __name__ == "__main__":
    key = jax.random.PRNGKey(0)
    kx, kp = jax.random.split(key)

    x = jax.random.normal(kx, (N_IMG, C_IN, H, W), jnp.float32)   # NCHW
    params = init_params(kp)

    consts = _build_selection_constants()
    packed = pack_params(params)

    fwd = jax.jit(ae_forward)
    y = fwd(x, packed, consts)
    jax.block_until_ready(y)

    assert y.shape == (N_IMG, C_IN, H, W), y.shape
    assert bool(jnp.all(jnp.isfinite(y)))
    assert bool(jnp.all((y >= 0.0) & (y <= 1.0)))   # sigmoid output range

    # Numerical check against an independent lax.conv reference
    # (tolerance covers the intentional bf16 MXU-operand rounding).
    y_ref = ae_reference(x, params)
    err = float(jnp.max(jnp.abs(y - y_ref)))
    assert err < 5e-2, f"max abs error vs reference: {err}"

    print("KERNEL_OK")
</pallas_src>

<mosaic_0001>
module attributes {stable_mosaic.version = 11 : i64} {
  func.func @_ae_fused_kernel(%arg0: memref<8x256xbf16, #tpu.memory_space<vmem>>, %arg1: memref<16x72xbf16, #tpu.memory_space<vmem>>, %arg2: memref<9x256x128xbf16, #tpu.memory_space<vmem>>, %arg3: memref<16x1xf32, #tpu.memory_space<vmem>>, %arg4: memref<16x144xbf16, #tpu.memory_space<vmem>>, %arg5: memref<16x1xf32, #tpu.memory_space<vmem>>, %arg6: memref<128x16xbf16, #tpu.memory_space<vmem>>, %arg7: memref<16x128x256xbf16, #tpu.memory_space<vmem>>, %arg8: memref<8x1xf32, #tpu.memory_space<vmem>>, %arg9: memref<1x128xf32, #tpu.memory_space<vmem>>, %arg10: memref<8x256xf32, #tpu.memory_space<vmem>>) attributes {dimension_semantics = [], scalar_prefetch = 0 : i64, scratch_operands = 0 : i64, tpu.core_type = #tpu.core_type<tc>} {
    %c0 = arith.constant 0 : index
    %c0_0 = arith.constant 0 : index
    %0 = vector.load %arg0[%c0, %c0_0] : memref<8x256xbf16, #tpu.memory_space<vmem>>, vector<8x256xbf16>
    %c0_1 = arith.constant 0 : index
    %c0_2 = arith.constant 0 : index
    %1 = vector.load %arg9[%c0_1, %c0_2] : memref<1x128xf32, #tpu.memory_space<vmem>>, vector<1x128xf32>
    %c0_3 = arith.constant 0 : index
    %c0_4 = arith.constant 0 : index
    %c0_5 = arith.constant 0 : index
    %2 = vector.load %arg2[%c0_3, %c0_4, %c0_5] : memref<9x256x128xbf16, #tpu.memory_space<vmem>>, vector<1x256x128xbf16>
    %3 = vector.shape_cast %2 : vector<1x256x128xbf16> to vector<256x128xbf16>
    %cst = arith.constant dense<0.000000e+00> : vector<8x128xf32>
    %4 = tpu.matmul %0, %3, %cst {dimension_numbers = #tpu.dot_dimension_numbers<[1], [0], [0], [1], [0, 0, 1, 1], [], []>} : vector<8x256xbf16>, vector<256x128xbf16>, vector<8x128xf32> -> vector<8x128xf32>
    %c1 = arith.constant 1 : index
    %c0_6 = arith.constant 0 : index
    %c0_7 = arith.constant 0 : index
    %5 = vector.load %arg2[%c1, %c0_6, %c0_7] : memref<9x256x128xbf16, #tpu.memory_space<vmem>>, vector<1x256x128xbf16>
    %6 = vector.shape_cast %5 : vector<1x256x128xbf16> to vector<256x128xbf16>
    %cst_8 = arith.constant dense<0.000000e+00> : vector<8x128xf32>
    %7 = tpu.matmul %0, %6, %cst_8 {dimension_numbers = #tpu.dot_dimension_numbers<[1], [0], [0], [1], [0, 0, 1, 1], [], []>} : vector<8x256xbf16>, vector<256x128xbf16>, vector<8x128xf32> -> vector<8x128xf32>
    %c2 = arith.constant 2 : index
    %c0_9 = arith.constant 0 : index
    %c0_10 = arith.constant 0 : index
    %8 = vector.load %arg2[%c2, %c0_9, %c0_10] : memref<9x256x128xbf16, #tpu.memory_space<vmem>>, vector<1x256x128xbf16>
    %9 = vector.shape_cast %8 : vector<1x256x128xbf16> to vector<256x128xbf16>
    %cst_11 = arith.constant dense<0.000000e+00> : vector<8x128xf32>
    %10 = tpu.matmul %0, %9, %cst_11 {dimension_numbers = #tpu.dot_dimension_numbers<[1], [0], [0], [1], [0, 0, 1, 1], [], []>} : vector<8x256xbf16>, vector<256x128xbf16>, vector<8x128xf32> -> vector<8x128xf32>
    %c3 = arith.constant 3 : index
    %c0_12 = arith.constant 0 : index
    %c0_13 = arith.constant 0 : index
    %11 = vector.load %arg2[%c3, %c0_12, %c0_13] : memref<9x256x128xbf16, #tpu.memory_space<vmem>>, vector<1x256x128xbf16>
    %12 = vector.shape_cast %11 : vector<1x256x128xbf16> to vector<256x128xbf16>
    %cst_14 = arith.constant dense<0.000000e+00> : vector<8x128xf32>
    %13 = tpu.matmul %0, %12, %cst_14 {dimension_numbers = #tpu.dot_dimension_numbers<[1], [0], [0], [1], [0, 0, 1, 1], [], []>} : vector<8x256xbf16>, vector<256x128xbf16>, vector<8x128xf32> -> vector<8x128xf32>
    %c4 = arith.constant 4 : index
    %c0_15 = arith.constant 0 : index
    %c0_16 = arith.constant 0 : index
    %14 = vector.load %arg2[%c4, %c0_15, %c0_16] : memref<9x256x128xbf16, #tpu.memory_space<vmem>>, vector<1x256x128xbf16>
    %15 = vector.shape_cast %14 : vector<1x256x128xbf16> to vector<256x128xbf16>
    %cst_17 = arith.constant dense<0.000000e+00> : vector<8x128xf32>
    %16 = tpu.matmul %0, %15, %cst_17 {dimension_numbers = #tpu.dot_dimension_numbers<[1], [0], [0], [1], [0, 0, 1, 1], [], []>} : vector<8x256xbf16>, vector<256x128xbf16>, vector<8x128xf32> -> vector<8x128xf32>
    %c5 = arith.constant 5 : index
    %c0_18 = arith.constant 0 : index
    %c0_19 = arith.constant 0 : index
    %17 = vector.load %arg2[%c5, %c0_18, %c0_19] : memref<9x256x128xbf16, #tpu.memory_space<vmem>>, vector<1x256x128xbf16>
    %18 = vector.shape_cast %17 : vector<1x256x128xbf16> to vector<256x128xbf16>
    %cst_20 = arith.constant dense<0.000000e+00> : vector<8x128xf32>
    %19 = tpu.matmul %0, %18, %cst_20 {dimension_numbers = #tpu.dot_dimension_numbers<[1], [0], [0], [1], [0, 0, 1, 1], [], []>} : vector<8x256xbf16>, vector<256x128xbf16>, vector<8x128xf32> -> vector<8x128xf32>
    %c6 = arith.constant 6 : index
    %c0_21 = arith.constant 0 : index
    %c0_22 = arith.constant 0 : index
    %20 = vector.load %arg2[%c6, %c0_21, %c0_22] : memref<9x256x128xbf16, #tpu.memory_space<vmem>>, vector<1x256x128xbf16>
    %21 = vector.shape_cast %20 : vector<1x256x128xbf16> to vector<256x128xbf16>
    %cst_23 = arith.constant dense<0.000000e+00> : vector<8x128xf32>
    %22 = tpu.matmul %0, %21, %cst_23 {dimension_numbers = #tpu.dot_dimension_numbers<[1], [0], [0], [1], [0, 0, 1, 1], [], []>} : vector<8x256xbf16>, vector<256x128xbf16>, vector<8x128xf32> -> vector<8x128xf32>
    %c7 = arith.constant 7 : index
    %c0_24 = arith.constant 0 : index
    %c0_25 = arith.constant 0 : index
    %23 = vector.load %arg2[%c7, %c0_24, %c0_25] : memref<9x256x128xbf16, #tpu.memory_space<vmem>>, vector<1x256x128xbf16>
    %24 = vector.shape_cast %23 : vector<1x256x128xbf16> to vector<256x128xbf16>
    %cst_26 = arith.constant dense<0.000000e+00> : vector<8x128xf32>
    %25 = tpu.matmul %0, %24, %cst_26 {dimension_numbers = #tpu.dot_dimension_numbers<[1], [0], [0], [1], [0, 0, 1, 1], [], []>} : vector<8x256xbf16>, vector<256x128xbf16>, vector<8x128xf32> -> vector<8x128xf32>
    %c8 = arith.constant 8 : index
    %c0_27 = arith.constant 0 : index
    %c0_28 = arith.constant 0 : index
    %26 = vector.load %arg2[%c8, %c0_27, %c0_28] : memref<9x256x128xbf16, #tpu.memory_space<vmem>>, vector<1x256x128xbf16>
    %27 = vector.shape_cast %26 : vector<1x256x128xbf16> to vector<256x128xbf16>
    %cst_29 = arith.constant dense<0.000000e+00> : vector<8x128xf32>
    %28 = tpu.matmul %0, %27, %cst_29 {dimension_numbers = #tpu.dot_dimension_numbers<[1], [0], [0], [1], [0, 0, 1, 1], [], []>} : vector<8x256xbf16>, vector<256x128xbf16>, vector<8x128xf32> -> vector<8x128xf32>
    %29 = tpu.concatenate %4, %7, %10, %13, %16, %19, %22, %25, %28 in 0 : vector<8x128xf32>, vector<8x128xf32>, vector<8x128xf32>, vector<8x128xf32>, vector<8x128xf32>, vector<8x128xf32>, vector<8x128xf32>, vector<8x128xf32>, vector<8x128xf32> -> vector<72x128xf32>
    %30 = arith.truncf %29 : vector<72x128xf32> to vector<72x128xbf16>
    %c0_30 = arith.constant 0 : index
    %c0_31 = arith.constant 0 : index
    %31 = vector.load %arg1[%c0_30, %c0_31] : memref<16x72xbf16, #tpu.memory_space<vmem>>, vector<16x72xbf16>
    %cst_32 = arith.constant dense<0.000000e+00> : vector<16x128xf32>
    %32 = tpu.matmul %31, %30, %cst_32 {dimension_numbers = #tpu.dot_dimension_numbers<[1], [0], [0], [1], [0, 0, 1, 1], [], []>} : vector<16x72xbf16>, vector<72x128xbf16>, vector<16x128xf32> -> vector<16x128xf32>
    %c0_33 = arith.constant 0 : index
    %c0_34 = arith.constant 0 : index
    %33 = vector.load %arg3[%c0_33, %c0_34] : memref<16x1xf32, #tpu.memory_space<vmem>>, vector<16x1xf32>
    %34 = vector.broadcast %33 : vector<16x1xf32> to vector<16x128xf32>
    %35 = arith.addf %32, %34 : vector<16x128xf32>
    %cst_35 = arith.constant 0.000000e+00 : f32
    %36 = vector.broadcast %cst_35 : f32 to vector<16x128xf32>
    %37 = arith.maximumf %35, %36 : vector<16x128xf32>
    %38 = vector.broadcast %1 : vector<1x128xf32> to vector<16x128xf32>
    %39 = arith.mulf %38, %37 : vector<16x128xf32>
    %c11_i32 = arith.constant 11 : i32
    %40 = tpu.dynamic_rotate %39 by %c11_i32 dim 1 : vector<16x128xf32>, i32 -> vector<16x128xf32>
    %c10_i32 = arith.constant 10 : i32
    %41 = tpu.dynamic_rotate %39 by %c10_i32 dim 1 : vector<16x128xf32>, i32 -> vector<16x128xf32>
    %c9_i32 = arith.constant 9 : i32
    %42 = tpu.dynamic_rotate %39 by %c9_i32 dim 1 : vector<16x128xf32>, i32 -> vector<16x128xf32>
    %c1_i32 = arith.constant 1 : i32
    %43 = tpu.dynamic_rotate %39 by %c1_i32 dim 1 : vector<16x128xf32>, i32 -> vector<16x128xf32>
    %c127_i32 = arith.constant 127 : i32
    %44 = tpu.dynamic_rotate %39 by %c127_i32 dim 1 : vector<16x128xf32>, i32 -> vector<16x128xf32>
    %c119_i32 = arith.constant 119 : i32
    %45 = tpu.dynamic_rotate %39 by %c119_i32 dim 1 : vector<16x128xf32>, i32 -> vector<16x128xf32>
    %c118_i32 = arith.constant 118 : i32
    %46 = tpu.dynamic_rotate %39 by %c118_i32 dim 1 : vector<16x128xf32>, i32 -> vector<16x128xf32>
    %c117_i32 = arith.constant 117 : i32
    %47 = tpu.dynamic_rotate %39 by %c117_i32 dim 1 : vector<16x128xf32>, i32 -> vector<16x128xf32>
    %48 = tpu.concatenate %40, %41, %42, %43, %39, %44, %45, %46, %47 in 0 : vector<16x128xf32>, vector<16x128xf32>, vector<16x128xf32>, vector<16x128xf32>, vector<16x128xf32>, vector<16x128xf32>, vector<16x128xf32>, vector<16x128xf32>, vector<16x128xf32> -> vector<144x128xf32>
    %49 = arith.truncf %48 : vector<144x128xf32> to vector<144x128xbf16>
    %c0_36 = arith.constant 0 : index
    %c0_37 = arith.constant 0 : index
    %50 = vector.load %arg4[%c0_36, %c0_37] : memref<16x144xbf16, #tpu.memory_space<vmem>>, vector<16x144xbf16>
    %cst_38 = arith.constant dense<0.000000e+00> : vector<16x128xf32>
    %51 = tpu.matmul %50, %49, %cst_38 {dimension_numbers = #tpu.dot_dimension_numbers<[1], [0], [0], [1], [0, 0, 1, 1], [], []>} : vector<16x144xbf16>, vector<144x128xbf16>, vector<16x128xf32> -> vector<16x128xf32>
    %c0_39 = arith.constant 0 : index
    %c0_40 = arith.constant 0 : index
    %52 = vector.load %arg5[%c0_39, %c0_40] : memref<16x1xf32, #tpu.memory_space<vmem>>, vector<16x1xf32>
    %53 = vector.broadcast %52 : vector<16x1xf32> to vector<16x128xf32>
    %54 = arith.addf %51, %53 : vector<16x128xf32>
    %55 = arith.negf %54 : vector<16x128xf32>
    %56 = math.exp %55 : vector<16x128xf32>
    %cst_41 = arith.constant 1.000000e+00 : f32
    %57 = vector.broadcast %cst_41 : f32 to vector<16x128xf32>
    %58 = arith.addf %57, %56 : vector<16x128xf32>
    %59 = arith.divf %57, %58 : vector<16x128xf32>
    %60 = vector.broadcast %1 : vector<1x128xf32> to vector<16x128xf32>
    %61 = arith.mulf %60, %59 : vector<16x128xf32>
    %c0_42 = arith.constant 0 : index
    %c0_43 = arith.constant 0 : index
    %62 = vector.load %arg6[%c0_42, %c0_43] : memref<128x16xbf16, #tpu.memory_space<vmem>>, vector<128x16xbf16>
    %63 = arith.truncf %61 : vector<16x128xf32> to vector<16x128xbf16>
    %cst_44 = arith.constant dense<0.000000e+00> : vector<128x128xf32>
    %64 = tpu.matmul %62, %63, %cst_44 {dimension_numbers = #tpu.dot_dimension_numbers<[1], [0], [0], [1], [0, 0, 1, 1], [], []>} : vector<128x16xbf16>, vector<16x128xbf16>, vector<128x128xf32> -> vector<128x128xf32>
    %65 = vector.extract_strided_slice %64 {offsets = [0, 0], sizes = [8, 128], strides = [1, 1]} : vector<128x128xf32> to vector<8x128xf32>
    %66 = arith.truncf %65 : vector<8x128xf32> to vector<8x128xbf16>
    %c0_45 = arith.constant 0 : index
    %c0_46 = arith.constant 0 : index
    %c0_47 = arith.constant 0 : index
    %67 = vector.load %arg7[%c0_45, %c0_46, %c0_47] : memref<16x128x256xbf16, #tpu.memory_space<vmem>>, vector<1x128x256xbf16>
    %68 = vector.shape_cast %67 : vector<1x128x256xbf16> to vector<128x256xbf16>
    %cst_48 = arith.constant dense<0.000000e+00> : vector<8x256xf32>
    %69 = tpu.matmul %66, %68, %cst_48 {dimension_numbers = #tpu.dot_dimension_numbers<[1], [0], [0], [1], [0, 0, 1, 1], [], []>} : vector<8x128xbf16>, vector<128x256xbf16>, vector<8x256xf32> -> vector<8x256xf32>
    %70 = vector.extract_strided_slice %64 {offsets = [8, 0], sizes = [8, 128], strides = [1, 1]} : vector<128x128xf32> to vector<8x128xf32>
    %71 = arith.truncf %70 : vector<8x128xf32> to vector<8x128xbf16>
    %c1_49 = arith.constant 1 : index
    %c0_50 = arith.constant 0 : index
    %c0_51 = arith.constant 0 : index
    %72 = vector.load %arg7[%c1_49, %c0_50, %c0_51] : memref<16x128x256xbf16, #tpu.memory_space<vmem>>, vector<1x128x256xbf16>
    %73 = vector.shape_cast %72 : vector<1x128x256xbf16> to vector<128x256xbf16>
    %cst_52 = arith.constant dense<0.000000e+00> : vector<8x256xf32>
    %74 = tpu.matmul %71, %73, %cst_52 {dimension_numbers = #tpu.dot_dimension_numbers<[1], [0], [0], [1], [0, 0, 1, 1], [], []>} : vector<8x128xbf16>, vector<128x256xbf16>, vector<8x256xf32> -> vector<8x256xf32>
    %75 = arith.addf %69, %74 : vector<8x256xf32>
    %76 = vector.extract_strided_slice %64 {offsets = [16, 0], sizes = [8, 128], strides = [1, 1]} : vector<128x128xf32> to vector<8x128xf32>
    %77 = arith.truncf %76 : vector<8x128xf32> to vector<8x128xbf16>
    %c2_53 = arith.constant 2 : index
    %c0_54 = arith.constant 0 : index
    %c0_55 = arith.constant 0 : index
    %78 = vector.load %arg7[%c2_53, %c0_54, %c0_55] : memref<16x128x256xbf16, #tpu.memory_space<vmem>>, vector<1x128x256xbf16>
    %79 = vector.shape_cast %78 : vector<1x128x256xbf16> to vector<128x256xbf16>
    %cst_56 = arith.constant dense<0.000000e+00> : vector<8x256xf32>
    %80 = tpu.matmul %77, %79, %cst_56 {dimension_numbers = #tpu.dot_dimension_numbers<[1], [0], [0], [1], [0, 0, 1, 1], [], []>} : vector<8x128xbf16>, vector<128x256xbf16>, vector<8x256xf32> -> vector<8x256xf32>
    %81 = arith.addf %75, %80 : vector<8x256xf32>
    %82 = vector.extract_strided_slice %64 {offsets = [24, 0], sizes = [8, 128], strides = [1, 1]} : vector<128x128xf32> to vector<8x128xf32>
    %83 = arith.truncf %82 : vector<8x128xf32> to vector<8x128xbf16>
    %c3_57 = arith.constant 3 : index
    %c0_58 = arith.constant 0 : index
    %c0_59 = arith.constant 0 : index
    %84 = vector.load %arg7[%c3_57, %c0_58, %c0_59] : memref<16x128x256xbf16, #tpu.memory_space<vmem>>, vector<1x128x256xbf16>
    %85 = vector.shape_cast %84 : vector<1x128x256xbf16> to vector<128x256xbf16>
    %cst_60 = arith.constant dense<0.000000e+00> : vector<8x256xf32>
    %86 = tpu.matmul %83, %85, %cst_60 {dimension_numbers = #tpu.dot_dimension_numbers<[1], [0], [0], [1], [0, 0, 1, 1], [], []>} : vector<8x128xbf16>, vector<128x256xbf16>, vector<8x256xf32> -> vector<8x256xf32>
    %87 = arith.addf %81, %86 : vector<8x256xf32>
    %88 = vector.extract_strided_slice %64 {offsets = [32, 0], sizes = [8, 128], strides = [1, 1]} : vector<128x128xf32> to vector<8x128xf32>
    %89 = arith.truncf %88 : vector<8x128xf32> to vector<8x128xbf16>
    %c4_61 = arith.constant 4 : index
    %c0_62 = arith.constant 0 : index
    %c0_63 = arith.constant 0 : index
    %90 = vector.load %arg7[%c4_61, %c0_62, %c0_63] : memref<16x128x256xbf16, #tpu.memory_space<vmem>>, vector<1x128x256xbf16>
    %91 = vector.shape_cast %90 : vector<1x128x256xbf16> to vector<128x256xbf16>
    %cst_64 = arith.constant dense<0.000000e+00> : vector<8x256xf32>
    %92 = tpu.matmul %89, %91, %cst_64 {dimension_numbers = #tpu.dot_dimension_numbers<[1], [0], [0], [1], [0, 0, 1, 1], [], []>} : vector<8x128xbf16>, vector<128x256xbf16>, vector<8x256xf32> -> vector<8x256xf32>
    %93 = arith.addf %87, %92 : vector<8x256xf32>
    %94 = vector.extract_strided_slice %64 {offsets = [40, 0], sizes = [8, 128], strides = [1, 1]} : vector<128x128xf32> to vector<8x128xf32>
    %95 = arith.truncf %94 : vector<8x128xf32> to vector<8x128xbf16>
    %c5_65 = arith.constant 5 : index
    %c0_66 = arith.constant 0 : index
    %c0_67 = arith.constant 0 : index
    %96 = vector.load %arg7[%c5_65, %c0_66, %c0_67] : memref<16x128x256xbf16, #tpu.memory_space<vmem>>, vector<1x128x256xbf16>
    %97 = vector.shape_cast %96 : vector<1x128x256xbf16> to vector<128x256xbf16>
    %cst_68 = arith.constant dense<0.000000e+00> : vector<8x256xf32>
    %98 = tpu.matmul %95, %97, %cst_68 {dimension_numbers = #tpu.dot_dimension_numbers<[1], [0], [0], [1], [0, 0, 1, 1], [], []>} : vector<8x128xbf16>, vector<128x256xbf16>, vector<8x256xf32> -> vector<8x256xf32>
    %99 = arith.addf %93, %98 : vector<8x256xf32>
    %100 = vector.extract_strided_slice %64 {offsets = [48, 0], sizes = [8, 128], strides = [1, 1]} : vector<128x128xf32> to vector<8x128xf32>
    %101 = arith.truncf %100 : vector<8x128xf32> to vector<8x128xbf16>
    %c6_69 = arith.constant 6 : index
    %c0_70 = arith.constant 0 : index
    %c0_71 = arith.constant 0 : index
    %102 = vector.load %arg7[%c6_69, %c0_70, %c0_71] : memref<16x128x256xbf16, #tpu.memory_space<vmem>>, vector<1x128x256xbf16>
    %103 = vector.shape_cast %102 : vector<1x128x256xbf16> to vector<128x256xbf16>
    %cst_72 = arith.constant dense<0.000000e+00> : vector<8x256xf32>
    %104 = tpu.matmul %101, %103, %cst_72 {dimension_numbers = #tpu.dot_dimension_numbers<[1], [0], [0], [1], [0, 0, 1, 1], [], []>} : vector<8x128xbf16>, vector<128x256xbf16>, vector<8x256xf32> -> vector<8x256xf32>
    %105 = arith.addf %99, %104 : vector<8x256xf32>
    %106 = vector.extract_strided_slice %64 {offsets = [56, 0], sizes = [8, 128], strides = [1, 1]} : vector<128x128xf32> to vector<8x128xf32>
    %107 = arith.truncf %106 : vector<8x128xf32> to vector<8x128xbf16>
    %c7_73 = arith.constant 7 : index
    %c0_74 = arith.constant 0 : index
    %c0_75 = arith.constant 0 : index
    %108 = vector.load %arg7[%c7_73, %c0_74, %c0_75] : memref<16x128x256xbf16, #tpu.memory_space<vmem>>, vector<1x128x256xbf16>
    %109 = vector.shape_cast %108 : vector<1x128x256xbf16> to vector<128x256xbf16>
    %cst_76 = arith.constant dense<0.000000e+00> : vector<8x256xf32>
    %110 = tpu.matmul %107, %109, %cst_76 {dimension_numbers = #tpu.dot_dimension_numbers<[1], [0], [0], [1], [0, 0, 1, 1], [], []>} : vector<8x128xbf16>, vector<128x256xbf16>, vector<8x256xf32> -> vector<8x256xf32>
    %111 = arith.addf %105, %110 : vector<8x256xf32>
    %112 = vector.extract_strided_slice %64 {offsets = [64, 0], sizes = [8, 128], strides = [1, 1]} : vector<128x128xf32> to vector<8x128xf32>
    %113 = arith.truncf %112 : vector<8x128xf32> to vector<8x128xbf16>
    %c8_77 = arith.constant 8 : index
    %c0_78 = arith.constant 0 : index
    %c0_79 = arith.constant 0 : index
    %114 = vector.load %arg7[%c8_77, %c0_78, %c0_79] : memref<16x128x256xbf16, #tpu.memory_space<vmem>>, vector<1x128x256xbf16>
    %115 = vector.shape_cast %114 : vector<1x128x256xbf16> to vector<128x256xbf16>
    %cst_80 = arith.constant dense<0.000000e+00> : vector<8x256xf32>
    %116 = tpu.matmul %113, %115, %cst_80 {dimension_numbers = #tpu.dot_dimension_numbers<[1], [0], [0], [1], [0, 0, 1, 1], [], []>} : vector<8x128xbf16>, vector<128x256xbf16>, vector<8x256xf32> -> vector<8x256xf32>
    %117 = arith.addf %111, %116 : vector<8x256xf32>
    %118 = vector.extract_strided_slice %64 {offsets = [72, 0], sizes = [8, 128], strides = [1, 1]} : vector<128x128xf32> to vector<8x128xf32>
    %119 = arith.truncf %118 : vector<8x128xf32> to vector<8x128xbf16>
    %c9 = arith.constant 9 : index
    %c0_81 = arith.constant 0 : index
    %c0_82 = arith.constant 0 : index
    %120 = vector.load %arg7[%c9, %c0_81, %c0_82] : memref<16x128x256xbf16, #tpu.memory_space<vmem>>, vector<1x128x256xbf16>
    %121 = vector.shape_cast %120 : vector<1x128x256xbf16> to vector<128x256xbf16>
    %cst_83 = arith.constant dense<0.000000e+00> : vector<8x256xf32>
    %122 = tpu.matmul %119, %121, %cst_83 {dimension_numbers = #tpu.dot_dimension_numbers<[1], [0], [0], [1], [0, 0, 1, 1], [], []>} : vector<8x128xbf16>, vector<128x256xbf16>, vector<8x256xf32> -> vector<8x256xf32>
    %123 = arith.addf %117, %122 : vector<8x256xf32>
    %124 = vector.extract_strided_slice %64 {offsets = [80, 0], sizes = [8, 128], strides = [1, 1]} : vector<128x128xf32> to vector<8x128xf32>
    %125 = arith.truncf %124 : vector<8x128xf32> to vector<8x128xbf16>
    %c10 = arith.constant 10 : index
    %c0_84 = arith.constant 0 : index
    %c0_85 = arith.constant 0 : index
    %126 = vector.load %arg7[%c10, %c0_84, %c0_85] : memref<16x128x256xbf16, #tpu.memory_space<vmem>>, vector<1x128x256xbf16>
    %127 = vector.shape_cast %126 : vector<1x128x256xbf16> to vector<128x256xbf16>
    %cst_86 = arith.constant dense<0.000000e+00> : vector<8x256xf32>
    %128 = tpu.matmul %125, %127, %cst_86 {dimension_numbers = #tpu.dot_dimension_numbers<[1], [0], [0], [1], [0, 0, 1, 1], [], []>} : vector<8x128xbf16>, vector<128x256xbf16>, vector<8x256xf32> -> vector<8x256xf32>
    %129 = arith.addf %123, %128 : vector<8x256xf32>
    %130 = vector.extract_strided_slice %64 {offsets = [88, 0], sizes = [8, 128], strides = [1, 1]} : vector<128x128xf32> to vector<8x128xf32>
    %131 = arith.truncf %130 : vector<8x128xf32> to vector<8x128xbf16>
    %c11 = arith.constant 11 : index
    %c0_87 = arith.constant 0 : index
    %c0_88 = arith.constant 0 : index
    %132 = vector.load %arg7[%c11, %c0_87, %c0_88] : memref<16x128x256xbf16, #tpu.memory_space<vmem>>, vector<1x128x256xbf16>
    %133 = vector.shape_cast %132 : vector<1x128x256xbf16> to vector<128x256xbf16>
    %cst_89 = arith.constant dense<0.000000e+00> : vector<8x256xf32>
    %134 = tpu.matmul %131, %133, %cst_89 {dimension_numbers = #tpu.dot_dimension_numbers<[1], [0], [0], [1], [0, 0, 1, 1], [], []>} : vector<8x128xbf16>, vector<128x256xbf16>, vector<8x256xf32> -> vector<8x256xf32>
    %135 = arith.addf %129, %134 : vector<8x256xf32>
    %136 = vector.extract_strided_slice %64 {offsets = [96, 0], sizes = [8, 128], strides = [1, 1]} : vector<128x128xf32> to vector<8x128xf32>
    %137 = arith.truncf %136 : vector<8x128xf32> to vector<8x128xbf16>
    %c12 = arith.constant 12 : index
    %c0_90 = arith.constant 0 : index
    %c0_91 = arith.constant 0 : index
    %138 = vector.load %arg7[%c12, %c0_90, %c0_91] : memref<16x128x256xbf16, #tpu.memory_space<vmem>>, vector<1x128x256xbf16>
    %139 = vector.shape_cast %138 : vector<1x128x256xbf16> to vector<128x256xbf16>
    %cst_92 = arith.constant dense<0.000000e+00> : vector<8x256xf32>
    %140 = tpu.matmul %137, %139, %cst_92 {dimension_numbers = #tpu.dot_dimension_numbers<[1], [0], [0], [1], [0, 0, 1, 1], [], []>} : vector<8x128xbf16>, vector<128x256xbf16>, vector<8x256xf32> -> vector<8x256xf32>
    %141 = arith.addf %135, %140 : vector<8x256xf32>
    %142 = vector.extract_strided_slice %64 {offsets = [104, 0], sizes = [8, 128], strides = [1, 1]} : vector<128x128xf32> to vector<8x128xf32>
    %143 = arith.truncf %142 : vector<8x128xf32> to vector<8x128xbf16>
    %c13 = arith.constant 13 : index
    %c0_93 = arith.constant 0 : index
    %c0_94 = arith.constant 0 : index
    %144 = vector.load %arg7[%c13, %c0_93, %c0_94] : memref<16x128x256xbf16, #tpu.memory_space<vmem>>, vector<1x128x256xbf16>
    %145 = vector.shape_cast %144 : vector<1x128x256xbf16> to vector<128x256xbf16>
    %cst_95 = arith.constant dense<0.000000e+00> : vector<8x256xf32>
    %146 = tpu.matmul %143, %145, %cst_95 {dimension_numbers = #tpu.dot_dimension_numbers<[1], [0], [0], [1], [0, 0, 1, 1], [], []>} : vector<8x128xbf16>, vector<128x256xbf16>, vector<8x256xf32> -> vector<8x256xf32>
    %147 = arith.addf %141, %146 : vector<8x256xf32>
    %148 = vector.extract_strided_slice %64 {offsets = [112, 0], sizes = [8, 128], strides = [1, 1]} : vector<128x128xf32> to vector<8x128xf32>
    %149 = arith.truncf %148 : vector<8x128xf32> to vector<8x128xbf16>
    %c14 = arith.constant 14 : index
    %c0_96 = arith.constant 0 : index
    %c0_97 = arith.constant 0 : index
    %150 = vector.load %arg7[%c14, %c0_96, %c0_97] : memref<16x128x256xbf16, #tpu.memory_space<vmem>>, vector<1x128x256xbf16>
    %151 = vector.shape_cast %150 : vector<1x128x256xbf16> to vector<128x256xbf16>
    %cst_98 = arith.constant dense<0.000000e+00> : vector<8x256xf32>
    %152 = tpu.matmul %149, %151, %cst_98 {dimension_numbers = #tpu.dot_dimension_numbers<[1], [0], [0], [1], [0, 0, 1, 1], [], []>} : vector<8x128xbf16>, vector<128x256xbf16>, vector<8x256xf32> -> vector<8x256xf32>
    %153 = arith.addf %147, %152 : vector<8x256xf32>
    %154 = vector.extract_strided_slice %64 {offsets = [120, 0], sizes = [8, 128], strides = [1, 1]} : vector<128x128xf32> to vector<8x128xf32>
    %155 = arith.truncf %154 : vector<8x128xf32> to vector<8x128xbf16>
    %c15 = arith.constant 15 : index
    %c0_99 = arith.constant 0 : index
    %c0_100 = arith.constant 0 : index
    %156 = vector.load %arg7[%c15, %c0_99, %c0_100] : memref<16x128x256xbf16, #tpu.memory_space<vmem>>, vector<1x128x256xbf16>
    %157 = vector.shape_cast %156 : vector<1x128x256xbf16> to vector<128x256xbf16>
    %cst_101 = arith.constant dense<0.000000e+00> : vector<8x256xf32>
    %158 = tpu.matmul %155, %157, %cst_101 {dimension_numbers = #tpu.dot_dimension_numbers<[1], [0], [0], [1], [0, 0, 1, 1], [], []>} : vector<8x128xbf16>, vector<128x256xbf16>, vector<8x256xf32> -> vector<8x256xf32>
    %159 = arith.addf %153, %158 : vector<8x256xf32>
    %c0_102 = arith.constant 0 : index
    %c0_103 = arith.constant 0 : index
    %160 = vector.load %arg8[%c0_102, %c0_103] : memref<8x1xf32, #tpu.memory_space<vmem>>, vector<8x1xf32>
    %161 = vector.broadcast %160 : vector<8x1xf32> to vector<8x256xf32>
    %162 = arith.addf %159, %161 : vector<8x256xf32>
    %163 = arith.negf %162 : vector<8x256xf32>
    %164 = math.exp %163 : vector<8x256xf32>
    %cst_104 = arith.constant 1.000000e+00 : f32
    %165 = vector.broadcast %cst_104 : f32 to vector<8x256xf32>
    %166 = arith.addf %165, %164 : vector<8x256xf32>
    %167 = arith.divf %165, %166 : vector<8x256xf32>
    %c0_105 = arith.constant 0 : index
    %c0_106 = arith.constant 0 : index
    %168 = vector.load %arg10[%c0_105, %c0_106] : memref<8x256xf32, #tpu.memory_space<vmem>>, vector<8x256xf32>
    tpu.vector_store %arg10[%c0_105, %c0_106], %167 {strides = array<i32>} : memref<8x256xf32, #tpu.memory_space<vmem>>, vector<8x256xf32>,
    return
  }
}

</mosaic_0001>

<bundles_post_ra>
// kernel: ae_forward.1
= control target key start
LH: loop header
LB: loop body
LE: loop exit
PB: predicated region body
PF: predicated region fallthrough
CT: control target
= control target key end

     0   :  { %15 = vsyncpa [#allocation3], 0  ;;  %s6308_s0 = inlined_call_operand.vmem [shape: bf16[8,256], index: 0, kind: input, shape index: {}]   ;;  %s6309_s1 = inlined_call_operand.vmem [shape: bf16[16,72], index: 1, kind: input, shape index: {}]   ;;  %s6310_s2 = inlined_call_operand.hbm [shape: bf16[9,256,128], index: 2, kind: input, shape index: {}]   ;;  %s6311_s3 = inlined_call_operand.vmem [shape: f32[16,1], index: 3, kind: input, shape index: {}]   ;;  %s6312_s4 = inlined_call_operand.vmem [shape: bf16[16,144], index: 4, kind: input, shape index: {}]   ;;  %s6313_s5 = inlined_call_operand.vmem [shape: f32[16,1], index: 5, kind: input, shape index: {}]   ;;  %s6314_s6 = inlined_call_operand.vmem [shape: bf16[128,16], index: 6, kind: input, shape index: {}]   ;;  %s6315_s7 = inlined_call_operand.hbm [shape: bf16[16,128,256], index: 7, kind: input, shape index: {}]   ;;  %s6316_s8 = inlined_call_operand.vmem [shape: f32[8,1], index: 8, kind: input, shape index: {}]   ;;  %s6317_s9 = inlined_call_operand.vmem [shape: f32[1,128], index: 9, kind: input, shape index: {}]   ;;  %s6318_s10 = inlined_call_operand.vmem [shape: f32[8,256], index: 10, kind: output, shape index: {}]  }
   0x1   :  { %s25_s15 = sshll.u32 %s6310_s2, 4  ;;  %s26_s15 = int_to_ptr.hbm [resolvable:$true] %s25_s15 }
   0x2   :  { %16 = vsyncpa [#allocation5], 0  ;;  %s6051_s16 = smov [#allocation2]   ;;  %s46_s20 = sshll.u32 %s6315_s7, 4  ;;  %s47_s20 = int_to_ptr.hbm [resolvable:$true] %s46_s20 }
   0x3   :  { %s27_s17 = sshll.u32 %s6051_s16, 4  ;;  %s6052_s21 = smov 64   ;;  %s28_s17 = int_to_ptr.vmem [resolvable:$true] %s27_s17 }
   0x4   :  { %s6053_s22 = smov 4   ;;  %s6054_s23 = smov [#allocation4]  }
   0x5   :  { %33 = dma.hbm_to_vmem [thread:$0]  %s26_s15, 18432, %s28_s17, [#allocation3], %s6052_s21, %s6052_s21, %s6053_s22  }
   0x6   :  { %s48_s24 = sshll.u32 %s6054_s23, 4  ;;  %s6055_s25 = smov 128   ;;  %s49_s24 = int_to_ptr.vmem [resolvable:$true] %s48_s24 }
   0x7   :  { %s6056_s26 = smov 8  }
   0x8   :  { %54 = dma.hbm_to_vmem [thread:$0]  %s47_s20, 32768, %s49_s24, [#allocation5], %s6055_s25, %s6055_s25, %s6056_s26  }
   0x9   :  { %6047 = dma.done.wait [#allocation3], 18432  }
   0xa   :  { %6048 = vsyncadd [#allocation3], 4294948864 }
   0xb   :  { %6049 = dma.done.wait [#allocation5], 32768  }
   0xc   :  { %6050 = vsyncadd [#allocation5], 4294934528  ;;  %v5520_v0 = vld [vmem:[#allocation2 + $0x38] sm:$0xff]  ;;  %v5519_v4 = vld [vmem:[#allocation2 + $0x30] sm:$0xff]  ;;  %vm1499_vm0 = vcmask 1043456   ;;  %vm1495_vm1 = vcmask 588800  }
   0xd   :  { %v5528_v1 = vld [vmem:[#allocation2 + $0x78] sm:$0xff]  ;;  %205 = vmatpush.bf16.msra.mxu0 %v5520_v0  ;;  %v5527_v5 = vld [vmem:[#allocation2 + $0x70] sm:$0xff]  ;;  %v5518_v8 = vld [vmem:[#allocation2 + $0x28] sm:$0xff]  ;;  %s6059_s13 = smov 127   ;;  %s6060_s14 = smov 118   ;;  %vm1588_vm2 = vcmask 130048  }
   0xe   :  { %v5536_v2 = vld [vmem:[#allocation2 + $0xb8] sm:$0xff]  ;;  %218 = vmatpush.bf16.msra.mxu1 %v5528_v1  ;;  %v5535_v6 = vld [vmem:[#allocation2 + $0xb0] sm:$0xff]  ;;  %v5526_v9 = vld [vmem:[#allocation2 + $0x68] sm:$0xff]  ;;  %s6061_s15 = smov 117   ;;  %s6062_s16 = smov 1  }
   0xf   :  { %v5544_v3 = vld [vmem:[#allocation2 + $0xf8] sm:$0xff]  ;;  %360 = vmatpush.bf16.msra.mxu2 %v5536_v2  ;;  %v5543_v7 = vld [vmem:[#allocation2 + $0xf0] sm:$0xff]  ;;  %v5534_v10 = vld [vmem:[#allocation2 + $0xa8] sm:$0xff]  ;;  %s6064_s19 = smov 11   ;;  %s6065_s20 = smov 10  }
  0x10   :  { %373 = vmatpush.bf16.msra.mxu3 %v5544_v3  ;;  %v5542_v11 = vld [vmem:[#allocation2 + $0xe8] sm:$0xff]  ;;  %v5517_v12 = vld [vmem:[#allocation2 + $0x20] sm:$0xff]  ;;  %v5516_v16 = vld [vmem:[#allocation2 + $0x18] sm:$0xff] }
  0x11   :  { %206 = vmatpush.bf16.msra.mxu0 %v5519_v4  ;;  %v5525_v13 = vld [vmem:[#allocation2 + $0x60] sm:$0xff]  ;;  %v5524_v17 = vld [vmem:[#allocation2 + $0x58] sm:$0xff]  ;;  %v5515_v20 = vld [vmem:[#allocation2 + $0x10] sm:$0xff] }
  0x12   :  { %219 = vmatpush.bf16.msra.mxu1 %v5527_v5  ;;  %v5533_v14 = vld [vmem:[#allocation2 + $0xa0] sm:$0xff]  ;;  %v5532_v18 = vld [vmem:[#allocation2 + $0x98] sm:$0xff]  ;;  %v5523_v21 = vld [vmem:[#allocation2 + $0x50] sm:$0xff] }
  0x13   :  { %361 = vmatpush.bf16.msra.mxu2 %v5535_v6  ;;  %v5541_v15 = vld [vmem:[#allocation2 + $0xe0] sm:$0xff]  ;;  %v5540_v19 = vld [vmem:[#allocation2 + $0xd8] sm:$0xff]  ;;  %v5531_v22 = vld [vmem:[#allocation2 + $0x90] sm:$0xff] }
  0x14   :  { %374 = vmatpush.bf16.msra.mxu3 %v5543_v7  ;;  %v5539_v23 = vld [vmem:[#allocation2 + $0xd0] sm:$0xff]  ;;  %v5514_v24 = vld [vmem:[#allocation2 + $0x8] sm:$0xff]  ;;  %v68_v28 = vld [vmem:[%s6308_s0] sm:$0xff] }
  0x15   :  { %207 = vmatpush.bf16.msra.mxu0 %v5518_v8  ;;  %v5522_v25 = vld [vmem:[#allocation2 + $0x48] sm:$0xff]  ;;  %v5513_v29 = vld [vmem:[#allocation2] sm:$0xff]  ;;  %v103_v31 = vunpack.c.l.b16 %v68_v28  ;;  %v104_v32 = vunpack.c.h.b16 %v68_v28  ;;  %v5552_v33 = vld [vmem:[#allocation2 + $0x138] sm:$0xff] }
  0x16   :  { %220 = vmatpush.bf16.msra.mxu1 %v5526_v9  ;;  %v5530_v26 = vld [vmem:[#allocation2 + $0x88] sm:$0xff]  ;;  %v5521_v30 = vld [vmem:[#allocation2 + $0x40] sm:$0xff]  ;;  %v5560_v34 = vld [vmem:[#allocation2 + $0x178] sm:$0xff] }
  0x17   :  { %362 = vmatpush.bf16.msra.mxu2 %v5534_v10  ;;  %v5538_v27 = vld [vmem:[#allocation2 + $0xc8] sm:$0xff]  ;;  %v5529_v35 = vld [vmem:[#allocation2 + $0x80] sm:$0xff]  ;;  %v5568_v37 = vld [vmem:[#allocation2 + $0x1b8] sm:$0xff]  ;;  %v6130_v39 = vpack.c.b16 %v103_v31, %v103_v31  ;;  %v6132_v40 = vpack.c.b16 %v104_v32, %v104_v32 }
  0x18   :  { %375 = vmatpush.bf16.msra.mxu3 %v5542_v11  ;;  %v5537_v36 = vld [vmem:[#allocation2 + $0xc0] sm:$0xff]  ;;  %v5576_v38 = vld [vmem:[#allocation2 + $0x1f8] sm:$0xff]  ;;  %v5551_v41 = vld [vmem:[#allocation2 + $0x130] sm:$0xff] }
  0x19   :  { %208 = vmatpush.bf16.msra.mxu0 %v5517_v12  ;;  %v5559_v42 = vld [vmem:[#allocation2 + $0x170] sm:$0xff]  ;;  %v5550_v45 = vld [vmem:[#allocation2 + $0x128] sm:$0xff]  ;;  %v5549_v49 = vld [vmem:[#allocation2 + $0x120] sm:$0xff] }
  0x1a   :  { %221 = vmatpush.bf16.msra.mxu1 %v5525_v13  ;;  %v5567_v43 = vld [vmem:[#allocation2 + $0x1b0] sm:$0xff]  ;;  %v5558_v46 = vld [vmem:[#allocation2 + $0x168] sm:$0xff]  ;;  %v5557_v50 = vld [vmem:[#allocation2 + $0x160] sm:$0xff] }
  0x1b   :  { %363 = vmatpush.bf16.msra.mxu2 %v5533_v14  ;;  %v5575_v44 = vld [vmem:[#allocation2 + $0x1f0] sm:$0xff]  ;;  %v5566_v47 = vld [vmem:[#allocation2 + $0x1a8] sm:$0xff]  ;;  %v5565_v51 = vld [vmem:[#allocation2 + $0x1a0] sm:$0xff] }
  0x1c   :  { %376 = vmatpush.bf16.msra.mxu3 %v5541_v15  ;;  %v5574_v48 = vld [vmem:[#allocation2 + $0x1e8] sm:$0xff]  ;;  %v5573_v52 = vld [vmem:[#allocation2 + $0x1e0] sm:$0xff]  ;;  %v5548_v53 = vld [vmem:[#allocation2 + $0x118] sm:$0xff] }
  0x1d   :  { %209 = vmatpush.bf16.msra.mxu0 %v5516_v16  ;;  %v5556_v54 = vld [vmem:[#allocation2 + $0x158] sm:$0xff]  ;;  %v5547_v57 = vld [vmem:[#allocation2 + $0x110] sm:$0xff]  ;;  %v5546_v61 = vld [vmem:[#allocation2 + $0x108] sm:$0xff] }
  0x1e   :  { %222 = vmatpush.bf16.msra.mxu1 %v5524_v17  ;;  %v5564_v55 = vld [vmem:[#allocation2 + $0x198] sm:$0xff]  ;;  %v5555_v58 = vld [vmem:[#allocation2 + $0x150] sm:$0xff]  ;;  %v5554_v62 = vld [vmem:[#allocation2 + $0x148] sm:$0xff] }
  0x1f   :  { %364 = vmatpush.bf16.msra.mxu2 %v5532_v18  ;;  %v5572_v56 = vld [vmem:[#allocation2 + $0x1d8] sm:$0xff]  ;;  %v5563_v59 = vld [vmem:[#allocation2 + $0x190] sm:$0xff]  ;;  %v5562_v63 = vld [vmem:[#allocation2 + $0x188] sm:$0xff] }
  0x20   :  { %377 = vmatpush.bf16.msra.mxu3 %v5540_v19  ;;  %v5571_v60 = vld [vmem:[#allocation2 + $0x1d0] sm:$0xff]  ;;  %v5570_v0 = vld [vmem:[#allocation2 + $0x1c8] sm:$0xff]  ;;  %v5545_v1 = vld [vmem:[#allocation2 + $0x100] sm:$0xff] }
  0x21   :  { %210 = vmatpush.bf16.msra.mxu0 %v5515_v20  ;;  %v5553_v2 = vld [vmem:[#allocation2 + $0x140] sm:$0xff]  ;;  %v5584_v3 = vld [vmem:[#allocation2 + $0x238] sm:$0xff]  ;;  %v5583_v9 = vld [vmem:[#allocation2 + $0x230] sm:$0xff] }
  0x22   :  { %223 = vmatpush.bf16.msra.mxu1 %v5523_v21  ;;  %v5592_v4 = vld [vmem:[#allocation2 + $0x278] sm:$0xff]  ;;  %v5561_v5 = vld [vmem:[#allocation2 + $0x180] sm:$0xff]  ;;  %v5591_v10 = vld [vmem:[#allocation2 + $0x270] sm:$0xff] }
  0x23   :  { %365 = vmatpush.bf16.msra.mxu2 %v5531_v22  ;;  %v5569_v6 = vld [vmem:[#allocation2 + $0x1c0] sm:$0xff]  ;;  %v5600_v7 = vld [vmem:[#allocation2 + $0x2b8] sm:$0xff]  ;;  %v5599_v11 = vld [vmem:[#allocation2 + $0x2b0] sm:$0xff] }
  0x24   :  { %378 = vmatpush.bf16.msra.mxu3 %v5539_v23  ;;  %v5608_v8 = vld [vmem:[#allocation2 + $0x2f8] sm:$0xff]  ;;  %v5607_v12 = vld [vmem:[#allocation2 + $0x2f0] sm:$0xff]  ;;  %v5582_v13 = vld [vmem:[#allocation2 + $0x228] sm:$0xff] }
  0x25   :  { %211 = vmatpush.bf16.msra.mxu0 %v5514_v24  ;;  %v5590_v14 = vld [vmem:[#allocation2 + $0x268] sm:$0xff]  ;;  %v5581_v17 = vld [vmem:[#allocation2 + $0x220] sm:$0xff]  ;;  %v5580_v21 = vld [vmem:[#allocation2 + $0x218] sm:$0xff] }
  0x26   :  { %224 = vmatpush.bf16.msra.mxu1 %v5522_v25  ;;  %v5598_v15 = vld [vmem:[#allocation2 + $0x2a8] sm:$0xff]  ;;  %v5589_v18 = vld [vmem:[#allocation2 + $0x260] sm:$0xff]  ;;  %v5588_v22 = vld [vmem:[#allocation2 + $0x258] sm:$0xff] }
  0x27   :  { %366 = vmatpush.bf16.msra.mxu2 %v5530_v26  ;;  %v5606_v16 = vld [vmem:[#allocation2 + $0x2e8] sm:$0xff]  ;;  %v5597_v19 = vld [vmem:[#allocation2 + $0x2a0] sm:$0xff]  ;;  %v5596_v23 = vld [vmem:[#allocation2 + $0x298] sm:$0xff] }
  0x28   :  { %379 = vmatpush.bf16.msra.mxu3 %v5538_v27  ;;  %v5605_v20 = vld [vmem:[#allocation2 + $0x2e0] sm:$0xff]  ;;  %v5604_v24 = vld [vmem:[#allocation2 + $0x2d8] sm:$0xff]  ;;  %v5579_v25 = vld [vmem:[#allocation2 + $0x210] sm:$0xff] }
  0x29   :  { %212 = vmatpush.bf16.msra.mxu0 %v5513_v29  ;;  %v5587_v26 = vld [vmem:[#allocation2 + $0x250] sm:$0xff]  ;;  %v5578_v29 = vld [vmem:[#allocation2 + $0x208] sm:$0xff] }
  0x2a   :  { %225 = vmatpush.bf16.msra.mxu1 %v5521_v30  ;;  %v5595_v27 = vld [vmem:[#allocation2 + $0x290] sm:$0xff]  ;;  %v5586_v30 = vld [vmem:[#allocation2 + $0x248] sm:$0xff] }
  0x2b   :  { %367 = vmatpush.bf16.msra.mxu2 %v5529_v35  ;;  %v5603_v28 = vld [vmem:[#allocation2 + $0x2d0] sm:$0xff]  ;;  %v5594_v31 = vld [vmem:[#allocation2 + $0x288] sm:$0xff]  ;;  %v5616_v35 = vld [vmem:[#allocation2 + $0x338] sm:$0xff] }
  0x2c   :  { %380 = vmatpush.bf16.msra.mxu3 %v5537_v36  ;;  %213 = vmatmul.bf16.vlgmr.msra.gmra.mxu0 %v6130_v39  ;;  %v5602_v32 = vld [vmem:[#allocation2 + $0x2c8] sm:$0xff]  ;;  %v5624_v36 = vld [vmem:[#allocation2 + $0x378] sm:$0xff] }
  0x2d   :  { %515 = vmatpush.bf16.msrb.mxu0 %v5552_v33  ;;  %226 = vmatmul.bf16.vlgmr.msra.gmra.mxu1 %v6132_v40  ;;  %v5577_v33 = vld [vmem:[#allocation2 + $0x200] sm:$0xff] }
  0x2e   :  { %528 = vmatpush.bf16.msrb.mxu1 %v5560_v34  ;;  %368 = vmatmul.bf16.vlgmr.msra.gmra.mxu2 %v6130_v39  ;;  %v5585_v34 = vld [vmem:[#allocation2 + $0x240] sm:$0xff] }
  0x2f   :  { %670 = vmatpush.bf16.msrb.mxu2 %v5568_v37  ;;  %381 = vmatmul.bf16.vlgmr.msra.gmra.mxu3 %v6132_v40  ;;  %v5593_v37 = vld [vmem:[#allocation2 + $0x280] sm:$0xff] }
  0x30   :  { %683 = vmatpush.bf16.msrb.mxu3 %v5576_v38  ;;  %v5601_v38 = vld [vmem:[#allocation2 + $0x2c0] sm:$0xff] }
  0x31   :  { %516 = vmatpush.bf16.msrb.mxu0 %v5551_v41  ;;  %v5632_v41 = vld [vmem:[#allocation2 + $0x3b8] sm:$0xff] }
  0x32   :  { %529 = vmatpush.bf16.msrb.mxu1 %v5559_v42  ;;  %v5640_v42 = vld [vmem:[#allocation2 + $0x3f8] sm:$0xff] }
  0x33   :  { %671 = vmatpush.bf16.msrb.mxu2 %v5567_v43  ;;  %v5615_v43 = vld [vmem:[#allocation2 + $0x330] sm:$0xff] }
  0x34   :  { %684 = vmatpush.bf16.msrb.mxu3 %v5575_v44  ;;  %v5623_v44 = vld [vmem:[#allocation2 + $0x370] sm:$0xff] }
  0x35   :  { %517 = vmatpush.bf16.msrb.mxu0 %v5550_v45  ;;  %v5631_v45 = vld [vmem:[#allocation2 + $0x3b0] sm:$0xff] }
  0x36   :  { %530 = vmatpush.bf16.msrb.mxu1 %v5558_v46  ;;  %v5639_v46 = vld [vmem:[#allocation2 + $0x3f0] sm:$0xff] }
  0x37   :  { %672 = vmatpush.bf16.msrb.mxu2 %v5566_v47  ;;  %v5614_v47 = vld [vmem:[#allocation2 + $0x328] sm:$0xff] }
  0x38   :  { %685 = vmatpush.bf16.msrb.mxu3 %v5574_v48  ;;  %v5622_v48 = vld [vmem:[#allocation2 + $0x368] sm:$0xff] }
  0x39   :  { %518 = vmatpush.bf16.msrb.mxu0 %v5549_v49  ;;  %v5630_v49 = vld [vmem:[#allocation2 + $0x3a8] sm:$0xff] }
  0x3a   :  { %531 = vmatpush.bf16.msrb.mxu1 %v5557_v50  ;;  %v5638_v50 = vld [vmem:[#allocation2 + $0x3e8] sm:$0xff] }
  0x3b   :  { %673 = vmatpush.bf16.msrb.mxu2 %v5565_v51  ;;  %v5613_v51 = vld [vmem:[#allocation2 + $0x320] sm:$0xff] }
  0x3c   :  { %686 = vmatpush.bf16.msrb.mxu3 %v5573_v52  ;;  %v5621_v52 = vld [vmem:[#allocation2 + $0x360] sm:$0xff] }
  0x3d   :  { %519 = vmatpush.bf16.msrb.mxu0 %v5548_v53  ;;  %v5629_v53 = vld [vmem:[#allocation2 + $0x3a0] sm:$0xff] }
  0x3e   :  { %532 = vmatpush.bf16.msrb.mxu1 %v5556_v54  ;;  %v5637_v54 = vld [vmem:[#allocation2 + $0x3e0] sm:$0xff] }
  0x3f   :  { %674 = vmatpush.bf16.msrb.mxu2 %v5564_v55  ;;  %v5612_v55 = vld [vmem:[#allocation2 + $0x318] sm:$0xff] }
  0x40   :  { %687 = vmatpush.bf16.msrb.mxu3 %v5572_v56  ;;  %v5620_v56 = vld [vmem:[#allocation2 + $0x358] sm:$0xff] }
  0x41   :  { %520 = vmatpush.bf16.msrb.mxu0 %v5547_v57  ;;  %v5628_v57 = vld [vmem:[#allocation2 + $0x398] sm:$0xff] }
  0x42   :  { %533 = vmatpush.bf16.msrb.mxu1 %v5555_v58  ;;  %v5636_v58 = vld [vmem:[#allocation2 + $0x3d8] sm:$0xff] }
  0x43   :  { %675 = vmatpush.bf16.msrb.mxu2 %v5563_v59  ;;  %v5611_v59 = vld [vmem:[#allocation2 + $0x310] sm:$0xff] }
  0x44   :  { %688 = vmatpush.bf16.msrb.mxu3 %v5571_v60  ;;  %v5619_v60 = vld [vmem:[#allocation2 + $0x350] sm:$0xff] }
  0x45   :  { %521 = vmatpush.bf16.msrb.mxu0 %v5546_v61  ;;  %v5627_v61 = vld [vmem:[#allocation2 + $0x390] sm:$0xff] }
  0x46   :  { %534 = vmatpush.bf16.msrb.mxu1 %v5554_v62  ;;  %v5635_v62 = vld [vmem:[#allocation2 + $0x3d0] sm:$0xff] }
  0x47   :  { %676 = vmatpush.bf16.msrb.mxu2 %v5562_v63  ;;  %v5610_v63 = vld [vmem:[#allocation2 + $0x308] sm:$0xff] }
  0x48   :  { %689 = vmatpush.bf16.msrb.mxu3 %v5570_v0  ;;  %v5618_v0 = vld [vmem:[#allocation2 + $0x348] sm:$0xff] }
  0x49   :  { %522 = vmatpush.bf16.msrb.mxu0 %v5545_v1  ;;  %v5626_v1 = vld [vmem:[#allocation2 + $0x388] sm:$0xff] }
  0x4a   :  { %535 = vmatpush.bf16.msrb.mxu1 %v5553_v2  ;;  %v5634_v2 = vld [vmem:[#allocation2 + $0x3c8] sm:$0xff] }
  0x4b   :  { %677 = vmatpush.bf16.msrb.mxu2 %v5561_v5  ;;  %v5648_v5 = vld [vmem:[#allocation2 + $0x438] sm:$0xff] }
  0x4c   :  { %690 = vmatpush.bf16.msrb.mxu3 %v5569_v6  ;;  %523 = vmatmul.bf16.vlgmr.msrb.gmra.mxu0 %v6130_v39  ;;  %v5656_v6 = vld [vmem:[#allocation2 + $0x478] sm:$0xff] }
  0x4d   :  { %825 = vmatpush.bf16.msra.mxu0 %v5584_v3  ;;  %536 = vmatmul.bf16.vlgmr.msrb.gmra.mxu1 %v6132_v40  ;;  %v5609_v3 = vld [vmem:[#allocation2 + $0x300] sm:$0xff] }
  0x4e   :  { %838 = vmatpush.bf16.msra.mxu1 %v5592_v4  ;;  %678 = vmatmul.bf16.vlgmr.msrb.gmra.mxu2 %v6130_v39  ;;  %v5617_v4 = vld [vmem:[#allocation2 + $0x340] sm:$0xff] }
  0x4f   :  { %980 = vmatpush.bf16.msra.mxu2 %v5600_v7  ;;  %691 = vmatmul.bf16.vlgmr.msrb.gmra.mxu3 %v6132_v40  ;;  %v5625_v7 = vld [vmem:[#allocation2 + $0x380] sm:$0xff] }
  0x50   :  { %993 = vmatpush.bf16.msra.mxu3 %v5608_v8  ;;  %v5633_v8 = vld [vmem:[#allocation2 + $0x3c0] sm:$0xff] }
  0x51   :  { %826 = vmatpush.bf16.msra.mxu0 %v5583_v9  ;;  %v5647_v9 = vld [vmem:[#allocation2 + $0x430] sm:$0xff] }
  0x52   :  { %839 = vmatpush.bf16.msra.mxu1 %v5591_v10  ;;  %v5655_v10 = vld [vmem:[#allocation2 + $0x470] sm:$0xff] }
  0x53   :  { %981 = vmatpush.bf16.msra.mxu2 %v5599_v11  ;;  %v5646_v11 = vld [vmem:[#allocation2 + $0x428] sm:$0xff] }
  0x54   :  { %994 = vmatpush.bf16.msra.mxu3 %v5607_v12  ;;  %v5654_v12 = vld [vmem:[#allocation2 + $0x468] sm:$0xff] }
  0x55   :  { %827 = vmatpush.bf16.msra.mxu0 %v5582_v13  ;;  %v5645_v13 = vld [vmem:[#allocation2 + $0x420] sm:$0xff] }
  0x56   :  { %840 = vmatpush.bf16.msra.mxu1 %v5590_v14  ;;  %v5653_v14 = vld [vmem:[#allocation2 + $0x460] sm:$0xff] }
  0x57   :  { %982 = vmatpush.bf16.msra.mxu2 %v5598_v15  ;;  %v5644_v15 = vld [vmem:[#allocation2 + $0x418] sm:$0xff] }
  0x58   :  { %995 = vmatpush.bf16.msra.mxu3 %v5606_v16  ;;  %v5652_v16 = vld [vmem:[#allocation2 + $0x458] sm:$0xff] }
  0x59   :  { %828 = vmatpush.bf16.msra.mxu0 %v5581_v17  ;;  %v5643_v17 = vld [vmem:[#allocation2 + $0x410] sm:$0xff] }
  0x5a   :  { %841 = vmatpush.bf16.msra.mxu1 %v5589_v18  ;;  %v5651_v18 = vld [vmem:[#allocation2 + $0x450] sm:$0xff] }
  0x5b   :  { %983 = vmatpush.bf16.msra.mxu2 %v5597_v19  ;;  %v5642_v19 = vld [vmem:[#allocation2 + $0x408] sm:$0xff] }
  0x5c   :  { %996 = vmatpush.bf16.msra.mxu3 %v5605_v20  ;;  %v5650_v20 = vld [vmem:[#allocation2 + $0x448] sm:$0xff] }
  0x5d   :  { %829 = vmatpush.bf16.msra.mxu0 %v5580_v21  ;;  %v5641_v21 = vld [vmem:[#allocation2 + $0x400] sm:$0xff] }
  0x5e   :  { %842 = vmatpush.bf16.msra.mxu1 %v5588_v22  ;;  %v5649_v22 = vld [vmem:[#allocation2 + $0x440] sm:$0xff] }
  0x5f   :  { %984 = vmatpush.bf16.msra.mxu2 %v5596_v23 }
  0x60   :  { %997 = vmatpush.bf16.msra.mxu3 %v5604_v24 }
  0x61   :  { %830 = vmatpush.bf16.msra.mxu0 %v5579_v25 }
  0x62   :  { %843 = vmatpush.bf16.msra.mxu1 %v5587_v26 }
  0x63   :  { %985 = vmatpush.bf16.msra.mxu2 %v5595_v27 }
  0x64   :  { %998 = vmatpush.bf16.msra.mxu3 %v5603_v28 }
  0x65   :  { %831 = vmatpush.bf16.msra.mxu0 %v5578_v29 }
  0x66   :  { %844 = vmatpush.bf16.msra.mxu1 %v5586_v30 }
  0x67   :  { %986 = vmatpush.bf16.msra.mxu2 %v5594_v31 }
  0x68   :  { %999 = vmatpush.bf16.msra.mxu3 %v5602_v32 }
  0x69   :  { %832 = vmatpush.bf16.msra.mxu0 %v5577_v33 }
  0x6a   :  { %845 = vmatpush.bf16.msra.mxu1 %v5585_v34 }
  0x6b   :  { %987 = vmatpush.bf16.msra.mxu2 %v5593_v37 }
  0x6c   :  { %1000 = vmatpush.bf16.msra.mxu3 %v5601_v38  ;;  %833 = vmatmul.bf16.vlgmr.msra.gmra.mxu0 %v6130_v39 }
  0x6d   :  { %1135 = vmatpush.bf16.msrb.mxu0 %v5616_v35  ;;  %846 = vmatmul.bf16.vlgmr.msra.gmra.mxu1 %v6132_v40 }
  0x6e   :  { %1148 = vmatpush.bf16.msrb.mxu1 %v5624_v36  ;;  %988 = vmatmul.bf16.vlgmr.msra.gmra.mxu2 %v6130_v39 }
  0x6f   :  { %1290 = vmatpush.bf16.msrb.mxu2 %v5632_v41  ;;  %1001 = vmatmul.bf16.vlgmr.msra.gmra.mxu3 %v6132_v40 }
  0x70   :  { %1303 = vmatpush.bf16.msrb.mxu3 %v5640_v42 }
  0x71   :  { %1136 = vmatpush.bf16.msrb.mxu0 %v5615_v43 }
  0x72   :  { %1149 = vmatpush.bf16.msrb.mxu1 %v5623_v44 }
  0x73   :  { %1291 = vmatpush.bf16.msrb.mxu2 %v5631_v45 }
  0x74   :  { %1304 = vmatpush.bf16.msrb.mxu3 %v5639_v46 }
  0x75   :  { %1137 = vmatpush.bf16.msrb.mxu0 %v5614_v47 }
  0x76   :  { %1150 = vmatpush.bf16.msrb.mxu1 %v5622_v48 }
  0x77   :  { %1292 = vmatpush.bf16.msrb.mxu2 %v5630_v49 }
  0x78   :  { %1305 = vmatpush.bf16.msrb.mxu3 %v5638_v50 }
  0x79   :  { %1138 = vmatpush.bf16.msrb.mxu0 %v5613_v51 }
  0x7a   :  { %1151 = vmatpush.bf16.msrb.mxu1 %v5621_v52 }
  0x7b   :  { %1293 = vmatpush.bf16.msrb.mxu2 %v5629_v53 }
  0x7c   :  { %1306 = vmatpush.bf16.msrb.mxu3 %v5637_v54 }
  0x7d   :  { %1139 = vmatpush.bf16.msrb.mxu0 %v5612_v55 }
  0x7e   :  { %1152 = vmatpush.bf16.msrb.mxu1 %v5620_v56 }
  0x7f   :  { %1294 = vmatpush.bf16.msrb.mxu2 %v5628_v57 }
  0x80   :  { %1307 = vmatpush.bf16.msrb.mxu3 %v5636_v58 }
  0x81   :  { %1140 = vmatpush.bf16.msrb.mxu0 %v5611_v59 }
  0x82   :  { %1153 = vmatpush.bf16.msrb.mxu1 %v5619_v60 }
  0x83   :  { %1295 = vmatpush.bf16.msrb.mxu2 %v5627_v61 }
  0x84   :  { %1308 = vmatpush.bf16.msrb.mxu3 %v5635_v62  ;;  %v1478_v62 = vld [vmem:[%s6311_s3] sm:$0xff] }
  0x85   :  { %1141 = vmatpush.bf16.msrb.mxu0 %v5610_v63  ;;  %v6057_v63 = vmov 0  }
  0x86   :  { %1154 = vmatpush.bf16.msrb.mxu1 %v5618_v0  ;;  %5939 = vset.pattern.permute.xlu0 %v6057_v63 }
  0x87   :  { %1296 = vmatpush.bf16.msrb.mxu2 %v5626_v1  ;;  %5980 = vset.pattern.permute.xlu1 %v6057_v63 }
  0x88   :  { %1309 = vmatpush.bf16.msrb.mxu3 %v5634_v2  ;;  %1482 = vperm.xlu0 %5939, %v1478_v62   ;;  %v1479_v2 = vld [vmem:[%s6311_s3 + $0x8] sm:$0xff] }
  0x89   :  { %1142 = vmatpush.bf16.msrb.mxu0 %v5609_v3  ;;  %5981 = vset.pattern.permute.xlu2 %v6057_v63 }
  0x8a   :  { %1155 = vmatpush.bf16.msrb.mxu1 %v5617_v4 }
  0x8b   :  { %1297 = vmatpush.bf16.msrb.mxu2 %v5625_v7 }
  0x8c   :  { %1310 = vmatpush.bf16.msrb.mxu3 %v5633_v8  ;;  %1143 = vmatmul.bf16.vlgmr.msrb.gmra.mxu0 %v6130_v39 }
  0x8d   :  { %1445 = vmatpush.bf16.msra.mxu0 %v5648_v5  ;;  %1156 = vmatmul.bf16.vlgmr.msrb.gmra.mxu1 %v6132_v40 }
  0x8e   :  { %1458 = vmatpush.bf16.msra.mxu1 %v5656_v6  ;;  %1298 = vmatmul.bf16.vlgmr.msrb.gmra.mxu2 %v6130_v39 }
  0x8f   :  { %1311 = vmatmul.bf16.vlgmr.msrb.gmra.mxu3 %v6132_v40 }
  0x90   :  { %1487 = vperm.xlu0 %5939, %v1479_v2  }
  0x91   :  { %1446 = vmatpush.bf16.msra.mxu0 %v5647_v9 }
  0x92   :  { %1459 = vmatpush.bf16.msra.mxu1 %v5655_v10 }
  0x95   :  { %1447 = vmatpush.bf16.msra.mxu0 %v5646_v11 }
  0x96   :  { %1460 = vmatpush.bf16.msra.mxu1 %v5654_v12 }
  0x99   :  { %1448 = vmatpush.bf16.msra.mxu0 %v5645_v13  ;;  %v5657_v13 = vld [vmem:[%s6309_s1] sm:$0xff]  ;;  %s6058_s1 = smov 9  }
  0x9a   :  { %1461 = vmatpush.bf16.msra.mxu1 %v5653_v14 }
  0x9d   :  { %1449 = vmatpush.bf16.msra.mxu0 %v5644_v15 }
  0x9e   :  { %1462 = vmatpush.bf16.msra.mxu1 %v5652_v16 }
  0xa1   :  { %1450 = vmatpush.bf16.msra.mxu0 %v5643_v17 }
  0xa2   :  { %1463 = vmatpush.bf16.msra.mxu1 %v5651_v18 }
  0xa5   :  { %1451 = vmatpush.bf16.msra.mxu0 %v5642_v19 }
  0xa6   :  { %1464 = vmatpush.bf16.msra.mxu1 %v5650_v20  ;;  %v6167_v20 = vld [vmem:[%s6317_s9] ss:$0 sm:$0xff]  ;;  %s6063_s9 = smov 119  }
  0xa9   :  { %1452 = vmatpush.bf16.msra.mxu0 %v5641_v21  ;;  %v214_v23 = vpop.f32.mrf.mxu0 }
  0xaa   :  { %1465 = vmatpush.bf16.msra.mxu1 %v5649_v22  ;;  %v227_v24 = vpop.f32.mrf.mxu1 }
  0xab   :  { %v6152_v25 = vadd.f32 %v227_v24, %v214_v23 }
  0xac   :  { %1453 = vmatmul.bf16.vlgmr.msra.gmra.mxu0 %v6130_v39 }
  0xad   :  { %1466 = vmatmul.bf16.vlgmr.msra.gmra.mxu1 %v6132_v40 }
  0xb1   :  { %v216_v26 = vpop.f32.mrf.mxu0  ;;  %v369_v28 = vpop.f32.mrf.mxu2 }
  0xb2   :  { %v229_v27 = vpop.f32.mrf.mxu1  ;;  %v382_v29 = vpop.f32.mrf.mxu3 }
  0xb3   :  { %v383_v30 = vadd.f32 %v382_v29, %v369_v28  ;;  %v3801_v27 = vld [vmem:[%s6316_s8] sm:$0xff] }
  0xb5   :  { %v1471_v31 = vpack.c.bf16 %v383_v30, %v6152_v25 }
  0xb9   :  { %v371_v32 = vpop.f32.mrf.mxu2 }
  0xba   :  { %v384_v33 = vpop.f32.mrf.mxu3 }
  0xc9   :  { %v524_v34 = vpop.f32.mrf.mxu0 }
  0xca   :  { %v537_v35 = vpop.f32.mrf.mxu1 }
  0xcb   :  { %v538_v36 = vadd.f32 %v537_v35, %v524_v34  ;;  %v5658_v35 = vld [vmem:[%s6312_s4 + $0x4] sm:$0xf] }
  0xd1   :  { %v526_v37 = vpop.f32.mrf.mxu0  ;;  %v679_v38 = vpop.f32.mrf.mxu2 }
  0xd2   :  { %v539_v39 = vpop.f32.mrf.mxu1  ;;  %v692_v40 = vpop.f32.mrf.mxu3 }
  0xd3   :  { %v693_v41 = vadd.f32 %v692_v40, %v679_v38  ;;  %v4440_v38 = vld [vmem:[%s6312_s4 + $0x8] sm:$0xf0]  ;;  %v1567_v40 = vld [vmem:[%s6313_s5] sm:$0xff] }
  0xd5   :  { %v1472_v42 = vpack.c.bf16 %v693_v41, %v538_v36  ;;  %v1568_v41 = vld [vmem:[%s6313_s5 + $0x8] sm:$0xff] }
  0xd9   :  { %v681_v43 = vpop.f32.mrf.mxu2 }
  0xda   :  { %v694_v44 = vpop.f32.mrf.mxu3 }
  0xe9   :  { %v834_v45 = vpop.f32.mrf.mxu0 }
  0xea   :  { %v847_v46 = vpop.f32.mrf.mxu1 }
  0xeb   :  { %v848_v47 = vadd.f32 %v847_v46, %v834_v45 }
  0xf1   :  { %v836_v48 = vpop.f32.mrf.mxu0  ;;  %v989_v50 = vpop.f32.mrf.mxu2 }
  0xf2   :  { %v849_v49 = vpop.f32.mrf.mxu1  ;;  %v1002_v51 = vpop.f32.mrf.mxu3  ;;  %v4443_v48 = vor.u32 %v5658_v35, %v4440_v38 }
  0xf3   :  { %v1003_v8 = vadd.f32 %v1002_v51, %v989_v50 }
  0xf5   :  { %v1473_v12 = vpack.c.bf16 %v1003_v8, %v848_v47 }
  0xf9   :  { %v991_v52 = vpop.f32.mrf.mxu2 }
  0xfa   :  { %v1004_v53 = vpop.f32.mrf.mxu3  ;;  %v1483_v14 = vpop.permute.xlu0 %1482 }
 0x102   :  { %v1488_v17 = vpop.permute.xlu0 %1487 }
 0x109   :  { %v1144_v54 = vpop.f32.mrf.mxu0 }
 0x10a   :  { %v1157_v55 = vpop.f32.mrf.mxu1 }
 0x10b   :  { %v1158_v5 = vadd.f32 %v1157_v55, %v1144_v54 }
 0x111   :  { %v1146_v56 = vpop.f32.mrf.mxu0  ;;  %v1299_v58 = vpop.f32.mrf.mxu2 }
 0x112   :  { %v1159_v57 = vpop.f32.mrf.mxu1  ;;  %v1312_v59 = vpop.f32.mrf.mxu3 }
 0x113   :  { %v1313_v6 = vadd.f32 %v1312_v59, %v1299_v58 }
 0x115   :  { %v1474_v9 = vpack.c.bf16 %v1313_v6, %v1158_v5 }
 0x119   :  { %v1301_v60 = vpop.f32.mrf.mxu2 }
 0x11a   :  { %v1314_v61 = vpop.f32.mrf.mxu3 }
 0x129   :  { %v1454_v0 = vpop.f32.mrf.mxu0 }
 0x12a   :  { %v1467_v1 = vpop.f32.mrf.mxu1 }
 0x12b   :  { %v1468_v3 = vadd.f32 %v1467_v1, %v1454_v0  ;;  %v4438_v0 = vld [vmem:[%s6312_s4] sm:$0xf]  ;;  %v5659_v1 = vld [vmem:[%s6312_s4 + $0x4] sm:$0xf0] }
 0x12d   :  { %v1475_v4 = vpack.c.bf16 %v1468_v3, %v1468_v3  ;;  %v4439_v3 = vor.u32 %v5659_v1, %v4438_v0  ;;  %v4539_v0 = vld [vmem:[#allocation4 + $0xe8] sm:$0xf0]  ;;  %v4585_v1 = vld [vmem:[#allocation4 + $0x40] sm:$0xf] }
 0x12f   :  { %v1501_v7 = vsel %vm1499_vm0, %v1475_v4, 0 }
 0x130   :  { %1506 = vmatpush.bf16.msra.mxu2 %v1501_v7 }
 0x131   :  { %v1456_v10 = vpop.f32.mrf.mxu0 }
 0x132   :  { %v1469_v11 = vpop.f32.mrf.mxu1 }
 0x134   :  { %1507 = vmatpush.bf16.msra.mxu2 %v1474_v9 }
 0x138   :  { %1508 = vmatpush.bf16.msra.mxu2 %v1473_v12 }
 0x13c   :  { %1509 = vmatpush.bf16.msra.mxu2 %v1472_v42 }
 0x140   :  { %1510 = vmatpush.bf16.msra.mxu2 %v1471_v31 }
 0x143   :  { %4435 = vmatmul.msk.bf16.vlgmr.msra.gmra.mxu2 %vm1495_vm1, %v5657_v13 }
 0x1c6   :  { %v1512_v15 = vpop.f32.mrf.mxu2 }
 0x1c7   :  { %v1513_v16 = vadd.f32 %v1512_v15, %v1483_v14 }
 0x1c9   :  { %v1517_v19 = vmax.f32 %v1513_v16, 0.0 }
 0x1cb   :  { %v1522_v23 = vmul.f32 %v6167_v20, %v1517_v19 }
 0x1ce   :  { %v1514_v18 = vpop.f32.mrf.mxu2 }
 0x1cf   :  { %v1515_v21 = vadd.f32 %v1514_v18, %v1488_v17 }
 0x1d1   :  { %v1518_v22 = vmax.f32 %v1515_v21, 0.0 }
 0x1d3   :  { %v1523_v24 = vmul.f32 %v6167_v20, %v1518_v22 }
 0x1d5   :  { %v5960_v25 = vpack.i.bf16 %v1523_v24, %v1522_v23  ;;  %v1560_v26 = vpack.c.bf16 %v1523_v24, %v1522_v23 }
 0x1d7   :  { %5961 = vrot.lane.b32.xlu0 %v5960_v25, %s6058_s1  ;;  %5951 = vrot.lane.b32.xlu2 %v5960_v25, %s6059_s13 }
 0x1d8   :  { %5941 = vrot.lane.b32.xlu1 %v5960_v25, %s6060_s14 }
 0x1df   :  { %5976 = vrot.lane.b32.xlu0 %v5960_v25, %s6061_s15  ;;  %5956 = vrot.lane.b32.xlu2 %v5960_v25, %s6062_s16 }
 0x1e0   :  { %5946 = vrot.lane.b32.xlu1 %v5960_v25, %s6063_s9 }
 0x1e7   :  { %3804 = vperm.xlu0 %5939, %v3801_v27   ;;  %5971 = vrot.lane.b32.xlu2 %v5960_v25, %s6064_s19 }
 0x1e8   :  { %5966 = vrot.lane.b32.xlu1 %v5960_v25, %s6065_s20 }
 0x1ef   :  { %1576 = vperm.xlu2 %5981, %v1568_v41  }
 0x1f0   :  { %1571 = vperm.xlu1 %5980, %v1567_v40  }
 0x231   :  { %v5952_v33 = vpop.permute.xlu2 %5951 }
 0x232   :  { %v5954_v45 = vunpack.i.h.bf16 %v5952_v33  ;;  %v5953_v46 = vunpack.i.l.bf16 %v5952_v33 }
 0x234   :  { %v1561_v49 = vpack.c.bf16 %v5954_v45, %v5953_v46  ;;  %v4609_v45 = vld [vmem:[#allocation4 + $0x70] sm:$0xf]  ;;  %v5683_v46 = vld [vmem:[#allocation4 + $0x74] sm:$0xf0] }
 0x239   :  { %v5957_v50 = vpop.permute.xlu2 %5956 }
 0x23a   :  { %v5959_v51 = vunpack.i.h.bf16 %v5957_v50  ;;  %v5958_v52 = vunpack.i.l.bf16 %v5957_v50 }
 0x23c   :  { %v1559_v53 = vpack.c.bf16 %v5959_v51, %v5958_v52  ;;  %v4545_v51 = vld [vmem:[#allocation4 + $0xf0] sm:$0xf]  ;;  %v5699_v52 = vld [vmem:[#allocation4 + $0xf4] sm:$0xf0] }
 0x241   :  { %v5972_v60 = vpop.permute.xlu2 %5971 }
 0x242   :  { %v5974_v61 = vunpack.i.h.bf16 %v5972_v60  ;;  %v5973_v62 = vunpack.i.l.bf16 %v5972_v60  ;;  %v4537_v60 = vld [vmem:[#allocation4 + $0xe0] sm:$0xf] }
 0x244   :  { %v1556_v2 = vpack.c.bf16 %v5974_v61, %v5973_v62  ;;  %v5697_v61 = vld [vmem:[#allocation4 + $0xe4] sm:$0xf0]  ;;  %v5696_v62 = vld [vmem:[#allocation4 + $0xe4] sm:$0xf] }
 0x249   :  { %v5962_v28 = vpop.permute.xlu0 %5961  ;;  %v1577_v10 = vpop.permute.xlu2 %1576 }
 0x24a   :  { %v5942_v29 = vpop.permute.xlu1 %5941  ;;  %v5964_v54 = vunpack.i.h.bf16 %v5962_v28  ;;  %v5963_v55 = vunpack.i.l.bf16 %v5962_v28 }
 0x24b   :  { %v5944_v30 = vunpack.i.h.bf16 %v5942_v29  ;;  %v5943_v31 = vunpack.i.l.bf16 %v5942_v29 }
 0x24c   :  { %v1558_v57 = vpack.c.bf16 %v5964_v54, %v5963_v55  ;;  %v4546_v54 = vor.u32 %v5699_v52, %v4545_v51  ;;  %v4547_v55 = vld [vmem:[#allocation4 + $0xf8] sm:$0xf0]  ;;  %v4667_v51 = vld [vmem:[#allocation4 + $0x168] sm:$0xf0] }
 0x24d   :  { %v1563_v32 = vpack.c.bf16 %v5944_v30, %v5943_v31 }
 0x24e   :  { %1905 = vmatpush.bf16.msrb.mxu1 %v4546_v54  ;;  %v5685_v54 = vld [vmem:[#allocation4 + $0x84] sm:$0xf0] }
 0x24f   :  { %1592 = vmatpush.bf16.msra.mxu3 %v1563_v32 }
 0x251   :  { %v5977_v34 = vpop.permute.xlu0 %5976 }
 0x252   :  { %v5979_v36 = vunpack.i.h.bf16 %v5977_v34  ;;  %v5978_v37 = vunpack.i.l.bf16 %v5977_v34  ;;  %v5947_v39 = vpop.permute.xlu1 %5946 }
 0x253   :  { %v5949_v42 = vunpack.i.h.bf16 %v5947_v39  ;;  %v5948_v43 = vunpack.i.l.bf16 %v5947_v39 }
 0x254   :  { %v1564_v44 = vpack.c.bf16 %v5979_v36, %v5978_v37 }
 0x255   :  { %v1562_v47 = vpack.c.bf16 %v5949_v42, %v5948_v43 }
 0x256   :  { %1613 = vmatpush.bf16.msrb.mxu0 %v1564_v44  ;;  %v5660_v44 = vld [vmem:[%s6314_s6] sm:$0xff] }
 0x257   :  { %1593 = vmatpush.bf16.msra.mxu3 %v1562_v47  ;;  %v4601_v47 = vld [vmem:[#allocation4 + $0x60] sm:$0xf] }
 0x259   :  { %4444 = vmatmul.msk.bf16.vlgmr.msrb.gmra.mxu0 %vm1588_vm2, %v4443_v48  ;;  %v4610_v48 = vor.u32 %v5683_v46, %v4609_v45  ;;  %v5687_v45 = vld [vmem:[#allocation4 + $0x94] sm:$0xf0] }
 0x25a   :  { %v5967_v56 = vpop.permute.xlu1 %5966 }
 0x25b   :  { %1594 = vmatpush.bf16.msra.mxu3 %v1561_v49  ;;  %v5969_v58 = vunpack.i.h.bf16 %v5967_v56  ;;  %v5968_v59 = vunpack.i.l.bf16 %v5967_v56  ;;  %v5681_v49 = vld [vmem:[#allocation4 + $0x64] sm:$0xf0]  ;;  %2011 = vmatpush.bf16.msrb.mxu2 %v4610_v48  ;;  %v4593_v56 = vld [vmem:[#allocation4 + $0x50] sm:$0xf]  ;;  %v4499_v48 = vld [vmem:[#allocation4 + $0x98] sm:$0xf0] }
 0x25c   :  { %v4602_v50 = vor.u32 %v5681_v49, %v4601_v47  ;;  %v5686_v47 = vld [vmem:[#allocation4 + $0x94] sm:$0xf] }
 0x25d   :  { %v1557_v63 = vpack.c.bf16 %v5969_v58, %v5968_v59  ;;  %v4502_v52 = vor.u32 %v5686_v47, %v4499_v48  ;;  %v5705_v48 = vld [vmem:[#allocation4 + $0x124] sm:$0xf0] }
 0x25f   :  { %1595 = vmatpush.bf16.msra.mxu3 %v1560_v26  ;;  %2012 = vmatpush.bf16.msrb.mxu2 %v4602_v50 }
 0x262   :  { %v1572_v4 = vpop.permute.xlu1 %1571 }
 0x263   :  { %1596 = vmatpush.bf16.msra.mxu3 %v1559_v53  ;;  %v5698_v53 = vld [vmem:[#allocation4 + $0xf4] sm:$0xf] }
 0x264   :  { %v4550_v58 = vor.u32 %v5698_v53, %v4547_v55  ;;  %v4489_v53 = vld [vmem:[#allocation4 + $0x80] sm:$0xf]  ;;  %v5684_v55 = vld [vmem:[#allocation4 + $0x84] sm:$0xf] }
 0x267   :  { %1597 = vmatpush.bf16.msra.mxu3 %v1558_v57  ;;  %v5679_v57 = vld [vmem:[#allocation4 + $0x54] sm:$0xf0] }
 0x268   :  { %v4594_v59 = vor.u32 %v5679_v57, %v4593_v56  ;;  %v4491_v56 = vld [vmem:[#allocation4 + $0x88] sm:$0xf0]  ;;  %v5682_v57 = vld [vmem:[#allocation4 + $0x74] sm:$0xf] }
 0x26a   :  { %2013 = vmatpush.bf16.msrb.mxu2 %v4594_v59  ;;  %v4611_v59 = vld [vmem:[#allocation4 + $0x78] sm:$0xf0] }
 0x26b   :  { %1598 = vmatpush.bf16.msra.mxu3 %v1557_v63  ;;  %v4538_v63 = vor.u32 %v5697_v61, %v4537_v60  ;;  %v4673_v60 = vld [vmem:[#allocation4 + $0x170] sm:$0xf]  ;;  %v5715_v61 = vld [vmem:[#allocation4 + $0x174] sm:$0xf0] }
 0x26d   :  { %1906 = vmatpush.bf16.msrb.mxu1 %v4538_v63  ;;  %v5710_v63 = vld [vmem:[#allocation4 + $0x154] sm:$0xf] }
 0x26f   :  { %1599 = vmatpush.bf16.msra.mxu3 %v1556_v2  ;;  %v5677_v2 = vld [vmem:[#allocation4 + $0x44] sm:$0xf0] }
 0x272   :  { %1600 = vmatmul.bf16.vlgmr.msra.gmra.mxu3 %v4439_v3  ;;  %v4542_v3 = vor.u32 %v5696_v62, %v4539_v0  ;;  %v4490_v62 = vor.u32 %v5685_v54, %v4489_v53  ;;  %v4659_v0 = vld [vmem:[#allocation4 + $0x158] sm:$0xf0]  ;;  %v4625_v54 = vld [vmem:[#allocation4 + $0x110] sm:$0xf] }
 0x273   :  { %1918 = vmatpush.bf16.msrb.mxu3 %v4550_v58  ;;  %v4563_v53 = vld [vmem:[#allocation4 + $0x18] sm:$0xf0] }
 0x277   :  { %1919 = vmatpush.bf16.msrb.mxu3 %v4542_v3  ;;  %v4614_v3 = vor.u32 %v5682_v57, %v4611_v59  ;;  %v5668_v59 = vld [vmem:[#allocation4 + $0x4] sm:$0xf] }
 0x2d6   :  { %v1615_v5 = vpop.f32.mrf.mxu0 }
 0x2de   :  { %v1617_v13 = vpop.f32.mrf.mxu0 }
 0x2f5   :  { %v1601_v6 = vpop.f32.mrf.mxu3 }
 0x2f6   :  { %v1602_v7 = vadd.f32 %v1601_v6, %v1572_v4  ;;  %v4586_v4 = vor.u32 %v5677_v2, %v4585_v1  ;;  %v5695_v6 = vld [vmem:[#allocation4 + $0xd4] sm:$0xf0]  ;;  %v4494_v2 = vor.u32 %v5684_v55, %v4491_v56 }
 0x2f7   :  { %v5663_v1 = vld [vmem:[%s6314_s6 + $0x18] sm:$0xff] }
 0x2f8   :  { %v1616_v8 = vadd.f32 %v1615_v5, %v1602_v7  ;;  %v4529_v5 = vld [vmem:[#allocation4 + $0xd0] sm:$0xf]  ;;  %v5694_v7 = vld [vmem:[#allocation4 + $0xd4] sm:$0xf]  ;;  %2014 = vmatpush.bf16.msrb.mxu2 %v4586_v4  ;;  %v4674_v4 = vor.u32 %v5715_v61, %v4673_v60  ;;  %v5703_v56 = vld [vmem:[#allocation4 + $0x114] sm:$0xf0] }
 0x2f9   :  { %v4626_v57 = vor.u32 %v5703_v56, %v4625_v54  ;;  %v4555_v60 = vld [vmem:[#allocation4 + $0x8] sm:$0xf0] }
 0x2fa   :  { %v4445_v9 = vmul.f32 -1.442695, %v1616_v8  ;;  %v4531_v8 = vld [vmem:[#allocation4 + $0xd8] sm:$0xf0]  ;;  %v4558_v61 = vor.u32 %v5668_v59, %v4555_v60  ;;  %v4753_v60 = vld [vmem:[#allocation4 + $0x210] sm:$0xf] }
 0x2fb   :  { %v4707_v59 = vld [vmem:[#allocation4 + $0x1b8] sm:$0xf0] }
 0x2fc   :  { %5983 = vpow2.f32 %v4445_v9  ;;  %v4577_v9 = vld [vmem:[#allocation4 + $0x30] sm:$0xf] }
 0x2fd   :  { %v1603_v11 = vpop.f32.mrf.mxu3 }
 0x2fe   :  { %v1604_v12 = vadd.f32 %v1603_v11, %v1577_v10  ;;  %v5675_v10 = vld [vmem:[#allocation4 + $0x34] sm:$0xf0]  ;;  %v4530_v11 = vor.u32 %v5695_v6, %v4529_v5  ;;  %v5680_v5 = vld [vmem:[#allocation4 + $0x64] sm:$0xf]  ;;  %v4662_v6 = vor.u32 %v5710_v63, %v4659_v0  ;;  %v5701_v63 = vld [vmem:[#allocation4 + $0x104] sm:$0xf0] }
 0x300   :  { %v1618_v14 = vadd.f32 %v1617_v13, %v1604_v12  ;;  %v4534_v12 = vor.u32 %v5694_v7, %v4531_v8  ;;  %v4578_v13 = vor.u32 %v5675_v10, %v4577_v9  ;;  %1907 = vmatpush.bf16.msrb.mxu1 %v4530_v11  ;;  %v4603_v7 = vld [vmem:[#allocation4 + $0x68] sm:$0xf0]  ;;  %v4665_v8 = vld [vmem:[#allocation4 + $0x160] sm:$0xf]  ;;  %v5713_v9 = vld [vmem:[#allocation4 + $0x164] sm:$0xf0] }
 0x301   :  { %v5708_v10 = vld [vmem:[#allocation4 + $0x144] sm:$0xf]  ;;  %v4651_v11 = vld [vmem:[#allocation4 + $0x148] sm:$0xf0] }
 0x302   :  { %v5984_v15 = vpop.eup %5983  ;;  %v4446_v16 = vmul.f32 -1.442695, %v1618_v14  ;;  %v4521_v14 = vld [vmem:[#allocation4 + $0xc0] sm:$0xf]  ;;  %1920 = vmatpush.bf16.msrb.mxu3 %v4534_v12  ;;  %2015 = vmatpush.bf16.msrb.mxu2 %v4578_v13  ;;  %v4606_v12 = vor.u32 %v5680_v5, %v4603_v7  ;;  %v4666_v13 = vor.u32 %v5713_v9, %v4665_v8 }
 0x303   :  { %v1626_v17 = vadd.f32 1.0, %v5984_v15  ;;  %v5693_v15 = vld [vmem:[#allocation4 + $0xc4] sm:$0xf0]  ;;  %v4793_v9 = vld [vmem:[#allocation4 + $0x260] sm:$0xf] }
 0x304   :  { %5985 = vpow2.f32 %v4446_v16  ;;  %v5692_v16 = vld [vmem:[#allocation4 + $0xc4] sm:$0xf] }
 0x305   :  { %5987 = vrcp.f32 %v1626_v17  ;;  %v1639_v28 = vand.u32 2147483648, %v1626_v17  ;;  %vm1633_vm4 = vweird.f32 %v1626_v17  ;;  %v1637_v30 = vand.u32 2147483647, %v1626_v17 }
 0x307   :  { %v1640_v35 = vor.u32 1.1754944e-38, %v1639_v28  ;;  %vm1638_vm7 = vcmp.eq.f32.partialorder %v1637_v30, 8.507059e+37  ;;  %v4515_v28 = vld [vmem:[#allocation4 + $0xb8] sm:$0xf0]  ;;  %v5671_v30 = vld [vmem:[#allocation4 + $0x14] sm:$0xf0] }
 0x30a   :  { %v5986_v18 = vpop.eup %5985 }
 0x30b   :  { %v5988_v19 = vpop.eup %5987  ;;  %v1627_v21 = vadd.f32 1.0, %v5986_v18  ;;  %v4569_v18 = vld [vmem:[#allocation4 + $0x20] sm:$0xf] }
 0x30c   :  { %v1629_v22 = vmul.f32 %v5988_v19, %v1626_v17  ;;  %vm1634_vm3 = vweird.f32 %v5988_v19  ;;  %v4523_v17 = vld [vmem:[#allocation4 + $0xc8] sm:$0xf0] }
 0x30d   :  { %5989 = vrcp.f32 %v1627_v21  ;;  %vm1635_vm5 = vmor %vm1633_vm4, %vm1634_vm3  ;;  %v1654_v31 = vand.u32 2147483648, %v1627_v21  ;;  %v1652_v34 = vand.u32 2147483647, %v1627_v21  ;;  %vm1648_vm8 = vweird.f32 %v1627_v21 }
 0x30e   :  { %v1630_v23 = vsub.f32 1.0, %v1629_v22  ;;  %v5662_v22 = vld [vmem:[%s6314_s6 + $0x10] sm:$0xff] }
 0x30f   :  { %v1655_v39 = vor.u32 1.1754944e-38, %v1654_v31  ;;  %vm1653_vm10 = vcmp.eq.f32.partialorder %v1652_v34, 8.507059e+37  ;;  %v5689_v34 = vld [vmem:[#allocation4 + $0xa4] sm:$0xf0] }
 0x310   :  { %v1631_v24 = vmul.f32 %v5988_v19, %v1630_v23  ;;  %v4526_v23 = vor.u32 %v5692_v16, %v4523_v17  ;;  %v4595_v16 = vld [vmem:[#allocation4 + $0x58] sm:$0xf0]  ;;  %v4657_v17 = vld [vmem:[#allocation4 + $0x150] sm:$0xf] }
 0x312   :  { %v1632_v27 = vadd.f32 %v5988_v19, %v1631_v24  ;;  %v4513_v24 = vld [vmem:[#allocation4 + $0xb0] sm:$0xf]  ;;  %1921 = vmatpush.bf16.msrb.mxu3 %v4526_v23 }
 0x313   :  { %v5990_v25 = vpop.eup %5989 }
 0x314   :  { %v1644_v26 = vmul.f32 %v5990_v25, %v1627_v21  ;;  %v1636_v32 = vsel %vm1635_vm5, %v5988_v19, %v1632_v27  ;;  %vm1649_vm6 = vweird.f32 %v5990_v25  ;;  %v5673_v19 = vld [vmem:[#allocation4 + $0x24] sm:$0xf0]  ;;  %v4522_v21 = vor.u32 %v5693_v15, %v4521_v14  ;;  %v5690_v27 = vld [vmem:[#allocation4 + $0xb4] sm:$0xf] }
 0x315   :  { %v1641_v37 = vsel %vm1638_vm7, %v1640_v35, %v1636_v32  ;;  %vm1650_vm9 = vmor %vm1648_vm8, %vm1649_vm6  ;;  %v4518_v32 = vor.u32 %v5690_v27, %v4515_v28  ;;  %v5678_v14 = vld [vmem:[#allocation4 + $0x54] sm:$0xf]  ;;  %v4654_v15 = vor.u32 %v5708_v10, %v4651_v11  ;;  %v4649_v27 = vld [vmem:[#allocation4 + $0x140] sm:$0xf] }
 0x316   :  { %v1645_v29 = vsub.f32 1.0, %v1644_v26  ;;  %v1658_v41 = vmul.f32 %v6167_v20, %v1641_v37  ;;  %v4570_v26 = vor.u32 %v5673_v19, %v4569_v18  ;;  %1908 = vmatpush.bf16.msrb.mxu1 %v4522_v21  ;;  %v4507_v37 = vld [vmem:[#allocation4 + $0xa8] sm:$0xf0]  ;;  %v5711_v18 = vld [vmem:[#allocation4 + $0x154] sm:$0xf0] }
 0x317   :  { %1922 = vmatpush.bf16.msrb.mxu3 %v4518_v32  ;;  %v5706_v19 = vld [vmem:[#allocation4 + $0x134] sm:$0xf]  ;;  %v4643_v21 = vld [vmem:[#allocation4 + $0x138] sm:$0xf0]  ;;  %v4658_v23 = vor.u32 %v5711_v18, %v4657_v17  ;;  %v5709_v28 = vld [vmem:[#allocation4 + $0x144] sm:$0xf0] }
 0x318   :  { %v1646_v33 = vmul.f32 %v5990_v25, %v1645_v29  ;;  %v4561_v29 = vld [vmem:[#allocation4 + $0x10] sm:$0xf]  ;;  %2016 = vmatpush.bf16.msrb.mxu2 %v4570_v26  ;;  %v4587_v26 = vld [vmem:[#allocation4 + $0x48] sm:$0xf0]  ;;  %v4650_v32 = vor.u32 %v5709_v28, %v4649_v27  ;;  %v5745_v10 = vld [vmem:[#allocation4 + $0x264] sm:$0xf0] }
 0x319   :  { %v4562_v35 = vor.u32 %v5671_v30, %v4561_v29  ;;  %v5704_v29 = vld [vmem:[#allocation4 + $0x124] sm:$0xf]  ;;  %v4635_v30 = vld [vmem:[#allocation4 + $0x128] sm:$0xf0]  ;;  %v4794_v11 = vor.u32 %v5745_v10, %v4793_v9  ;;  %v5743_v17 = vld [vmem:[#allocation4 + $0x254] sm:$0xf0] }
 0x31a   :  { %v1647_v36 = vadd.f32 %v5990_v25, %v1646_v33  ;;  %v4505_v33 = vld [vmem:[#allocation4 + $0xa0] sm:$0xf]  ;;  %v5666_v18 = vld [vmem:[%s6314_s6 + $0x30] sm:$0xff]  ;;  %v5728_v27 = vld [vmem:[#allocation4 + $0x1e4] sm:$0xf] }
 0x31b   :  { %v4731_v28 = vld [vmem:[#allocation4 + $0x1e8] sm:$0xf0]  ;;  %v4745_v10 = vld [vmem:[#allocation4 + $0x200] sm:$0xf] }
 0x31c   :  { %v1651_v38 = vsel %vm1650_vm9, %v5990_v25, %v1647_v36  ;;  %v5691_v25 = vld [vmem:[#allocation4 + $0xb4] sm:$0xf0]  ;;  %v5688_v36 = vld [vmem:[#allocation4 + $0xa4] sm:$0xf]  ;;  %2017 = vmatpush.bf16.msrb.mxu2 %v4562_v35  ;;  %v4579_v35 = vld [vmem:[#allocation4 + $0x38] sm:$0xf0] }
 0x31d   :  { %v1656_v40 = vsel %vm1653_vm10, %v1655_v39, %v1651_v38  ;;  %v4514_v31 = vor.u32 %v5691_v25, %v4513_v24  ;;  %v4553_v39 = vld [vmem:[#allocation4] sm:$0xf]  ;;  %v5669_v38 = vld [vmem:[#allocation4 + $0x4] sm:$0xf0]  ;;  %v5676_v24 = vld [vmem:[#allocation4 + $0x44] sm:$0xf]  ;;  %v4646_v25 = vor.u32 %v5706_v19, %v4643_v21 }
 0x31e   :  { %v1659_v42 = vmul.f32 %v6167_v20, %v1656_v40  ;;  %v5661_v20 = vld [vmem:[%s6314_s6 + $0x8] sm:$0xff]  ;;  %v4506_v40 = vor.u32 %v5689_v34, %v4505_v33  ;;  %v4554_v46 = vor.u32 %v5669_v38, %v4553_v39  ;;  %v5674_v33 = vld [vmem:[#allocation4 + $0x34] sm:$0xf]  ;;  %v4638_v34 = vor.u32 %v5704_v29, %v4635_v30  ;;  %v4627_v38 = vld [vmem:[#allocation4 + $0x118] sm:$0xf0] }
 0x31f   :  { %1909 = vmatpush.bf16.msrb.mxu1 %v4514_v31  ;;  %v4590_v31 = vor.u32 %v5676_v24, %v4587_v26  ;;  %v5702_v39 = vld [vmem:[#allocation4 + $0x114] sm:$0xf]  ;;  %v5729_v26 = vld [vmem:[#allocation4 + $0x1e4] sm:$0xf0]  ;;  %v4777_v29 = vld [vmem:[#allocation4 + $0x240] sm:$0xf] }
 0x320   :  { %v1676_v43 = vpack.c.bf16 %v1659_v42, %v1658_v41  ;;  %v5714_v41 = vld [vmem:[#allocation4 + $0x174] sm:$0xf]  ;;  %v4675_v42 = vld [vmem:[#allocation4 + $0x178] sm:$0xf0]  ;;  %2018 = vmatpush.bf16.msrb.mxu2 %v4554_v46  ;;  %v4633_v46 = vld [vmem:[#allocation4 + $0x120] sm:$0xf] }
 0x321   :  { %v4678_v49 = vor.u32 %v5714_v41, %v4675_v42  ;;  %v4582_v41 = vor.u32 %v5674_v33, %v4579_v35  ;;  %v5741_v30 = vld [vmem:[#allocation4 + $0x244] sm:$0xf0]  ;;  %v4721_v33 = vld [vmem:[#allocation4 + $0x1d0] sm:$0xf] }
 0x322   :  { %1748 = vmatpush.bf16.msra.mxu0 %v1676_v43  ;;  %v4510_v43 = vor.u32 %v5688_v36, %v4507_v37  ;;  %v4641_v36 = vld [vmem:[#allocation4 + $0x130] sm:$0xf]  ;;  %v5707_v37 = vld [vmem:[#allocation4 + $0x134] sm:$0xf0]  ;;  %v4778_v35 = vor.u32 %v5741_v30, %v4777_v29 }
 0x323   :  { %1910 = vmatpush.bf16.msrb.mxu1 %v4506_v40  ;;  %v5664_v40 = vld [vmem:[%s6314_s6 + $0x20] sm:$0xff]  ;;  %v4642_v42 = vor.u32 %v5707_v37, %v4641_v36  ;;  %v5726_v36 = vld [vmem:[#allocation4 + $0x1d4] sm:$0xf]  ;;  %v4723_v37 = vld [vmem:[#allocation4 + $0x1d8] sm:$0xf0] }
 0x324   :  { %1923 = vmatpush.bf16.msrb.mxu3 %v4510_v43  ;;  %2148 = vmatpush.bf16.msra.mxu2 %v4678_v49  ;;  %v4630_v43 = vor.u32 %v5702_v39, %v4627_v38  ;;  %v5700_v49 = vld [vmem:[#allocation4 + $0x104] sm:$0xf]  ;;  %v4769_v39 = vld [vmem:[#allocation4 + $0x230] sm:$0xf]  ;;  %v5739_v38 = vld [vmem:[#allocation4 + $0x234] sm:$0xf0] }
 0x325   :  { %4479 = vmatmul.msk.bf16.vlgmr.msra.gmra.mxu0 %vm1588_vm2, %v5660_v44  ;;  %v4497_v44 = vld [vmem:[#allocation4 + $0x90] sm:$0xf] }
 0x326   :  { %v4498_v50 = vor.u32 %v5687_v45, %v4497_v44  ;;  %v5672_v44 = vld [vmem:[#allocation4 + $0x24] sm:$0xf]  ;;  %v4571_v45 = vld [vmem:[#allocation4 + $0x28] sm:$0xf0] }
 0x327   :  { %v4574_v47 = vor.u32 %v5672_v44, %v4571_v45  ;;  %v4726_v44 = vor.u32 %v5726_v36, %v4723_v37  ;;  %v4683_v36 = vld [vmem:[#allocation4 + $0x188] sm:$0xf0]  ;;  %v5746_v37 = vld [vmem:[#allocation4 + $0x274] sm:$0xf] }
 0x328   :  { %1911 = vmatpush.bf16.msrb.mxu1 %v4498_v50  ;;  %1924 = vmatpush.bf16.msrb.mxu3 %v4502_v52  ;;  %v4619_v50 = vld [vmem:[#allocation4 + $0x108] sm:$0xf0]  ;;  %v5670_v52 = vld [vmem:[#allocation4 + $0x14] sm:$0xf] }
 0x329   :  { %v4566_v55 = vor.u32 %v5670_v52, %v4563_v53  ;;  %v5737_v52 = vld [vmem:[#allocation4 + $0x224] sm:$0xf0] }
 0x32c   :  { %1912 = vmatpush.bf16.msrb.mxu1 %v4490_v62  ;;  %1925 = vmatpush.bf16.msrb.mxu3 %v4494_v2  ;;  %v4617_v62 = vld [vmem:[#allocation4 + $0x100] sm:$0xf]  ;;  %v5747_v2 = vld [vmem:[#allocation4 + $0x274] sm:$0xf0] }
 0x32d   :  { %v4618_v0 = vor.u32 %v5701_v63, %v4617_v62 }
 0x330   :  { %2024 = vmatpush.bf16.msra.mxu1 %v4614_v3  ;;  %2135 = vmatpush.bf16.msra.mxu3 %v4674_v4  ;;  %v4929_v3 = vld [vmem:[#allocation4 + $0x370] sm:$0xf]  ;;  %v5779_v4 = vld [vmem:[#allocation4 + $0x374] sm:$0xf0] }
 0x331   :  { %v4930_v5 = vor.u32 %v5779_v4, %v4929_v3  ;;  %v5775_v3 = vld [vmem:[#allocation4 + $0x354] sm:$0xf0] }
 0x333   :  { %2639 = vmatpush.bf16.msrb.mxu0 %v4930_v5  ;;  %v5721_v5 = vld [vmem:[#allocation4 + $0x1a4] sm:$0xf0] }
 0x334   :  { %2025 = vmatpush.bf16.msra.mxu1 %v4606_v12  ;;  %2136 = vmatpush.bf16.msra.mxu3 %v4666_v13  ;;  %v4737_v12 = vld [vmem:[#allocation4 + $0x1f0] sm:$0xf]  ;;  %v5731_v13 = vld [vmem:[#allocation4 + $0x1f4] sm:$0xf0] }
 0x335   :  { %4480 = vmatmul.msk.bf16.gmra.mxu0 %vm1588_vm2, %v5661_v20  ;;  %v5712_v20 = vld [vmem:[#allocation4 + $0x164] sm:$0xf]  ;;  %v4738_v21 = vor.u32 %v5731_v13, %v4737_v12  ;;  %v5762_v12 = vld [vmem:[#allocation4 + $0x2f4] sm:$0xf]  ;;  %v4867_v13 = vld [vmem:[#allocation4 + $0x2f8] sm:$0xf0] }
 0x336   :  { %v4670_v58 = vor.u32 %v5712_v20, %v4667_v51  ;;  %v4634_v20 = vor.u32 %v5705_v48, %v4633_v46  ;;  %v4622_v51 = vor.u32 %v5700_v49, %v4619_v50  ;;  %v4713_v46 = vld [vmem:[#allocation4 + $0x1c0] sm:$0xf]  ;;  %v5725_v49 = vld [vmem:[#allocation4 + $0x1c4] sm:$0xf0]  ;;  %v5724_v50 = vld [vmem:[#allocation4 + $0x1c4] sm:$0xf] }
 0x337   :  { %v4714_v53 = vor.u32 %v5725_v49, %v4713_v46  ;;  %v5769_v49 = vld [vmem:[#allocation4 + $0x324] sm:$0xf0] }
 0x338   :  { %2149 = vmatpush.bf16.msra.mxu2 %v4670_v58  ;;  %2137 = vmatpush.bf16.msra.mxu3 %v4658_v23  ;;  %v5665_v58 = vld [vmem:[%s6314_s6 + $0x28] sm:$0xff]  ;;  %v4729_v23 = vld [vmem:[#allocation4 + $0x1e0] sm:$0xf] }
 0x33c   :  { %2150 = vmatpush.bf16.msra.mxu2 %v4662_v6  ;;  %2138 = vmatpush.bf16.msra.mxu3 %v4650_v32  ;;  %v4734_v32 = vor.u32 %v5728_v27, %v4731_v28  ;;  %v4681_v27 = vld [vmem:[#allocation4 + $0x180] sm:$0xf]  ;;  %v5667_v28 = vld [vmem:[%s6314_s6 + $0x38] sm:$0xff] }
 0x340   :  { %2151 = vmatpush.bf16.msra.mxu2 %v4654_v15  ;;  %2139 = vmatpush.bf16.msra.mxu3 %v4642_v42  ;;  %v4739_v15 = vld [vmem:[#allocation4 + $0x1f8] sm:$0xf0] }
 0x344   :  { %2152 = vmatpush.bf16.msra.mxu2 %v4646_v25  ;;  %2140 = vmatpush.bf16.msra.mxu3 %v4634_v20  ;;  %v4715_v20 = vld [vmem:[#allocation4 + $0x1c8] sm:$0xf0] }
 0x345   :  { %4481 = vmatmul.msk.bf16.gmra.mxu0 %vm1588_vm2, %v5662_v22  ;;  %v4598_v22 = vor.u32 %v5678_v14, %v4595_v16  ;;  %v5730_v14 = vld [vmem:[#allocation4 + $0x1f4] sm:$0xf]  ;;  %v4785_v16 = vld [vmem:[#allocation4 + $0x250] sm:$0xf]  ;;  %v4718_v54 = vor.u32 %v5724_v50, %v4715_v20 }
 0x346   :  { %v4786_v25 = vor.u32 %v5743_v17, %v4785_v16  ;;  %v4689_v16 = vld [vmem:[#allocation4 + $0x190] sm:$0xf]  ;;  %v4905_v17 = vld [vmem:[#allocation4 + $0x340] sm:$0xf] }
 0x347   :  { %2026 = vmatpush.bf16.msra.mxu1 %v4598_v22  ;;  %v4742_v22 = vor.u32 %v5730_v14, %v4739_v15 }
 0x348   :  { %2153 = vmatpush.bf16.msra.mxu2 %v4638_v34  ;;  %2141 = vmatpush.bf16.msra.mxu3 %v4626_v57  ;;  %v5727_v34 = vld [vmem:[#allocation4 + $0x1d4] sm:$0xf0] }
 0x349   :  { %v5723_v57 = vld [vmem:[#allocation4 + $0x1b4] sm:$0xf0] }
 0x34b   :  { %2027 = vmatpush.bf16.msra.mxu1 %v4590_v31  ;;  %v4730_v31 = vor.u32 %v5729_v26, %v4729_v23  ;;  %v4691_v23 = vld [vmem:[#allocation4 + $0x198] sm:$0xf0]  ;;  %v5760_v26 = vld [vmem:[#allocation4 + $0x2e4] sm:$0xf] }
 0x34c   :  { %2154 = vmatpush.bf16.msra.mxu2 %v4630_v43  ;;  %2142 = vmatpush.bf16.msra.mxu3 %v4618_v0  ;;  %v4722_v43 = vor.u32 %v5727_v34, %v4721_v33  ;;  %v5716_v33 = vld [vmem:[#allocation4 + $0x184] sm:$0xf]  ;;  %v4897_v34 = vld [vmem:[#allocation4 + $0x330] sm:$0xf] }
 0x34f   :  { %2028 = vmatpush.bf16.msra.mxu1 %v4582_v41  ;;  %v5777_v41 = vld [vmem:[#allocation4 + $0x364] sm:$0xf0] }
 0x350   :  { %2155 = vmatpush.bf16.msra.mxu2 %v4622_v51  ;;  %v4761_v51 = vld [vmem:[#allocation4 + $0x220] sm:$0xf] }
 0x351   :  { %v4762_v56 = vor.u32 %v5737_v52, %v4761_v51  ;;  %v5744_v51 = vld [vmem:[#allocation4 + $0x264] sm:$0xf]  ;;  %v4795_v52 = vld [vmem:[#allocation4 + $0x268] sm:$0xf0] }
 0x353   :  { %2029 = vmatpush.bf16.msra.mxu1 %v4574_v47  ;;  %v4770_v47 = vor.u32 %v5739_v38, %v4769_v39  ;;  %v5771_v39 = vld [vmem:[#allocation4 + $0x334] sm:$0xf0] }
 0x355   :  { %4482 = vmatmul.msk.bf16.gmra.mxu0 %vm1588_vm2, %v5663_v1  ;;  %v4801_v1 = vld [vmem:[#allocation4 + $0x270] sm:$0xf] }
 0x356   :  { %v4802_v7 = vor.u32 %v5747_v2, %v4801_v1  ;;  %v4697_v1 = vld [vmem:[#allocation4 + $0x1a0] sm:$0xf]  ;;  %v4913_v2 = vld [vmem:[#allocation4 + $0x350] sm:$0xf] }
 0x357   :  { %2030 = vmatpush.bf16.msra.mxu1 %v4566_v55  ;;  %v4705_v55 = vld [vmem:[#allocation4 + $0x1b0] sm:$0xf]  ;;  %v4914_v9 = vor.u32 %v5775_v3, %v4913_v2  ;;  %v4698_v14 = vor.u32 %v5721_v5, %v4697_v1  ;;  %v5742_v2 = vld [vmem:[#allocation4 + $0x254] sm:$0xf]  ;;  %v4787_v3 = vld [vmem:[#allocation4 + $0x258] sm:$0xf0] }
 0x358   :  { %v4706_v62 = vor.u32 %v5723_v57, %v4705_v55  ;;  %v5761_v55 = vld [vmem:[#allocation4 + $0x2e4] sm:$0xf0]  ;;  %v4849_v5 = vld [vmem:[#allocation4 + $0x2d0] sm:$0xf] }
 0x35b   :  { %2031 = vmatpush.bf16.msra.mxu1 %v4558_v61  ;;  %v5735_v61 = vld [vmem:[#allocation4 + $0x214] sm:$0xf0] }
 0x35c   :  { %v4754_v4 = vor.u32 %v5735_v61, %v4753_v60  ;;  %v5767_v60 = vld [vmem:[#allocation4 + $0x314] sm:$0xf0] }
 0x365   :  { %4483 = vmatmul.msk.bf16.gmra.mxu0 %vm1588_vm2, %v5664_v40  ;;  %v4921_v40 = vld [vmem:[#allocation4 + $0x360] sm:$0xf] }
 0x366   :  { %v4922_v42 = vor.u32 %v5777_v41, %v4921_v40  ;;  %v4803_v40 = vld [vmem:[#allocation4 + $0x278] sm:$0xf0]  ;;  %v4865_v41 = vld [vmem:[#allocation4 + $0x2f0] sm:$0xf] }
 0x367   :  { %v4806_v50 = vor.u32 %v5746_v37, %v4803_v40  ;;  %v5750_v37 = vld [vmem:[#allocation4 + $0x294] sm:$0xf] }
 0x368   :  { %2640 = vmatpush.bf16.msrb.mxu0 %v4922_v42  ;;  %v5763_v42 = vld [vmem:[#allocation4 + $0x2f4] sm:$0xf0] }
 0x369   :  { %v4866_v20 = vor.u32 %v5763_v42, %v4865_v41  ;;  %v5736_v42 = vld [vmem:[#allocation4 + $0x224] sm:$0xf] }
 0x36c   :  { %2641 = vmatpush.bf16.msrb.mxu0 %v4914_v9 }
 0x375   :  { %4484 = vmatmul.msk.bf16.gmra.mxu0 %vm1588_vm2, %v5665_v58  ;;  %v5722_v58 = vld [vmem:[#allocation4 + $0x1b4] sm:$0xf] }
 0x376   :  { %v4710_v63 = vor.u32 %v5722_v58, %v4707_v59  ;;  %v4843_v58 = vld [vmem:[#allocation4 + $0x2c8] sm:$0xf0]  ;;  %v4881_v59 = vld [vmem:[#allocation4 + $0x310] sm:$0xf] }
 0x377   :  { %v4882_v9 = vor.u32 %v5767_v60, %v4881_v59  ;;  %v4755_v59 = vld [vmem:[#allocation4 + $0x218] sm:$0xf0] }
 0x385   :  { %4485 = vmatmul.msk.bf16.gmra.mxu0 %vm1588_vm2, %v5666_v18  ;;  %v5773_v18 = vld [vmem:[#allocation4 + $0x344] sm:$0xf0] }
 0x395   :  { %4486 = vmatmul.msk.bf16.gmra.mxu0 %vm1588_vm2, %v5667_v28  ;;  %v5738_v28 = vld [vmem:[#allocation4 + $0x234] sm:$0xf] }
 0x3a2   :  { %v1750_v6 = vpop.f32.mrf.mxu0 }
 0x3a3   :  { %v6219_v8 = vpack.c.bf16 %v1750_v6, %v1750_v6  ;;  %v5720_v6 = vld [vmem:[#allocation4 + $0x1a4] sm:$0xf] }
 0x3a5   :  { %2019 = vmatmul.bf16.vlgmr.msrb.gmra.mxu2 %v6219_v8 }
 0x3a6   :  { %2387 = vmatpush.bf16.msrb.mxu2 %v4802_v7  ;;  %v4699_v7 = vld [vmem:[#allocation4 + $0x1a8] sm:$0xf0] }
 0x3a7   :  { %v4702_v15 = vor.u32 %v5720_v6, %v4699_v7  ;;  %v5759_v6 = vld [vmem:[#allocation4 + $0x2d4] sm:$0xf0]  ;;  %v5754_v7 = vld [vmem:[#allocation4 + $0x2b4] sm:$0xf] }
 0x3aa   :  { %2388 = vmatpush.bf16.msrb.mxu2 %v4794_v11  ;;  %v1752_v19 = vpop.f32.mrf.mxu0  ;;  %v5733_v11 = vld [vmem:[#allocation4 + $0x204] sm:$0xf0] }
 0x3ab   :  { %v1807_v24 = vpack.c.bf16 %v1752_v19, %v1752_v19  ;;  %v4746_v19 = vor.u32 %v5733_v11, %v4745_v10  ;;  %v4835_v10 = vld [vmem:[#allocation4 + $0x2b8] sm:$0xf0]  ;;  %v4873_v11 = vld [vmem:[#allocation4 + $0x300] sm:$0xf] }
 0x3ad   :  { %1913 = vmatmul.bf16.vlgmr.msrb.gmra.mxu1 %v1807_v24  ;;  %1926 = vmatmul.bf16.vlgmr.msrb.gmra.mxu3 %v1807_v24  ;;  %v4906_v24 = vor.u32 %v5773_v18, %v4905_v17  ;;  %v4838_v17 = vor.u32 %v5754_v7, %v4835_v10  ;;  %v4841_v18 = vld [vmem:[#allocation4 + $0x2c0] sm:$0xf]  ;;  %v5025_v7 = vld [vmem:[#allocation4 + $0x430] sm:$0xf] }
 0x3ae   :  { %2261 = vmatpush.bf16.msrb.mxu1 %v4738_v21  ;;  %2274 = vmatpush.bf16.msrb.mxu3 %v4742_v22  ;;  %v5719_v21 = vld [vmem:[#allocation4 + $0x194] sm:$0xf0]  ;;  %v5718_v22 = vld [vmem:[#allocation4 + $0x194] sm:$0xf] }
 0x3af   :  { %2389 = vmatpush.bf16.msrb.mxu2 %v4786_v25  ;;  %v4870_v25 = vor.u32 %v5762_v12, %v4867_v13  ;;  %v4690_v29 = vor.u32 %v5719_v21, %v4689_v16  ;;  %v4694_v30 = vor.u32 %v5718_v22, %v4691_v23  ;;  %2642 = vmatpush.bf16.msrb.mxu0 %v4906_v24  ;;  %v5765_v12 = vld [vmem:[#allocation4 + $0x304] sm:$0xf0]  ;;  %v5057_v16 = vld [vmem:[#allocation4 + $0x470] sm:$0xf]  ;;  %v5811_v22 = vld [vmem:[#allocation4 + $0x474] sm:$0xf0] }
 0x3b0   :  { %v4850_v13 = vor.u32 %v5759_v6, %v4849_v5  ;;  %v4874_v21 = vor.u32 %v5765_v12, %v4873_v11  ;;  %v5752_v23 = vld [vmem:[#allocation4 + $0x2a4] sm:$0xf]  ;;  %v4827_v24 = vld [vmem:[#allocation4 + $0x2a8] sm:$0xf0]  ;;  %v4809_v12 = vld [vmem:[#allocation4 + $0x280] sm:$0xf] }
 0x3b1   :  { %v5732_v6 = vld [vmem:[#allocation4 + $0x204] sm:$0xf]  ;;  %v4747_v11 = vld [vmem:[#allocation4 + $0x208] sm:$0xf0] }
 0x3b2   :  { %2262 = vmatpush.bf16.msrb.mxu1 %v4730_v31  ;;  %2275 = vmatpush.bf16.msrb.mxu3 %v4734_v32  ;;  %v1755_v45 = vpop.f32.mrf.mxu0  ;;  %v5717_v32 = vld [vmem:[#allocation4 + $0x184] sm:$0xf0] }
 0x3b3   :  { %2390 = vmatpush.bf16.msrb.mxu2 %v4778_v35  ;;  %v2037_v48 = vpack.c.bf16 %v1755_v45, %v1755_v45  ;;  %v4851_v45 = vld [vmem:[#allocation4 + $0x2d8] sm:$0xf0]  ;;  %v4682_v46 = vor.u32 %v5717_v32, %v4681_v27 }
 0x3b4   :  { %v4771_v32 = vld [vmem:[#allocation4 + $0x238] sm:$0xf0] }
 0x3b5   :  { %2156 = vmatmul.bf16.vlgmr.msra.gmra.mxu2 %v2037_v48  ;;  %v4774_v40 = vor.u32 %v5738_v28, %v4771_v32  ;;  %v4923_v28 = vld [vmem:[#allocation4 + $0x368] sm:$0xf0] }
 0x3b6   :  { %2263 = vmatpush.bf16.msrb.mxu1 %v4722_v43  ;;  %2276 = vmatpush.bf16.msrb.mxu3 %v4726_v44  ;;  %v4898_v43 = vor.u32 %v5771_v39, %v4897_v34  ;;  %v5758_v44 = vld [vmem:[#allocation4 + $0x2d4] sm:$0xf]  ;;  %v5755_v34 = vld [vmem:[#allocation4 + $0x2b4] sm:$0xf0]  ;;  %v4819_v39 = vld [vmem:[#allocation4 + $0x298] sm:$0xf0] }
 0x3b7   :  { %2391 = vmatpush.bf16.msrb.mxu2 %v4770_v47  ;;  %v4686_v47 = vor.u32 %v5716_v33, %v4683_v36  ;;  %v4833_v33 = vld [vmem:[#allocation4 + $0x2b0] sm:$0xf]  ;;  %v4971_v32 = vld [vmem:[#allocation4 + $0x3c8] sm:$0xf0] }
 0x3b8   :  { %2643 = vmatpush.bf16.msrb.mxu0 %v4898_v43  ;;  %v4834_v41 = vor.u32 %v5755_v34, %v4833_v33  ;;  %v5041_v43 = vld [vmem:[#allocation4 + $0x450] sm:$0xf] }
 0x3ba   :  { %2264 = vmatpush.bf16.msrb.mxu1 %v4714_v53  ;;  %2277 = vmatpush.bf16.msrb.mxu3 %v4718_v54  ;;  %v6226_v0 = vpop.f32.mrf.mxu0  ;;  %v4854_v53 = vor.u32 %v5758_v44, %v4851_v45  ;;  %v4857_v54 = vld [vmem:[#allocation4 + $0x2e0] sm:$0xf]  ;;  %v5807_v44 = vld [vmem:[#allocation4 + $0x454] sm:$0xf0]  ;;  %v4822_v45 = vor.u32 %v5750_v37, %v4819_v39  ;;  %v5009_v37 = vld [vmem:[#allocation4 + $0x410] sm:$0xf] }
 0x3bb   :  { %2392 = vmatpush.bf16.msrb.mxu2 %v4762_v56  ;;  %v5756_v56 = vld [vmem:[#allocation4 + $0x2c4] sm:$0xf]  ;;  %v4858_v1 = vor.u32 %v5761_v55, %v4857_v54  ;;  %v5033_v55 = vld [vmem:[#allocation4 + $0x440] sm:$0xf]  ;;  %v5799_v39 = vld [vmem:[#allocation4 + $0x414] sm:$0xf0] }
 0x3bd   :  { %2032 = vmatmul.bf16.vlgmr.msra.gmra.mxu1 %v6219_v8  ;;  %2143 = vmatmul.bf16.vlgmr.msra.gmra.mxu3 %v2037_v48  ;;  %v4859_v8 = vld [vmem:[#allocation4 + $0x2e8] sm:$0xf0]  ;;  %v4889_v48 = vld [vmem:[#allocation4 + $0x320] sm:$0xf] }
 0x3be   :  { %2265 = vmatpush.bf16.msrb.mxu1 %v4706_v62  ;;  %2278 = vmatpush.bf16.msrb.mxu3 %v4710_v63  ;;  %v4862_v38 = vor.u32 %v5760_v26, %v4859_v8  ;;  %v4890_v57 = vor.u32 %v5769_v49, %v4889_v48  ;;  %v2163_v62 = vpack.c.bf16 %v6226_v0, %v6226_v0  ;;  %v5753_v48 = vld [vmem:[#allocation4 + $0x2a4] sm:$0xf0]  ;;  %v5748_v49 = vld [vmem:[#allocation4 + $0x284] sm:$0xf] }
 0x3bf   :  { %2393 = vmatpush.bf16.msrb.mxu2 %v4754_v4  ;;  %v4798_v63 = vor.u32 %v5744_v51, %v4795_v52  ;;  %v4846_v4 = vor.u32 %v5756_v56, %v4843_v58  ;;  %v4790_v0 = vor.u32 %v5742_v2, %v4787_v3  ;;  %v5794_v51 = vld [vmem:[#allocation4 + $0x3f4] sm:$0xf]  ;;  %v4995_v52 = vld [vmem:[#allocation4 + $0x3f8] sm:$0xf0]  ;;  %v5805_v56 = vld [vmem:[#allocation4 + $0x444] sm:$0xf0] }
 0x3c0   :  { %2644 = vmatpush.bf16.msrb.mxu0 %v4890_v57  ;;  %v5734_v58 = vld [vmem:[#allocation4 + $0x214] sm:$0xf]  ;;  %v4998_v60 = vor.u32 %v5794_v51, %v4995_v52  ;;  %v5792_v2 = vld [vmem:[#allocation4 + $0x3e4] sm:$0xf]  ;;  %v4987_v3 = vld [vmem:[#allocation4 + $0x3e8] sm:$0xf0] }
 0x3c1   :  { %v4758_v5 = vor.u32 %v5734_v58, %v4755_v59  ;;  %v5772_v51 = vld [vmem:[#allocation4 + $0x344] sm:$0xf]  ;;  %v5185_v52 = vld [vmem:[#allocation4 + $0x570] sm:$0xf]  ;;  %v4955_v59 = vld [vmem:[#allocation4 + $0x3a8] sm:$0xf0] }
 0x3c2   :  { %2266 = vmatpush.bf16.msrb.mxu1 %v4698_v14  ;;  %2279 = vmatpush.bf16.msrb.mxu3 %v4702_v15  ;;  %v1760_v31 = vpop.f32.mrf.mxu0  ;;  %v5740_v14 = vld [vmem:[#allocation4 + $0x244] sm:$0xf]  ;;  %v4779_v15 = vld [vmem:[#allocation4 + $0x248] sm:$0xf0] }
 0x3c3   :  { %2394 = vmatpush.bf16.msrb.mxu2 %v4746_v19  ;;  %v6232_v35 = vpack.c.bf16 %v1760_v31, %v1760_v31  ;;  %v5757_v19 = vld [vmem:[#allocation4 + $0x2c4] sm:$0xf0]  ;;  %v4782_v8 = vor.u32 %v5740_v14, %v4779_v15  ;;  %v4830_v31 = vor.u32 %v5752_v23, %v4827_v24  ;;  %v5778_v14 = vld [vmem:[#allocation4 + $0x374] sm:$0xf]  ;;  %v4931_v15 = vld [vmem:[#allocation4 + $0x378] sm:$0xf0] }
 0x3c4   :  { %2645 = vmatpush.bf16.msrb.mxu0 %v4882_v9  ;;  %v4842_v27 = vor.u32 %v5757_v19, %v4841_v18  ;;  %v5803_v9 = vld [vmem:[#allocation4 + $0x434] sm:$0xf0]  ;;  %v4979_v19 = vld [vmem:[#allocation4 + $0x3d8] sm:$0xf0]  ;;  %v5801_v23 = vld [vmem:[#allocation4 + $0x424] sm:$0xf0] }
 0x3c5   :  { %v5795_v18 = vld [vmem:[#allocation4 + $0x3f4] sm:$0xf0]  ;;  %v5784_v58 = vld [vmem:[#allocation4 + $0x3a4] sm:$0xf] }
 0x3c6   :  { %2267 = vmatpush.bf16.msrb.mxu1 %v4690_v29  ;;  %2280 = vmatpush.bf16.msrb.mxu3 %v4694_v30  ;;  %v5049_v29 = vld [vmem:[#allocation4 + $0x460] sm:$0xf]  ;;  %v5809_v30 = vld [vmem:[#allocation4 + $0x464] sm:$0xf0] }
 0x3c7   :  { %2526 = vmatpush.bf16.msra.mxu2 %v4870_v25  ;;  %v5058_v25 = vor.u32 %v5811_v22, %v5057_v16  ;;  %v4993_v16 = vld [vmem:[#allocation4 + $0x3f0] sm:$0xf]  ;;  %v5017_v22 = vld [vmem:[#allocation4 + $0x420] sm:$0xf] }
 0x3c8   :  { %2395 = vmatmul.bf16.vlgmr.msrb.gmra.mxu2 %v6232_v35  ;;  %2646 = vmatpush.bf16.msrb.mxu0 %v4874_v21  ;;  %v4750_v21 = vor.u32 %v5732_v6, %v4747_v11  ;;  %v5018_v33 = vor.u32 %v5801_v23, %v5017_v22  ;;  %v5770_v6 = vld [vmem:[#allocation4 + $0x334] sm:$0xf]  ;;  %v5785_v22 = vld [vmem:[#allocation4 + $0x3a4] sm:$0xf0]  ;;  %v5780_v23 = vld [vmem:[#allocation4 + $0x384] sm:$0xf] }
 0x3c9   :  { %v5782_v11 = vld [vmem:[#allocation4 + $0x394] sm:$0xf] }
 0x3ca   :  { %2268 = vmatpush.bf16.msrb.mxu1 %v4682_v46  ;;  %2281 = vmatpush.bf16.msrb.mxu3 %v4686_v47  ;;  %v6236_v61 = vpop.f32.mrf.mxu0  ;;  %v4763_v46 = vld [vmem:[#allocation4 + $0x228] sm:$0xf0]  ;;  %v4825_v47 = vld [vmem:[#allocation4 + $0x2a0] sm:$0xf] }
 0x3cb   :  { %2527 = vmatpush.bf16.msra.mxu2 %v4862_v38  ;;  %v5050_v38 = vor.u32 %v5809_v30, %v5049_v29  ;;  %v4826_v54 = vor.u32 %v5753_v48, %v4825_v47  ;;  %v4985_v29 = vld [vmem:[#allocation4 + $0x3e0] sm:$0xf]  ;;  %v5793_v30 = vld [vmem:[#allocation4 + $0x3e4] sm:$0xf0]  ;;  %v4963_v47 = vld [vmem:[#allocation4 + $0x3b8] sm:$0xf0]  ;;  %v5010_v48 = vor.u32 %v5799_v39, %v5009_v37 }
 0x3cc   :  { %2891 = vmatpush.bf16.msra.mxu0 %v5058_v25  ;;  %v4934_v25 = vor.u32 %v5778_v14, %v4931_v15  ;;  %v5169_v15 = vld [vmem:[#allocation4 + $0x550] sm:$0xf] }
 0x3cd   :  { %2269 = vmatmul.bf16.vlgmr.msrb.gmra.mxu1 %v2163_v62  ;;  %2282 = vmatmul.bf16.vlgmr.msrb.gmra.mxu3 %v2163_v62  ;;  %v4817_v62 = vld [vmem:[#allocation4 + $0x290] sm:$0xf] }
 0x3ce   :  { %2400 = vmatpush.bf16.msra.mxu1 %v4806_v50  ;;  %2513 = vmatpush.bf16.msra.mxu3 %v4866_v20  ;;  %v4811_v50 = vld [vmem:[#allocation4 + $0x288] sm:$0xf0]  ;;  %v5042_v20 = vor.u32 %v5807_v44, %v5041_v43  ;;  %v4915_v43 = vld [vmem:[#allocation4 + $0x358] sm:$0xf0]  ;;  %v4977_v44 = vld [vmem:[#allocation4 + $0x3d0] sm:$0xf] }
 0x3cf   :  { %2528 = vmatpush.bf16.msra.mxu2 %v4854_v53  ;;  %v4766_v53 = vor.u32 %v5736_v42, %v4763_v46  ;;  %v4814_v57 = vor.u32 %v5748_v49, %v4811_v50  ;;  %v5774_v42 = vld [vmem:[#allocation4 + $0x354] sm:$0xf]  ;;  %v5001_v49 = vld [vmem:[#allocation4 + $0x400] sm:$0xf]  ;;  %v5797_v50 = vld [vmem:[#allocation4 + $0x404] sm:$0xf0] }
 0x3d0   :  { %2892 = vmatpush.bf16.msra.mxu0 %v5050_v38  ;;  %v5786_v46 = vld [vmem:[#allocation4 + $0x3b4] sm:$0xf]  ;;  %v4945_v39 = vld [vmem:[#allocation4 + $0x390] sm:$0xf] }
 0x3d2   :  { %2401 = vmatpush.bf16.msra.mxu1 %v4798_v63  ;;  %2514 = vmatpush.bf16.msra.mxu3 %v4858_v1  ;;  %v1765_v26 = vpop.f32.mrf.mxu0  ;;  %v5751_v63 = vld [vmem:[#allocation4 + $0x294] sm:$0xf0]  ;;  %v5034_v1 = vor.u32 %v5805_v56, %v5033_v55  ;;  %v4907_v55 = vld [vmem:[#allocation4 + $0x348] sm:$0xf0]  ;;  %v4969_v56 = vld [vmem:[#allocation4 + $0x3c0] sm:$0xf] }
 0x3d3   :  { %2529 = vmatpush.bf16.msra.mxu2 %v4846_v4  ;;  %v6240_v36 = vpack.c.bf16 %v1765_v26, %v1765_v26  ;;  %v2415_v4 = vpack.c.bf16 %v6236_v61, %v6236_v61  ;;  %v4818_v10 = vor.u32 %v5751_v63, %v4817_v62  ;;  %v5790_v61 = vld [vmem:[#allocation4 + $0x3d4] sm:$0xf]  ;;  %v4994_v26 = vor.u32 %v5795_v18, %v4993_v16  ;;  %v5839_v16 = vld [vmem:[#allocation4 + $0x554] sm:$0xf0] }
 0x3d4   :  { %2893 = vmatpush.bf16.msra.mxu0 %v5042_v20  ;;  %v4918_v20 = vor.u32 %v5774_v42, %v4915_v43 }
 0x3d5   :  { %2647 = vmatmul.bf16.vlgmr.msrb.gmra.mxu0 %v6240_v36 }
 0x3d6   :  { %2402 = vmatpush.bf16.msra.mxu1 %v4790_v0  ;;  %2515 = vmatpush.bf16.msra.mxu3 %v4850_v13  ;;  %v5749_v0 = vld [vmem:[#allocation4 + $0x284] sm:$0xf0]  ;;  %v4990_v13 = vor.u32 %v5792_v2, %v4987_v3  ;;  %v5177_v2 = vld [vmem:[#allocation4 + $0x560] sm:$0xf] }
 0x3d7   :  { %2530 = vmatpush.bf16.msra.mxu2 %v4838_v17  ;;  %v5026_v17 = vor.u32 %v5803_v9, %v5025_v7  ;;  %v4810_v24 = vor.u32 %v5749_v0, %v4809_v12  ;;  %v5841_v3 = vld [vmem:[#allocation4 + $0x564] sm:$0xf0]  ;;  %v4899_v7 = vld [vmem:[#allocation4 + $0x338] sm:$0xf0]  ;;  %v4961_v9 = vld [vmem:[#allocation4 + $0x3b0] sm:$0xf] }
 0x3d8   :  { %2894 = vmatpush.bf16.msra.mxu0 %v5034_v1  ;;  %v4910_v1 = vor.u32 %v5772_v51, %v4907_v55  ;;  %v4947_v12 = vld [vmem:[#allocation4 + $0x398] sm:$0xf0]  ;;  %v4902_v14 = vor.u32 %v5770_v6, %v4899_v7  ;;  %v5827_v55 = vld [vmem:[#allocation4 + $0x4f4] sm:$0xf0]  ;;  %v5820_v6 = vld [vmem:[#allocation4 + $0x4c4] sm:$0xf] }
 0x3d9   :  { %v4950_v18 = vor.u32 %v5782_v11, %v4947_v12  ;;  %v5099_v7 = vld [vmem:[#allocation4 + $0x4c8] sm:$0xf0]  ;;  %v5137_v11 = vld [vmem:[#allocation4 + $0x510] sm:$0xf]  ;;  %v5831_v12 = vld [vmem:[#allocation4 + $0x514] sm:$0xf0] }
 0x3da   :  { %2403 = vmatpush.bf16.msra.mxu1 %v4782_v8  ;;  %2516 = vmatpush.bf16.msra.mxu3 %v4842_v27  ;;  %v4982_v8 = vor.u32 %v5790_v61, %v4979_v19  ;;  %v5776_v27 = vld [vmem:[#allocation4 + $0x364] sm:$0xf]  ;;  %v6245_v34 = vpop.f32.mrf.mxu0  ;;  %v4891_v19 = vld [vmem:[#allocation4 + $0x328] sm:$0xf0] }
 0x3db   :  { %2531 = vmatpush.bf16.msra.mxu2 %v4830_v31  ;;  %v5788_v31 = vld [vmem:[#allocation4 + $0x3c4] sm:$0xf]  ;;  %v4926_v38 = vor.u32 %v5776_v27, %v4923_v28  ;;  %v5161_v28 = vld [vmem:[#allocation4 + $0x540] sm:$0xf]  ;;  %v2667_v43 = vpack.c.bf16 %v6245_v34, %v6245_v34 }
 0x3dc   :  { %2895 = vmatpush.bf16.msra.mxu0 %v5026_v17  ;;  %v5768_v61 = vld [vmem:[#allocation4 + $0x324] sm:$0xf] }
 0x3dd   :  { %v4894_v27 = vor.u32 %v5768_v61, %v4891_v19  ;;  %v5823_v61 = vld [vmem:[#allocation4 + $0x4d4] sm:$0xf0]  ;;  %v5818_v19 = vld [vmem:[#allocation4 + $0x4b4] sm:$0xf] }
 0x3de   :  { %2404 = vmatpush.bf16.msra.mxu1 %v4774_v40  ;;  %2517 = vmatpush.bf16.msra.mxu3 %v4834_v41  ;;  %v4986_v40 = vor.u32 %v5793_v30, %v4985_v29  ;;  %v4974_v41 = vor.u32 %v5788_v31, %v4971_v32  ;;  %v5837_v29 = vld [vmem:[#allocation4 + $0x544] sm:$0xf0]  ;;  %v5766_v32 = vld [vmem:[#allocation4 + $0x314] sm:$0xf] }
 0x3df   :  { %2532 = vmatpush.bf16.msra.mxu2 %v4822_v45  ;;  %v5791_v45 = vld [vmem:[#allocation4 + $0x3d4] sm:$0xf0]  ;;  %v5162_v42 = vor.u32 %v5837_v29, %v5161_v28  ;;  %v5097_v29 = vld [vmem:[#allocation4 + $0x4c0] sm:$0xf] }
 0x3e0   :  { %2896 = vmatpush.bf16.msra.mxu0 %v5018_v33  ;;  %v4883_v33 = vld [vmem:[#allocation4 + $0x318] sm:$0xf0] }
 0x3e2   :  { %2405 = vmatpush.bf16.msra.mxu1 %v4766_v53  ;;  %2518 = vmatpush.bf16.msra.mxu3 %v4826_v54  ;;  %v4978_v53 = vor.u32 %v5791_v45, %v4977_v44  ;;  %v4966_v54 = vor.u32 %v5786_v46, %v4963_v47  ;;  %v1770_v62 = vpop.f32.mrf.mxu0  ;;  %v4886_v44 = vor.u32 %v5766_v32, %v4883_v33  ;;  %v5764_v45 = vld [vmem:[#allocation4 + $0x304] sm:$0xf]  ;;  %v5153_v46 = vld [vmem:[#allocation4 + $0x530] sm:$0xf]  ;;  %v5835_v47 = vld [vmem:[#allocation4 + $0x534] sm:$0xf0] }
 0x3e3   :  { %2533 = vmatpush.bf16.msra.mxu2 %v4814_v57  ;;  %v5843_v57 = vld [vmem:[#allocation4 + $0x574] sm:$0xf0]  ;;  %v6248_v0 = vpack.c.bf16 %v1770_v62, %v1770_v62  ;;  %v5154_v34 = vor.u32 %v5835_v47, %v5153_v46  ;;  %v5816_v32 = vld [vmem:[#allocation4 + $0x4a4] sm:$0xf]  ;;  %v5083_v33 = vld [vmem:[#allocation4 + $0x4a8] sm:$0xf0] }
 0x3e4   :  { %2897 = vmatpush.bf16.msra.mxu0 %v5010_v48  ;;  %v5186_v63 = vor.u32 %v5843_v57, %v5185_v52  ;;  %v5810_v52 = vld [vmem:[#allocation4 + $0x474] sm:$0xf]  ;;  %v5107_v57 = vld [vmem:[#allocation4 + $0x4d8] sm:$0xf0]  ;;  %v5089_v47 = vld [vmem:[#allocation4 + $0x4b0] sm:$0xf] }
 0x3e5   :  { %v5027_v46 = vld [vmem:[#allocation4 + $0x438] sm:$0xf0] }
 0x3e6   :  { %2534 = vmatmul.bf16.vlgmr.msra.gmra.mxu2 %v2415_v4  ;;  %2406 = vmatpush.bf16.msra.mxu1 %v4758_v5  ;;  %v4958_v5 = vor.u32 %v5784_v58, %v4955_v59  ;;  %v5145_v58 = vld [vmem:[#allocation4 + $0x520] sm:$0xf]  ;;  %v5833_v59 = vld [vmem:[#allocation4 + $0x524] sm:$0xf0] }
 0x3e7   :  { %2778 = vmatpush.bf16.msrb.mxu2 %v4998_v60  ;;  %2519 = vmatpush.bf16.msra.mxu3 %v4818_v10  ;;  %v5002_v60 = vor.u32 %v5797_v50, %v5001_v49  ;;  %v5787_v10 = vld [vmem:[#allocation4 + $0x3b4] sm:$0xf0]  ;;  %v4875_v49 = vld [vmem:[#allocation4 + $0x308] sm:$0xf0]  ;;  %v4937_v50 = vld [vmem:[#allocation4 + $0x380] sm:$0xf] }
 0x3e8   :  { %v4962_v17 = vor.u32 %v5787_v10, %v4961_v9  ;;  %v5146_v9 = vor.u32 %v5833_v59, %v5145_v58  ;;  %v5817_v58 = vld [vmem:[#allocation4 + $0x4a4] sm:$0xf0]  ;;  %v5812_v59 = vld [vmem:[#allocation4 + $0x484] sm:$0xf] }
 0x3e9   :  { %2898 = vmatpush.bf16.msra.mxu0 %v5002_v60 }
 0x3ea   :  { %2407 = vmatpush.bf16.msra.mxu1 %v4750_v21  ;;  %v4953_v21 = vld [vmem:[#allocation4 + $0x3a0] sm:$0xf]  ;;  %v6253_v10 = vpop.f32.mrf.mxu0 }
 0x3eb   :  { %2779 = vmatpush.bf16.msrb.mxu2 %v4990_v13  ;;  %2520 = vmatpush.bf16.msra.mxu3 %v4810_v24  ;;  %v5178_v13 = vor.u32 %v5841_v3, %v5177_v2  ;;  %v4939_v24 = vld [vmem:[#allocation4 + $0x388] sm:$0xf0]  ;;  %v4954_v30 = vor.u32 %v5785_v22, %v4953_v21  ;;  %v5808_v2 = vld [vmem:[#allocation4 + $0x464] sm:$0xf]  ;;  %v5091_v21 = vld [vmem:[#allocation4 + $0x4b8] sm:$0xf0]  ;;  %v5138_v22 = vor.u32 %v5831_v12, %v5137_v11 }
 0x3ec   :  { %2899 = vmatmul.bf16.vlgmr.msra.gmra.mxu0 %v6248_v0  ;;  %v4942_v31 = vor.u32 %v5780_v23, %v4939_v24  ;;  %v5051_v3 = vld [vmem:[#allocation4 + $0x468] sm:$0xf0]  ;;  %v5129_v23 = vld [vmem:[#allocation4 + $0x500] sm:$0xf]  ;;  %v5829_v24 = vld [vmem:[#allocation4 + $0x504] sm:$0xf0]  ;;  %v5094_v28 = vor.u32 %v5818_v19, %v5091_v21 }
 0x3ed   :  { %2408 = vmatmul.bf16.vlgmr.msra.gmra.mxu1 %v6232_v35  ;;  %v5789_v35 = vld [vmem:[#allocation4 + $0x3c4] sm:$0xf0]  ;;  %3143 = vmatpush.bf16.msrb.mxu0 %v5186_v63  ;;  %v5073_v12 = vld [vmem:[#allocation4 + $0x490] sm:$0xf]  ;;  %v5867_v21 = vld [vmem:[#allocation4 + $0x634] sm:$0xf0] }
 0x3ee   :  { %2652 = vmatpush.bf16.msrb.mxu1 %v4934_v25  ;;  %2521 = vmatmul.bf16.vlgmr.msra.gmra.mxu3 %v2415_v4  ;;  %v4970_v4 = vor.u32 %v5789_v35, %v4969_v56  ;;  %v5826_v25 = vld [vmem:[#allocation4 + $0x4f4] sm:$0xf]  ;;  %v4878_v35 = vor.u32 %v5764_v45, %v4875_v49  ;;  %v5281_v19 = vld [vmem:[#allocation4 + $0x630] sm:$0xf] }
 0x3ef   :  { %2765 = vmatpush.bf16.msrb.mxu3 %v4994_v26  ;;  %2780 = vmatpush.bf16.msrb.mxu2 %v4982_v8  ;;  %v5123_v26 = vld [vmem:[#allocation4 + $0x4f8] sm:$0xf0]  ;;  %v5170_v8 = vor.u32 %v5839_v16, %v5169_v15  ;;  %v5822_v56 = vld [vmem:[#allocation4 + $0x4d4] sm:$0xf]  ;;  %v5102_v15 = vor.u32 %v5820_v6, %v5099_v7 }
 0x3f0   :  { %v5126_v37 = vor.u32 %v5826_v25, %v5123_v26  ;;  %v5806_v16 = vld [vmem:[#allocation4 + $0x454] sm:$0xf]  ;;  %v5804_v26 = vld [vmem:[#allocation4 + $0x444] sm:$0xf] }
 0x3f1   :  { %3144 = vmatpush.bf16.msrb.mxu0 %v5178_v13  ;;  %v5054_v13 = vor.u32 %v5808_v2, %v5051_v3  ;;  %v5802_v45 = vld [vmem:[#allocation4 + $0x434] sm:$0xf]  ;;  %v5289_v3 = vld [vmem:[#allocation4 + $0x640] sm:$0xf] }
 0x3f2   :  { %2653 = vmatpush.bf16.msrb.mxu1 %v4926_v38  ;;  %v5783_v38 = vld [vmem:[#allocation4 + $0x394] sm:$0xf0]  ;;  %v5814_v49 = vld [vmem:[#allocation4 + $0x494] sm:$0xf] }
 0x3f3   :  { %2766 = vmatpush.bf16.msrb.mxu3 %v4986_v40  ;;  %2781 = vmatpush.bf16.msrb.mxu2 %v4974_v41  ;;  %v5824_v40 = vld [vmem:[#allocation4 + $0x4e4] sm:$0xf]  ;;  %v5115_v41 = vld [vmem:[#allocation4 + $0x4e8] sm:$0xf0]  ;;  %v4946_v48 = vor.u32 %v5783_v38, %v4945_v39  ;;  %v1775_v39 = vpop.f32.mrf.mxu0  ;;  %v5798_v7 = vld [vmem:[#allocation4 + $0x414] sm:$0xf] }
 0x3f4   :  { %v5118_v51 = vor.u32 %v5824_v40, %v5115_v41  ;;  %v5305_v41 = vld [vmem:[#allocation4 + $0x660] sm:$0xf] }
 0x3f5   :  { %3145 = vmatpush.bf16.msrb.mxu0 %v5170_v8  ;;  %v5035_v8 = vld [vmem:[#allocation4 + $0x448] sm:$0xf0] }
 0x3f6   :  { %2654 = vmatpush.bf16.msrb.mxu1 %v4918_v20  ;;  %v5781_v20 = vld [vmem:[#allocation4 + $0x384] sm:$0xf0]  ;;  %v5038_v40 = vor.u32 %v5804_v26, %v5035_v8  ;;  %v5842_v8 = vld [vmem:[#allocation4 + $0x574] sm:$0xf] }
 0x3f7   :  { %2767 = vmatpush.bf16.msrb.mxu3 %v4978_v53  ;;  %2782 = vmatpush.bf16.msrb.mxu2 %v4966_v54  ;;  %v5059_v53 = vld [vmem:[#allocation4 + $0x478] sm:$0xf0]  ;;  %v5121_v54 = vld [vmem:[#allocation4 + $0x4f0] sm:$0xf]  ;;  %v4938_v60 = vor.u32 %v5781_v20, %v4937_v50  ;;  %v6256_v20 = vpack.c.bf16 %v1775_v39, %v1775_v39 }
 0x3f8   :  { %v5062_v62 = vor.u32 %v5810_v52, %v5059_v53  ;;  %v5122_v63 = vor.u32 %v5827_v55, %v5121_v54  ;;  %v5075_v50 = vld [vmem:[#allocation4 + $0x498] sm:$0xf0]  ;;  %v5030_v52 = vor.u32 %v5802_v45, %v5027_v46  ;;  %v5800_v53 = vld [vmem:[#allocation4 + $0x424] sm:$0xf]  ;;  %v5019_v54 = vld [vmem:[#allocation4 + $0x428] sm:$0xf0] }
 0x3f9   :  { %3146 = vmatpush.bf16.msrb.mxu0 %v5162_v42  ;;  %v5873_v42 = vld [vmem:[#allocation4 + $0x664] sm:$0xf0]  ;;  %v5022_v2 = vor.u32 %v5800_v53, %v5019_v54  ;;  %v5852_v45 = vld [vmem:[#allocation4 + $0x5c4] sm:$0xf]  ;;  %v5227_v46 = vld [vmem:[#allocation4 + $0x5c8] sm:$0xf0] }
 0x3fa   :  { %2655 = vmatpush.bf16.msrb.mxu1 %v4910_v1  ;;  %v5110_v1 = vor.u32 %v5822_v56, %v5107_v57  ;;  %v5078_v56 = vor.u32 %v5814_v49, %v5075_v50  ;;  %v5081_v57 = vld [vmem:[#allocation4 + $0x4a0] sm:$0xf]  ;;  %v5265_v49 = vld [vmem:[#allocation4 + $0x610] sm:$0xf]  ;;  %v5863_v50 = vld [vmem:[#allocation4 + $0x614] sm:$0xf0]  ;;  %v5230_v53 = vor.u32 %v5852_v45, %v5227_v46 }
 0x3fb   :  { %2768 = vmatpush.bf16.msrb.mxu3 %v4970_v4  ;;  %2783 = vmatpush.bf16.msrb.mxu2 %v4958_v5  ;;  %v5113_v4 = vld [vmem:[#allocation4 + $0x4e0] sm:$0xf]  ;;  %v5825_v5 = vld [vmem:[#allocation4 + $0x4e4] sm:$0xf0]  ;;  %v5838_v54 = vld [vmem:[#allocation4 + $0x554] sm:$0xf] }
 0x3fd   :  { %3147 = vmatpush.bf16.msrb.mxu0 %v5154_v34  ;;  %v5297_v34 = vld [vmem:[#allocation4 + $0x650] sm:$0xf] }
 0x3fe   :  { %2656 = vmatpush.bf16.msrb.mxu1 %v4902_v14  ;;  %v5114_v14 = vor.u32 %v5825_v5, %v5113_v4  ;;  %v5869_v4 = vld [vmem:[#allocation4 + $0x644] sm:$0xf0]  ;;  %v5082_v5 = vor.u32 %v5817_v58, %v5081_v57  ;;  %v5855_v57 = vld [vmem:[#allocation4 + $0x5d4] sm:$0xf0]  ;;  %v5266_v58 = vor.u32 %v5863_v50, %v5265_v49  ;;  %v5830_v49 = vld [vmem:[#allocation4 + $0x514] sm:$0xf] }
 0x3ff   :  { %2769 = vmatpush.bf16.msrb.mxu3 %v4962_v17  ;;  %2784 = vmatpush.bf16.msrb.mxu2 %v4950_v18  ;;  %v5043_v17 = vld [vmem:[#allocation4 + $0x458] sm:$0xf0]  ;;  %v5105_v18 = vld [vmem:[#allocation4 + $0x4d0] sm:$0xf] }
 0x400   :  { %v5046_v25 = vor.u32 %v5806_v16, %v5043_v17  ;;  %v5290_v16 = vor.u32 %v5869_v4, %v5289_v3  ;;  %v2919_v17 = vpack.c.bf16 %v6253_v10, %v6253_v10  ;;  %v5282_v10 = vor.u32 %v5867_v21, %v5281_v19  ;;  %v5163_v4 = vld [vmem:[#allocation4 + $0x548] sm:$0xf0] }
 0x401   :  { %3148 = vmatpush.bf16.msrb.mxu0 %v5146_v9  ;;  %v5011_v9 = vld [vmem:[#allocation4 + $0x418] sm:$0xf0] }
 0x402   :  { %2657 = vmatpush.bf16.msrb.mxu1 %v4894_v27  ;;  %v5106_v27 = vor.u32 %v5823_v61, %v5105_v18  ;;  %v5014_v18 = vor.u32 %v5798_v7, %v5011_v9  ;;  %v5796_v61 = vld [vmem:[#allocation4 + $0x404] sm:$0xf]  ;;  %v5853_v7 = vld [vmem:[#allocation4 + $0x5c4] sm:$0xf0] }
 0x403   :  { %2770 = vmatpush.bf16.msrb.mxu3 %v4954_v30  ;;  %2785 = vmatpush.bf16.msrb.mxu2 %v4942_v31  ;;  %v5313_v30 = vld [vmem:[#allocation4 + $0x670] sm:$0xf]  ;;  %v5875_v31 = vld [vmem:[#allocation4 + $0x674] sm:$0xf0]  ;;  %v5848_v9 = vld [vmem:[#allocation4 + $0x5a4] sm:$0xf] }
 0x404   :  { %v5314_v38 = vor.u32 %v5875_v31, %v5313_v30  ;;  %v5854_v30 = vld [vmem:[#allocation4 + $0x5d4] sm:$0xf]  ;;  %v5235_v31 = vld [vmem:[#allocation4 + $0x5d8] sm:$0xf0] }
 0x405   :  { %3149 = vmatpush.bf16.msrb.mxu0 %v5138_v22 }
 0x406   :  { %2658 = vmatpush.bf16.msrb.mxu1 %v4886_v44  ;;  %2786 = vmatmul.bf16.vlgmr.msrb.gmra.mxu2 %v2667_v43  ;;  %v5086_v44 = vor.u32 %v5816_v32, %v5083_v33  ;;  %v5273_v32 = vld [vmem:[#allocation4 + $0x620] sm:$0xf]  ;;  %v5865_v33 = vld [vmem:[#allocation4 + $0x624] sm:$0xf0] }
 0x407   :  { %3030 = vmatpush.bf16.msra.mxu2 %v5126_v37  ;;  %2771 = vmatpush.bf16.msrb.mxu3 %v4946_v48  ;;  %v5130_v37 = vor.u32 %v5829_v24, %v5129_v23  ;;  %v5819_v48 = vld [vmem:[#allocation4 + $0x4b4] sm:$0xf0]  ;;  %v5003_v23 = vld [vmem:[#allocation4 + $0x408] sm:$0xf0]  ;;  %v5065_v24 = vld [vmem:[#allocation4 + $0x480] sm:$0xf] }
 0x408   :  { %v5090_v55 = vor.u32 %v5819_v48, %v5089_v47  ;;  %v5274_v47 = vor.u32 %v5865_v33, %v5273_v32  ;;  %v6261_v48 = vpop.f32.mrf.mxu0  ;;  %v5209_v32 = vld [vmem:[#allocation4 + $0x5a0] sm:$0xf]  ;;  %v5425_v33 = vld [vmem:[#allocation4 + $0x750] sm:$0xf] }
 0x409   :  { %3150 = vmatpush.bf16.msrb.mxu0 %v5130_v37 }
 0x40a   :  { %2659 = vmatpush.bf16.msrb.mxu1 %v4878_v35  ;;  %v5871_v35 = vld [vmem:[#allocation4 + $0x654] sm:$0xf0] }
 0x40b   :  { %3031 = vmatpush.bf16.msra.mxu2 %v5118_v51  ;;  %2772 = vmatpush.bf16.msrb.mxu3 %v4938_v60  ;;  %v5306_v51 = vor.u32 %v5873_v42, %v5305_v41  ;;  %v5067_v60 = vld [vmem:[#allocation4 + $0x488] sm:$0xf0]  ;;  %v5840_v41 = vld [vmem:[#allocation4 + $0x564] sm:$0xf] }
 0x40c   :  { %3151 = vmatmul.bf16.vlgmr.msrb.gmra.mxu0 %v6256_v20  ;;  %v5070_v6 = vor.u32 %v5812_v59, %v5067_v60  ;;  %v5179_v42 = vld [vmem:[#allocation4 + $0x568] sm:$0xf0]  ;;  %v5257_v59 = vld [vmem:[#allocation4 + $0x600] sm:$0xf]  ;;  %v5861_v60 = vld [vmem:[#allocation4 + $0x604] sm:$0xf0] }
 0x40d   :  { %2660 = vmatmul.bf16.vlgmr.msrb.gmra.mxu1 %v6240_v36  ;;  %v5821_v36 = vld [vmem:[#allocation4 + $0x4c4] sm:$0xf0]  ;;  %3395 = vmatpush.bf16.msra.mxu0 %v5314_v38 }
 0x40e   :  { %2904 = vmatpush.bf16.msra.mxu1 %v5062_v62  ;;  %2773 = vmatmul.bf16.vlgmr.msrb.gmra.mxu3 %v2667_v43  ;;  %v5098_v43 = vor.u32 %v5821_v36, %v5097_v29  ;;  %v5858_v62 = vld [vmem:[#allocation4 + $0x5f4] sm:$0xf]  ;;  %v5859_v29 = vld [vmem:[#allocation4 + $0x5f4] sm:$0xf0]  ;;  %v5006_v36 = vor.u32 %v5796_v61, %v5003_v23  ;;  %v5433_v23 = vld [vmem:[#allocation4 + $0x760] sm:$0xf] }
 0x40f   :  { %3017 = vmatpush.bf16.msra.mxu3 %v5122_v63  ;;  %3032 = vmatpush.bf16.msra.mxu2 %v5110_v1  ;;  %v5251_v63 = vld [vmem:[#allocation4 + $0x5f8] sm:$0xf0]  ;;  %v5298_v1 = vor.u32 %v5871_v35, %v5297_v34  ;;  %v5850_v34 = vld [vmem:[#allocation4 + $0x5b4] sm:$0xf] }
 0x410   :  { %v5254_v11 = vor.u32 %v5858_v62, %v5251_v63  ;;  %v5219_v35 = vld [vmem:[#allocation4 + $0x5b8] sm:$0xf0]  ;;  %v5836_v63 = vld [vmem:[#allocation4 + $0x544] sm:$0xf] }
 0x411   :  { %3396 = vmatpush.bf16.msra.mxu0 %v5306_v51  ;;  %v5182_v51 = vor.u32 %v5840_v41, %v5179_v42  ;;  %v5222_v3 = vor.u32 %v5850_v34, %v5219_v35  ;;  %v5844_v41 = vld [vmem:[#allocation4 + $0x584] sm:$0xf]  ;;  %v5195_v42 = vld [vmem:[#allocation4 + $0x588] sm:$0xf0] }
 0x412   :  { %2905 = vmatpush.bf16.msra.mxu1 %v5054_v13  ;;  %v5815_v13 = vld [vmem:[#allocation4 + $0x494] sm:$0xf0]  ;;  %v5888_v34 = vld [vmem:[#allocation4 + $0x6e4] sm:$0xf]  ;;  %v5371_v35 = vld [vmem:[#allocation4 + $0x6e8] sm:$0xf0] }
 0x413   :  { %3018 = vmatpush.bf16.msra.mxu3 %v5114_v14  ;;  %3033 = vmatpush.bf16.msra.mxu2 %v5102_v15  ;;  %v5856_v14 = vld [vmem:[#allocation4 + $0x5e4] sm:$0xf]  ;;  %v5243_v15 = vld [vmem:[#allocation4 + $0x5e8] sm:$0xf0]  ;;  %v5074_v22 = vor.u32 %v5815_v13, %v5073_v12  ;;  %v5258_v12 = vor.u32 %v5861_v60, %v5257_v59  ;;  %v1780_v13 = vpop.f32.mrf.mxu0  ;;  %v6271_v59 = vpack.c.bf16 %v6261_v48, %v6261_v48  ;;  %v5377_v48 = vld [vmem:[#allocation4 + $0x6f0] sm:$0xf] }
 0x414   :  { %v5246_v26 = vor.u32 %v5856_v14, %v5243_v15 }
 0x415   :  { %3397 = vmatpush.bf16.msra.mxu0 %v5298_v1  ;;  %v5441_v1 = vld [vmem:[#allocation4 + $0x770] sm:$0xf] }
 0x416   :  { %2906 = vmatpush.bf16.msra.mxu1 %v5046_v25  ;;  %v5813_v25 = vld [vmem:[#allocation4 + $0x484] sm:$0xf0] }
 0x417   :  { %3019 = vmatpush.bf16.msra.mxu3 %v5106_v27  ;;  %3034 = vmatpush.bf16.msra.mxu2 %v5094_v28  ;;  %v5187_v27 = vld [vmem:[#allocation4 + $0x578] sm:$0xf0]  ;;  %v5249_v28 = vld [vmem:[#allocation4 + $0x5f0] sm:$0xf]  ;;  %v5066_v37 = vor.u32 %v5813_v25, %v5065_v24  ;;  %v5905_v24 = vld [vmem:[#allocation4 + $0x764] sm:$0xf0] }
 0x418   :  { %v5190_v39 = vor.u32 %v5842_v8, %v5187_v27  ;;  %v5250_v38 = vor.u32 %v5859_v29, %v5249_v28  ;;  %v5851_v25 = vld [vmem:[#allocation4 + $0x5b4] sm:$0xf0]  ;;  %v5203_v8 = vld [vmem:[#allocation4 + $0x598] sm:$0xf0]  ;;  %v6266_v27 = vpack.c.bf16 %v1780_v13, %v1780_v13  ;;  %v5434_v28 = vor.u32 %v5905_v24, %v5433_v23 }
 0x419   :  { %3398 = vmatpush.bf16.msra.mxu0 %v5290_v16  ;;  %v5166_v16 = vor.u32 %v5836_v63, %v5163_v4  ;;  %v5409_v63 = vld [vmem:[#allocation4 + $0x730] sm:$0xf]  ;;  %v5193_v4 = vld [vmem:[#allocation4 + $0x580] sm:$0xf]  ;;  %v5891_v13 = vld [vmem:[#allocation4 + $0x6f4] sm:$0xf0] }
 0x41a   :  { %2907 = vmatpush.bf16.msra.mxu1 %v5038_v40  ;;  %v5238_v40 = vor.u32 %v5854_v30, %v5235_v31  ;;  %v5832_v30 = vld [vmem:[#allocation4 + $0x524] sm:$0xf]  ;;  %v5147_v31 = vld [vmem:[#allocation4 + $0x528] sm:$0xf0] }
 0x41b   :  { %3020 = vmatpush.bf16.msra.mxu3 %v5098_v43  ;;  %3035 = vmatpush.bf16.msra.mxu2 %v5086_v44  ;;  %v5241_v43 = vld [vmem:[#allocation4 + $0x5e0] sm:$0xf]  ;;  %v5857_v44 = vld [vmem:[#allocation4 + $0x5e4] sm:$0xf0] }
 0x41d   :  { %3399 = vmatpush.bf16.msra.mxu0 %v5282_v10 }
 0x41e   :  { %2908 = vmatpush.bf16.msra.mxu1 %v5030_v52  ;;  %v5242_v52 = vor.u32 %v5857_v44, %v5241_v43  ;;  %v5890_v43 = vld [vmem:[#allocation4 + $0x6f4] sm:$0xf]  ;;  %v5379_v44 = vld [vmem:[#allocation4 + $0x6f8] sm:$0xf0] }
 0x41f   :  { %3021 = vmatpush.bf16.msra.mxu3 %v5090_v55  ;;  %3036 = vmatpush.bf16.msra.mxu2 %v5078_v56  ;;  %v5171_v55 = vld [vmem:[#allocation4 + $0x558] sm:$0xf0]  ;;  %v5233_v56 = vld [vmem:[#allocation4 + $0x5d0] sm:$0xf] }
 0x420   :  { %v5174_v62 = vor.u32 %v5838_v54, %v5171_v55  ;;  %v5901_v54 = vld [vmem:[#allocation4 + $0x744] sm:$0xf0]  ;;  %v5382_v55 = vor.u32 %v5890_v43, %v5379_v44  ;;  %v5870_v43 = vld [vmem:[#allocation4 + $0x654] sm:$0xf]  ;;  %v5299_v44 = vld [vmem:[#allocation4 + $0x658] sm:$0xf0] }
 0x421   :  { %3400 = vmatpush.bf16.msra.mxu0 %v5274_v47  ;;  %v5150_v47 = vor.u32 %v5832_v30, %v5147_v31  ;;  %v5889_v31 = vld [vmem:[#allocation4 + $0x6e4] sm:$0xf0] }
 0x422   :  { %2909 = vmatpush.bf16.msra.mxu1 %v5022_v2  ;;  %v5234_v2 = vor.u32 %v5855_v57, %v5233_v56  ;;  %v5201_v56 = vld [vmem:[#allocation4 + $0x590] sm:$0xf]  ;;  %v5847_v57 = vld [vmem:[#allocation4 + $0x594] sm:$0xf0] }
 0x423   :  { %3022 = vmatpush.bf16.msra.mxu3 %v5082_v5  ;;  %3037 = vmatpush.bf16.msra.mxu2 %v5070_v6  ;;  %v5225_v5 = vld [vmem:[#allocation4 + $0x5c0] sm:$0xf]  ;;  %v5907_v6 = vld [vmem:[#allocation4 + $0x774] sm:$0xf0] }
 0x424   :  { %v5442_v14 = vor.u32 %v5907_v6, %v5441_v1  ;;  %v5226_v19 = vor.u32 %v5853_v7, %v5225_v5  ;;  %v5899_v1 = vld [vmem:[#allocation4 + $0x734] sm:$0xf0]  ;;  %v5845_v5 = vld [vmem:[#allocation4 + $0x584] sm:$0xf0]  ;;  %v6273_v6 = vpop.f32.mrf.mxu0  ;;  %v5374_v7 = vor.u32 %v5888_v34, %v5371_v35  ;;  %v5291_v35 = vld [vmem:[#allocation4 + $0x648] sm:$0xf0] }
 0x425   :  { %3401 = vmatpush.bf16.msra.mxu0 %v5266_v58  ;;  %v5194_v23 = vor.u32 %v5845_v5, %v5193_v4  ;;  %v5866_v4 = vld [vmem:[#allocation4 + $0x634] sm:$0xf]  ;;  %v5283_v5 = vld [vmem:[#allocation4 + $0x638] sm:$0xf0] }
 0x426   :  { %2910 = vmatpush.bf16.msra.mxu1 %v5014_v18  ;;  %3038 = vmatmul.bf16.vlgmr.msra.gmra.mxu2 %v2919_v17  ;;  %v5155_v18 = vld [vmem:[#allocation4 + $0x538] sm:$0xf0] }
 0x427   :  { %3282 = vmatpush.bf16.msrb.mxu2 %v5254_v11  ;;  %3023 = vmatpush.bf16.msra.mxu3 %v5074_v22  ;;  %v5211_v11 = vld [vmem:[#allocation4 + $0x5a8] sm:$0xf0]  ;;  %v5217_v22 = vld [vmem:[#allocation4 + $0x5b0] sm:$0xf] }
 0x428   :  { %v5214_v21 = vor.u32 %v5848_v9, %v5211_v11  ;;  %v5218_v10 = vor.u32 %v5851_v25, %v5217_v22  ;;  %v5874_v11 = vld [vmem:[#allocation4 + $0x674] sm:$0xf]  ;;  %v5378_v25 = vor.u32 %v5891_v13, %v5377_v48 }
 0x429   :  { %3402 = vmatpush.bf16.msra.mxu0 %v5258_v12  ;;  %v5315_v12 = vld [vmem:[#allocation4 + $0x678] sm:$0xf0] }
 0x42a   :  { %2911 = vmatpush.bf16.msra.mxu1 %v5006_v36  ;;  %v1914_v15 = vpop.f32.mrf.mxu1  ;;  %v5318_v24 = vor.u32 %v5874_v11, %v5315_v12  ;;  %v5331_v11 = vld [vmem:[#allocation4 + $0x698] sm:$0xf0] }
 0x42b   :  { %3283 = vmatpush.bf16.msrb.mxu2 %v5246_v26  ;;  %3024 = vmatpush.bf16.msra.mxu3 %v5066_v37  ;;  %v5846_v26 = vld [vmem:[#allocation4 + $0x594] sm:$0xf]  ;;  %v5903_v37 = vld [vmem:[#allocation4 + $0x754] sm:$0xf0] }
 0x42c   :  { %v5206_v36 = vor.u32 %v5846_v26, %v5203_v8  ;;  %3403 = vmatmul.bf16.vlgmr.msra.gmra.mxu0 %v6266_v27  ;;  %v5426_v45 = vor.u32 %v5903_v37, %v5425_v33  ;;  %v5872_v8 = vld [vmem:[#allocation4 + $0x664] sm:$0xf]  ;;  %v5393_v33 = vld [vmem:[#allocation4 + $0x710] sm:$0xf]  ;;  %v5895_v37 = vld [vmem:[#allocation4 + $0x714] sm:$0xf0] }
 0x42d   :  { %2912 = vmatmul.bf16.vlgmr.msra.gmra.mxu1 %v6248_v0  ;;  %v2020_v0 = vpop.f32.mrf.mxu2  ;;  %3647 = vmatpush.bf16.msrb.mxu0 %v5442_v14  ;;  %v5886_v14 = vld [vmem:[#allocation4 + $0x6d4] sm:$0xf] }
 0x42e   :  { %3156 = vmatpush.bf16.msrb.mxu1 %v5190_v39  ;;  %3025 = vmatmul.bf16.vlgmr.msra.gmra.mxu3 %v2919_v17  ;;  %v5834_v17 = vld [vmem:[#allocation4 + $0x534] sm:$0xf]  ;;  %v6264_v61 = vadd.f32 %v2020_v0, %v1914_v15  ;;  %v5363_v15 = vld [vmem:[#allocation4 + $0x6d8] sm:$0xf0] }
 0x42f   :  { %3269 = vmatpush.bf16.msrb.mxu3 %v5250_v38  ;;  %3284 = vmatpush.bf16.msrb.mxu2 %v5238_v40  ;;  %v5158_v29 = vor.u32 %v5834_v17, %v5155_v18  ;;  %v5849_v40 = vld [vmem:[#allocation4 + $0x5a4] sm:$0xf0]  ;;  %v5366_v26 = vor.u32 %v5886_v14, %v5363_v15  ;;  %v5286_v15 = vor.u32 %v5866_v4, %v5283_v5  ;;  %v5483_v4 = vld [vmem:[#allocation4 + $0x7c8] sm:$0xf0] }
 0x430   :  { %v1927_v39 = vpop.f32.mrf.mxu3  ;;  %v5210_v50 = vor.u32 %v5849_v40, %v5209_v32 }
 0x431   :  { %3648 = vmatpush.bf16.msrb.mxu0 %v5434_v28  ;;  %v5307_v28 = vld [vmem:[#allocation4 + $0x668] sm:$0xf0] }
 0x432   :  { %3157 = vmatpush.bf16.msrb.mxu1 %v5182_v51  ;;  %v1916_v46 = vpop.f32.mrf.mxu1  ;;  %v5198_v51 = vor.u32 %v5844_v41, %v5195_v42 }
 0x433   :  { %3270 = vmatpush.bf16.msrb.mxu3 %v5242_v52  ;;  %3285 = vmatpush.bf16.msrb.mxu2 %v5230_v53  ;;  %v5139_v52 = vld [vmem:[#allocation4 + $0x518] sm:$0xf0]  ;;  %v5417_v53 = vld [vmem:[#allocation4 + $0x740] sm:$0xf] }
 0x434   :  { %v5418_v58 = vor.u32 %v5901_v54, %v5417_v53  ;;  %v5142_v60 = vor.u32 %v5830_v49, %v5139_v52  ;;  %v5882_v49 = vld [vmem:[#allocation4 + $0x6b4] sm:$0xf]  ;;  %v5394_v52 = vor.u32 %v5895_v37, %v5393_v33  ;;  %v5385_v54 = vld [vmem:[#allocation4 + $0x700] sm:$0xf]  ;;  %v5267_v33 = vld [vmem:[#allocation4 + $0x618] sm:$0xf0] }
 0x435   :  { %v2022_v38 = vpop.f32.mrf.mxu2  ;;  %3649 = vmatpush.bf16.msrb.mxu0 %v5426_v45  ;;  %v5361_v45 = vld [vmem:[#allocation4 + $0x6d0] sm:$0xf] }
 0x436   :  { %3158 = vmatpush.bf16.msrb.mxu1 %v5174_v62  ;;  %v5828_v62 = vld [vmem:[#allocation4 + $0x504] sm:$0xf] }
 0x437   :  { %3271 = vmatpush.bf16.msrb.mxu3 %v5234_v2  ;;  %3286 = vmatpush.bf16.msrb.mxu2 %v5222_v3  ;;  %v5202_v2 = vor.u32 %v5847_v57, %v5201_v56  ;;  %v5131_v3 = vld [vmem:[#allocation4 + $0x508] sm:$0xf0]  ;;  %v5302_v56 = vor.u32 %v5870_v43, %v5299_v44 }
 0x438   :  { %v1929_v0 = vpop.f32.mrf.mxu3  ;;  %v5134_v18 = vor.u32 %v5828_v62, %v5131_v3  ;;  %v5339_v62 = vld [vmem:[#allocation4 + $0x6a8] sm:$0xf0] }
 0x439   :  { %3650 = vmatpush.bf16.msrb.mxu0 %v5418_v58  ;;  %v5885_v58 = vld [vmem:[#allocation4 + $0x6c4] sm:$0xf0]  ;;  %v5345_v0 = vld [vmem:[#allocation4 + $0x6b0] sm:$0xf]  ;;  %v5499_v43 = vld [vmem:[#allocation4 + $0x7e8] sm:$0xf0] }
 0x43a   :  { %3159 = vmatpush.bf16.msrb.mxu1 %v5166_v16  ;;  %v5410_v16 = vor.u32 %v5899_v1, %v5409_v63  ;;  %v2033_v17 = vpop.f32.mrf.mxu1 }
 0x43b   :  { %3272 = vmatpush.bf16.msrb.mxu3 %v5226_v19  ;;  %3287 = vmatpush.bf16.msrb.mxu2 %v5214_v21  ;;  %v5401_v19 = vld [vmem:[#allocation4 + $0x720] sm:$0xf]  ;;  %v5897_v21 = vld [vmem:[#allocation4 + $0x724] sm:$0xf0]  ;;  %v2034_v22 = vadd.f32 %v2033_v17, %v1927_v39  ;;  %v5310_v39 = vor.u32 %v5872_v8, %v5307_v28  ;;  %v5922_v8 = vld [vmem:[#allocation4 + $0x7f4] sm:$0xf] }
 0x43c   :  { %v5402_v32 = vor.u32 %v5897_v21, %v5401_v19  ;;  %v5864_v19 = vld [vmem:[#allocation4 + $0x624] sm:$0xf]  ;;  %v5275_v21 = vld [vmem:[#allocation4 + $0x628] sm:$0xf0]  ;;  %v5507_v28 = vld [vmem:[#allocation4 + $0x7f8] sm:$0xf0] }
 0x43d   :  { %v2157_v9 = vpop.f32.mrf.mxu2  ;;  %3651 = vmatpush.bf16.msrb.mxu0 %v5410_v16 }
 0x43e   :  { %3160 = vmatpush.bf16.msrb.mxu1 %v5158_v29  ;;  %v5369_v29 = vld [vmem:[#allocation4 + $0x6e0] sm:$0xf]  ;;  %v6276_v30 = vadd.f32 %v2157_v9, %v2034_v22  ;;  %v5878_v9 = vld [vmem:[#allocation4 + $0x694] sm:$0xf] }
 0x43f   :  { %3273 = vmatpush.bf16.msrb.mxu3 %v5218_v10  ;;  %3288 = vmatpush.bf16.msrb.mxu2 %v5206_v36  ;;  %v5884_v10 = vld [vmem:[#allocation4 + $0x6c4] sm:$0xf]  ;;  %v5355_v36 = vld [vmem:[#allocation4 + $0x6c8] sm:$0xf0]  ;;  %v5370_v40 = vor.u32 %v5889_v31, %v5369_v29  ;;  %v5337_v22 = vld [vmem:[#allocation4 + $0x6a0] sm:$0xf]  ;;  %v5278_v29 = vor.u32 %v5864_v19, %v5275_v21 }
 0x440   :  { %v2144_v38 = vpop.f32.mrf.mxu3  ;;  %v5358_v41 = vor.u32 %v5884_v10, %v5355_v36 }
 0x441   :  { %v2161_v46 = vadd.f32 %v2144_v38, %v6264_v61  ;;  %3652 = vmatpush.bf16.msrb.mxu0 %v5402_v32  ;;  %v5868_v61 = vld [vmem:[#allocation4 + $0x644] sm:$0xf]  ;;  %v5862_v32 = vld [vmem:[#allocation4 + $0x614] sm:$0xf]  ;;  %v5329_v38 = vld [vmem:[#allocation4 + $0x690] sm:$0xf] }
 0x442   :  { %3161 = vmatpush.bf16.msrb.mxu1 %v5150_v47  ;;  %v5887_v47 = vld [vmem:[#allocation4 + $0x6d4] sm:$0xf0]  ;;  %v2035_v53 = vpop.f32.mrf.mxu1  ;;  %v5294_v1 = vor.u32 %v5868_v61, %v5291_v35  ;;  %v5491_v61 = vld [vmem:[#allocation4 + $0x7d8] sm:$0xf0] }
 0x443   :  { %3274 = vmatpush.bf16.msrb.mxu3 %v5210_v50  ;;  %3289 = vmatpush.bf16.msrb.mxu2 %v5198_v51  ;;  %v5347_v50 = vld [vmem:[#allocation4 + $0x6b8] sm:$0xf0]  ;;  %v1785_v51 = vpop.f32.mrf.mxu0  ;;  %v5362_v57 = vor.u32 %v5887_v47, %v5361_v45  ;;  %v3423_v45 = vpack.c.bf16 %v6273_v6, %v6273_v6  ;;  %v5860_v47 = vld [vmem:[#allocation4 + $0x604] sm:$0xf]  ;;  %v5906_v53 = vld [vmem:[#allocation4 + $0x774] sm:$0xf] }
 0x444   :  { %v5350_v34 = vor.u32 %v5882_v49, %v5347_v50  ;;  %v6281_v12 = vpack.c.bf16 %v1785_v51, %v1785_v51  ;;  %v5259_v50 = vld [vmem:[#allocation4 + $0x608] sm:$0xf0]  ;;  %v5321_v51 = vld [vmem:[#allocation4 + $0x680] sm:$0xf] }
 0x445   :  { %v2159_v42 = vpop.f32.mrf.mxu2  ;;  %3653 = vmatpush.bf16.msrb.mxu0 %v5394_v52  ;;  %v5262_v6 = vor.u32 %v5860_v47, %v5259_v50  ;;  %v5403_v47 = vld [vmem:[#allocation4 + $0x728] sm:$0xf0]  ;;  %v5913_v50 = vld [vmem:[#allocation4 + $0x7a4] sm:$0xf0] }
 0x446   :  { %3162 = vmatpush.bf16.msrb.mxu1 %v5142_v60  ;;  %3290 = vmatmul.bf16.vlgmr.msrb.gmra.mxu2 %v6271_v59  ;;  %v5880_v60 = vld [vmem:[#allocation4 + $0x6a4] sm:$0xf] }
 0x447   :  { %3534 = vmatpush.bf16.msra.mxu2 %v5382_v55  ;;  %3275 = vmatpush.bf16.msrb.mxu3 %v5202_v2  ;;  %v5893_v55 = vld [vmem:[#allocation4 + $0x704] sm:$0xf0]  ;;  %v5342_v3 = vor.u32 %v5880_v60, %v5339_v62  ;;  %v5920_v42 = vld [vmem:[#allocation4 + $0x7e4] sm:$0xf] }
 0x448   :  { %v5386_v63 = vor.u32 %v5893_v55, %v5385_v54  ;;  %v5502_v52 = vor.u32 %v5920_v42, %v5499_v43  ;;  %v5443_v54 = vld [vmem:[#allocation4 + $0x778] sm:$0xf0]  ;;  %v5505_v55 = vld [vmem:[#allocation4 + $0x7f0] sm:$0xf] }
 0x44a   :  { %3163 = vmatpush.bf16.msrb.mxu1 %v5134_v18  ;;  %3654 = vmatpush.bf16.msrb.mxu0 %v5386_v63  ;;  %v2270_v48 = vpop.f32.mrf.mxu1  ;;  %v5334_v18 = vor.u32 %v5878_v9, %v5331_v11  ;;  %v5904_v63 = vld [vmem:[#allocation4 + $0x764] sm:$0xf]  ;;  %v5902_v9 = vld [vmem:[#allocation4 + $0x754] sm:$0xf]  ;;  %v5427_v11 = vld [vmem:[#allocation4 + $0x758] sm:$0xf0] }
 0x44b   :  { %3535 = vmatpush.bf16.msra.mxu2 %v5374_v7  ;;  %3276 = vmatpush.bf16.msrb.mxu3 %v5194_v23  ;;  %v5883_v7 = vld [vmem:[#allocation4 + $0x6b4] sm:$0xf0]  ;;  %v2287_v14 = vadd.f32 %v2270_v48, %v2161_v46  ;;  %v6283_v16 = vpop.f32.mrf.mxu0  ;;  %v5270_v46 = vor.u32 %v5862_v32, %v5267_v33  ;;  %v5489_v48 = vld [vmem:[#allocation4 + $0x7d0] sm:$0xf] }
 0x44c   :  { %v5346_v17 = vor.u32 %v5883_v7, %v5345_v0  ;;  %v5473_v32 = vld [vmem:[#allocation4 + $0x7b0] sm:$0xf] }
 0x44d   :  { %3164 = vmatmul.bf16.vlgmr.msrb.gmra.mxu1 %v6256_v20  ;;  %v5353_v20 = vld [vmem:[#allocation4 + $0x6c0] sm:$0xf]  ;;  %v2396_v13 = vpop.f32.mrf.mxu2  ;;  %3655 = vmatmul.bf16.vlgmr.msrb.gmra.mxu0 %v6281_v12 }
 0x44e   :  { %3408 = vmatpush.bf16.msra.mxu1 %v5318_v24  ;;  %3277 = vmatmul.bf16.vlgmr.msrb.gmra.mxu3 %v6271_v59  ;;  %v2146_v59 = vpop.f32.mrf.mxu3  ;;  %v5354_v2 = vor.u32 %v5885_v58, %v5353_v20  ;;  %v6285_v23 = vadd.f32 %v2396_v13, %v2287_v14  ;;  %v5881_v24 = vld [vmem:[#allocation4 + $0x6a4] sm:$0xf0]  ;;  %v5446_v58 = vor.u32 %v5906_v53, %v5443_v54  ;;  %v5919_v14 = vld [vmem:[#allocation4 + $0x7d4] sm:$0xf0] }
 0x44f   :  { %3521 = vmatpush.bf16.msra.mxu3 %v5378_v25  ;;  %3536 = vmatpush.bf16.msra.mxu2 %v5366_v26  ;;  %v5876_v25 = vld [vmem:[#allocation4 + $0x684] sm:$0xf]  ;;  %v5323_v26 = vld [vmem:[#allocation4 + $0x688] sm:$0xf0]  ;;  %v5338_v10 = vor.u32 %v5881_v24, %v5337_v22  ;;  %v5497_v59 = vld [vmem:[#allocation4 + $0x7e0] sm:$0xf]  ;;  %v5490_v19 = vor.u32 %v5919_v14, %v5489_v48 }
 0x450   :  { %v5326_v36 = vor.u32 %v5876_v25, %v5323_v26  ;;  %v5900_v22 = vld [vmem:[#allocation4 + $0x744] sm:$0xf]  ;;  %v5419_v24 = vld [vmem:[#allocation4 + $0x748] sm:$0xf0]  ;;  %v5481_v25 = vld [vmem:[#allocation4 + $0x7c0] sm:$0xf] }
 0x451   :  { %v5917_v26 = vld [vmem:[#allocation4 + $0x7c4] sm:$0xf0] }
 0x452   :  { %3409 = vmatpush.bf16.msra.mxu1 %v5310_v39  ;;  %v5510_v39 = vor.u32 %v5922_v8, %v5507_v28  ;;  %v5912_v8 = vld [vmem:[#allocation4 + $0x7a4] sm:$0xf]  ;;  %v5467_v28 = vld [vmem:[#allocation4 + $0x7a8] sm:$0xf0] }
 0x453   :  { %3522 = vmatpush.bf16.msra.mxu3 %v5370_v40  ;;  %3537 = vmatpush.bf16.msra.mxu2 %v5358_v41  ;;  %v5879_v40 = vld [vmem:[#allocation4 + $0x694] sm:$0xf0]  ;;  %v2272_v41 = vpop.f32.mrf.mxu1 }
 0x454   :  { %v5330_v49 = vor.u32 %v5879_v40, %v5329_v38  ;;  %v5910_v38 = vld [vmem:[#allocation4 + $0x794] sm:$0xf]  ;;  %v5459_v40 = vld [vmem:[#allocation4 + $0x798] sm:$0xf0] }
 0x455   :  { %v2398_v44 = vpop.f32.mrf.mxu2 }
 0x456   :  { %3410 = vmatpush.bf16.msra.mxu1 %v5302_v56  ;;  %v2283_v31 = vpop.f32.mrf.mxu3  ;;  %v6293_v56 = vpop.f32.mrf.mxu0 }
 0x457   :  { %3523 = vmatpush.bf16.msra.mxu3 %v5362_v57  ;;  %3538 = vmatpush.bf16.msra.mxu2 %v5350_v34  ;;  %v6289_v37 = vadd.f32 %v2283_v31, %v6276_v30  ;;  %v5877_v30 = vld [vmem:[#allocation4 + $0x684] sm:$0xf0]  ;;  %v5923_v57 = vld [vmem:[#allocation4 + $0x7f4] sm:$0xf0]  ;;  %v5918_v34 = vld [vmem:[#allocation4 + $0x7d4] sm:$0xf]  ;;  %v5470_v31 = vor.u32 %v5912_v8, %v5467_v28 }
 0x458   :  { %v5322_v20 = vor.u32 %v5877_v30, %v5321_v51  ;;  %v5506_v60 = vor.u32 %v5923_v57, %v5505_v55  ;;  %v5494_v62 = vor.u32 %v5918_v34, %v5491_v61  ;;  %v5908_v51 = vld [vmem:[#allocation4 + $0x784] sm:$0xf]  ;;  %v5451_v30 = vld [vmem:[#allocation4 + $0x788] sm:$0xf0]  ;;  %v5395_v57 = vld [vmem:[#allocation4 + $0x718] sm:$0xf0] }
 0x459   :  { %v5454_v55 = vor.u32 %v5908_v51, %v5451_v30 }
 0x45a   :  { %3411 = vmatpush.bf16.msra.mxu1 %v5294_v1  ;;  %v5435_v1 = vld [vmem:[#allocation4 + $0x768] sm:$0xf0] }
 0x45b   :  { %3524 = vmatpush.bf16.msra.mxu3 %v5354_v2  ;;  %3539 = vmatpush.bf16.msra.mxu2 %v5342_v3  ;;  %v5921_v2 = vld [vmem:[#allocation4 + $0x7e4] sm:$0xf0]  ;;  %v5916_v3 = vld [vmem:[#allocation4 + $0x7c4] sm:$0xf]  ;;  %v5438_v5 = vor.u32 %v5904_v63, %v5435_v1 }
 0x45c   :  { %v5498_v0 = vor.u32 %v5921_v2, %v5497_v59  ;;  %v5486_v7 = vor.u32 %v5916_v3, %v5483_v4  ;;  %v5892_v59 = vld [vmem:[#allocation4 + $0x704] sm:$0xf]  ;;  %v5387_v2 = vld [vmem:[#allocation4 + $0x708] sm:$0xf0]  ;;  %v5449_v3 = vld [vmem:[#allocation4 + $0x780] sm:$0xf] }
 0x45d   :  { %v5909_v4 = vld [vmem:[#allocation4 + $0x784] sm:$0xf0] }
 0x45e   :  { %3412 = vmatpush.bf16.msra.mxu1 %v5286_v15  ;;  %v2285_v35 = vpop.f32.mrf.mxu3  ;;  %v2650_v13 = vpop.f32.mrf.mxu0  ;;  %v5914_v15 = vld [vmem:[#allocation4 + $0x7b4] sm:$0xf] }
 0x45f   :  { %3525 = vmatpush.bf16.msra.mxu3 %v5346_v17  ;;  %3540 = vmatpush.bf16.msra.mxu2 %v5334_v18  ;;  %v5475_v17 = vld [vmem:[#allocation4 + $0x7b8] sm:$0xf0]  ;;  %v5430_v18 = vor.u32 %v5902_v9, %v5427_v11  ;;  %v5911_v35 = vld [vmem:[#allocation4 + $0x794] sm:$0xf0] }
 0x460   :  { %v5478_v21 = vor.u32 %v5914_v15, %v5475_v17 }
 0x462   :  { %3413 = vmatpush.bf16.msra.mxu1 %v5278_v29  ;;  %v5422_v29 = vor.u32 %v5900_v22, %v5419_v24 }
 0x463   :  { %3526 = vmatpush.bf16.msra.mxu3 %v5338_v10  ;;  %3541 = vmatpush.bf16.msra.mxu2 %v5326_v36  ;;  %v5898_v10 = vld [vmem:[#allocation4 + $0x734] sm:$0xf]  ;;  %v5411_v36 = vld [vmem:[#allocation4 + $0x738] sm:$0xf0] }
 0x464   :  { %v5414_v43 = vor.u32 %v5898_v10, %v5411_v36 }
 0x466   :  { %3414 = vmatpush.bf16.msra.mxu1 %v5270_v46  ;;  %3542 = vmatmul.bf16.vlgmr.msra.gmra.mxu2 %v3423_v45  ;;  %v5896_v46 = vld [vmem:[#allocation4 + $0x724] sm:$0xf] }
 0x467   :  { %3786 = vmatpush.bf16.msrb.mxu2 %v5510_v39  ;;  %3527 = vmatpush.bf16.msra.mxu3 %v5330_v49  ;;  %v5915_v39 = vld [vmem:[#allocation4 + $0x7b4] sm:$0xf0]  ;;  %v5465_v49 = vld [vmem:[#allocation4 + $0x7a0] sm:$0xf]  ;;  %v5406_v53 = vor.u32 %v5896_v46, %v5403_v47 }
 0x468   :  { %v5474_v44 = vor.u32 %v5915_v39, %v5473_v32  ;;  %v5466_v54 = vor.u32 %v5913_v50, %v5465_v49 }
 0x469   :  { %v2535_v33 = vpop.f32.mrf.mxu2 }
 0x46a   :  { %3415 = vmatpush.bf16.msra.mxu1 %v5262_v6  ;;  %v2409_v41 = vpop.f32.mrf.mxu1  ;;  %v5457_v6 = vld [vmem:[#allocation4 + $0x790] sm:$0xf] }
 0x46b   :  { %3787 = vmatpush.bf16.msrb.mxu2 %v5502_v52  ;;  %3528 = vmatpush.bf16.msra.mxu3 %v5322_v20  ;;  %v2414_v42 = vadd.f32 %v2409_v41, %v6289_v37  ;;  %v5894_v37 = vld [vmem:[#allocation4 + $0x714] sm:$0xf]  ;;  %v5458_v1 = vor.u32 %v5911_v35, %v5457_v6 }
 0x46d   :  { %3416 = vmatmul.bf16.vlgmr.msra.gmra.mxu1 %v6266_v27  ;;  %v5482_v27 = vor.u32 %v5917_v26, %v5481_v25  ;;  %v2540_v52 = vadd.f32 %v2535_v33, %v2414_v42 }
 0x46e   :  { %3660 = vmatpush.bf16.msrb.mxu1 %v5446_v58  ;;  %3529 = vmatmul.bf16.vlgmr.msra.gmra.mxu3 %v3423_v45  ;;  %v5462_v45 = vor.u32 %v5910_v38, %v5459_v40 }
 0x46f   :  { %3773 = vmatpush.bf16.msrb.mxu3 %v5506_v60  ;;  %3788 = vmatpush.bf16.msrb.mxu2 %v5494_v62  ;;  %v3675_v60 = vpack.c.bf16 %v6283_v16, %v6283_v16  ;;  %v5398_v62 = vor.u32 %v5894_v37, %v5395_v57 }
 0x471   :  { %v2522_v34 = vpop.f32.mrf.mxu3  ;;  %v2537_v61 = vpop.f32.mrf.mxu2 }
 0x472   :  { %3661 = vmatpush.bf16.msrb.mxu1 %v5438_v5  ;;  %v2539_v20 = vadd.f32 %v2522_v34, %v6285_v23  ;;  %v2411_v58 = vpop.f32.mrf.mxu1  ;;  %v2900_v5 = vpop.f32.mrf.mxu0  ;;  %v5450_v23 = vor.u32 %v5909_v4, %v5449_v3 }
 0x473   :  { %3774 = vmatpush.bf16.msrb.mxu3 %v5498_v0  ;;  %3789 = vmatpush.bf16.msrb.mxu2 %v5486_v7  ;;  %v5390_v0 = vor.u32 %v5892_v59, %v5387_v2 }
 0x474   :  { %v2665_v63 = vadd.f32 %v6293_v56, %v2539_v20  ;;  %v3805_v20 = vpop.permute.xlu0 %3804 }
 0x476   :  { %3662 = vmatpush.bf16.msrb.mxu1 %v5430_v18 }
 0x477   :  { %3775 = vmatpush.bf16.msrb.mxu3 %v5490_v19  ;;  %3790 = vmatpush.bf16.msrb.mxu2 %v5478_v21 }
 0x479   :  { %v2524_v7 = vpop.f32.mrf.mxu3 }
 0x47a   :  { %3663 = vmatpush.bf16.msrb.mxu1 %v5422_v29  ;;  %v2902_v16 = vpop.f32.mrf.mxu0 }
 0x47b   :  { %3776 = vmatpush.bf16.msrb.mxu3 %v5482_v27  ;;  %3791 = vmatpush.bf16.msrb.mxu2 %v5470_v31 }
 0x47e   :  { %3664 = vmatpush.bf16.msrb.mxu1 %v5414_v43 }
 0x47f   :  { %3777 = vmatpush.bf16.msrb.mxu3 %v5474_v44  ;;  %3792 = vmatpush.bf16.msrb.mxu2 %v5462_v45 }
 0x482   :  { %3665 = vmatpush.bf16.msrb.mxu1 %v5406_v53 }
 0x483   :  { %3778 = vmatpush.bf16.msrb.mxu3 %v5466_v54  ;;  %3793 = vmatpush.bf16.msrb.mxu2 %v5454_v55 }
 0x486   :  { %3794 = vmatmul.bf16.vlgmr.msrb.gmra.mxu2 %v3675_v60  ;;  %3666 = vmatpush.bf16.msrb.mxu1 %v5398_v62 }
 0x487   :  { %3779 = vmatpush.bf16.msrb.mxu3 %v5458_v1 }
 0x489   :  { %v2787_v56 = vpop.f32.mrf.mxu2  ;;  %v3152_v19 = vpop.f32.mrf.mxu0 }
 0x48a   :  { %3667 = vmatpush.bf16.msrb.mxu1 %v5390_v0  ;;  %v2661_v9 = vpop.f32.mrf.mxu1 }
 0x48b   :  { %3780 = vmatpush.bf16.msrb.mxu3 %v5450_v23  ;;  %v2666_v11 = vadd.f32 %v2661_v9, %v2540_v52 }
 0x48d   :  { %3668 = vmatmul.bf16.vlgmr.msrb.gmra.mxu1 %v6281_v12  ;;  %v2792_v48 = vadd.f32 %v2787_v56, %v2666_v11 }
 0x48e   :  { %3781 = vmatmul.bf16.vlgmr.msrb.gmra.mxu3 %v3675_v60 }
 0x491   :  { %v2774_v13 = vpop.f32.mrf.mxu3  ;;  %v2789_v14 = vpop.f32.mrf.mxu2 }
 0x492   :  { %v2791_v15 = vadd.f32 %v2774_v13, %v2665_v63  ;;  %v2663_v17 = vpop.f32.mrf.mxu1  ;;  %v3154_v22 = vpop.f32.mrf.mxu0 }
 0x494   :  { %v2917_v18 = vadd.f32 %v2900_v5, %v2791_v15 }
 0x499   :  { %v2776_v21 = vpop.f32.mrf.mxu3 }
 0x4a9   :  { %v3039_v24 = vpop.f32.mrf.mxu2  ;;  %v3404_v10 = vpop.f32.mrf.mxu0 }
 0x4aa   :  { %v2913_v25 = vpop.f32.mrf.mxu1 }
 0x4ab   :  { %v2918_v26 = vadd.f32 %v2913_v25, %v2792_v48 }
 0x4ad   :  { %v3044_v8 = vadd.f32 %v3039_v24, %v2918_v26 }
 0x4b1   :  { %v3026_v28 = vpop.f32.mrf.mxu3  ;;  %v3041_v12 = vpop.f32.mrf.mxu2 }
 0x4b2   :  { %v3043_v29 = vadd.f32 %v3026_v28, %v2917_v18  ;;  %v2915_v27 = vpop.f32.mrf.mxu1  ;;  %v3406_v32 = vpop.f32.mrf.mxu0 }
 0x4b4   :  { %v3169_v31 = vadd.f32 %v3152_v19, %v3043_v29 }
 0x4b9   :  { %v3028_v36 = vpop.f32.mrf.mxu3 }
 0x4c9   :  { %v3291_v33 = vpop.f32.mrf.mxu2 }
 0x4ca   :  { %v3165_v39 = vpop.f32.mrf.mxu1  ;;  %v3656_v44 = vpop.f32.mrf.mxu0 }
 0x4cb   :  { %v3170_v53 = vadd.f32 %v3165_v39, %v3044_v8 }
 0x4cd   :  { %v3296_v54 = vadd.f32 %v3291_v33, %v3170_v53 }
 0x4d1   :  { %v3278_v38 = vpop.f32.mrf.mxu3  ;;  %v3293_v40 = vpop.f32.mrf.mxu2 }
 0x4d2   :  { %v3295_v41 = vadd.f32 %v3278_v38, %v3169_v31  ;;  %v3167_v42 = vpop.f32.mrf.mxu1  ;;  %v3658_v46 = vpop.f32.mrf.mxu0 }
 0x4d4   :  { %v3421_v43 = vadd.f32 %v3404_v10, %v3295_v41 }
 0x4d9   :  { %v3280_v45 = vpop.f32.mrf.mxu3 }
 0x4e9   :  { %v3543_v47 = vpop.f32.mrf.mxu2 }
 0x4ea   :  { %v3417_v49 = vpop.f32.mrf.mxu1 }
 0x4eb   :  { %v3422_v55 = vadd.f32 %v3417_v49, %v3296_v54 }
 0x4ed   :  { %v3548_v37 = vadd.f32 %v3543_v47, %v3422_v55 }
 0x4f1   :  { %v3530_v50 = vpop.f32.mrf.mxu3  ;;  %v3545_v51 = vpop.f32.mrf.mxu2 }
 0x4f2   :  { %v3419_v30 = vpop.f32.mrf.mxu1  ;;  %v3547_v6 = vadd.f32 %v3530_v50, %v3421_v43 }
 0x4f4   :  { %v3673_v60 = vadd.f32 %v3656_v44, %v3547_v6 }
 0x4f9   :  { %v3532_v52 = vpop.f32.mrf.mxu3 }
 0x509   :  { %v3795_v57 = vpop.f32.mrf.mxu2 }
 0x50a   :  { %v3669_v34 = vpop.f32.mrf.mxu1 }
 0x50b   :  { %v3674_v61 = vadd.f32 %v3669_v34, %v3548_v37 }
 0x50d   :  { %v3800_v35 = vadd.f32 %v3795_v57, %v3674_v61 }
 0x50f   :  { %v3808_v58 = vadd.f32 %v3805_v20, %v3800_v35 }
 0x511   :  { %v5512_v62 = vmul.f32 -1.442695, %v3808_v58  ;;  %v3782_v63 = vpop.f32.mrf.mxu3  ;;  %v3797_v1 = vpop.f32.mrf.mxu2 }
 0x512   :  { %v3799_v59 = vadd.f32 %v3782_v63, %v3673_v60  ;;  %v3671_v2 = vpop.f32.mrf.mxu1 }
 0x513   :  { %5991 = vpow2.f32 %v5512_v62 }
 0x514   :  { %v3807_v3 = vadd.f32 %v3805_v20, %v3799_v59 }
 0x516   :  { %v5511_v4 = vmul.f32 -1.442695, %v3807_v3 }
 0x518   :  { %5993 = vpow2.f32 %v5511_v4 }
 0x519   :  { %v5992_v5 = vpop.eup %5991  ;;  %v3784_v0 = vpop.f32.mrf.mxu3 }
 0x51a   :  { %v3816_v23 = vadd.f32 1.0, %v5992_v5 }
 0x51c   :  { %5995 = vrcp.f32 %v3816_v23  ;;  %v3843_v48 = vand.u32 2147483648, %v3816_v23  ;;  %v3841_v15 = vand.u32 2147483647, %v3816_v23  ;;  %vm3837_vm12 = vweird.f32 %v3816_v23 }
 0x51e   :  { %v5994_v7 = vpop.eup %5993  ;;  %v3844_v19 = vor.u32 1.1754944e-38, %v3843_v48  ;;  %vm3842_vm14 = vcmp.eq.f32.partialorder %v3841_v15, 8.507059e+37 }
 0x51f   :  { %v3815_v16 = vadd.f32 1.0, %v5994_v7 }
 0x521   :  { %5997 = vrcp.f32 %v3815_v16  ;;  %v3828_v24 = vand.u32 2147483648, %v3815_v16  ;;  %v3826_v8 = vand.u32 2147483647, %v3815_v16  ;;  %vm3822_vm0 = vweird.f32 %v3815_v16 }
 0x522   :  { %v5996_v56 = vpop.eup %5995 }
 0x523   :  { %v3833_v9 = vmul.f32 %v5996_v56, %v3816_v23  ;;  %vm3838_vm11 = vweird.f32 %v5996_v56  ;;  %v3829_v12 = vor.u32 1.1754944e-38, %v3828_v24  ;;  %vm3827_vm2 = vcmp.eq.f32.partialorder %v3826_v8, 8.507059e+37 }
 0x524   :  { %vm3839_vm13 = vmor %vm3837_vm12, %vm3838_vm11 }
 0x525   :  { %v3834_v11 = vsub.f32 1.0, %v3833_v9 }
 0x527   :  { %v5998_v13 = vpop.eup %5997  ;;  %v3835_v14 = vmul.f32 %v5996_v56, %v3834_v11 }
 0x528   :  { %v3818_v17 = vmul.f32 %v5998_v13, %v3815_v16  ;;  %vm3823_vm15 = vweird.f32 %v5998_v13 }
 0x529   :  { %v3836_v18 = vadd.f32 %v5996_v56, %v3835_v14  ;;  %vm3824_vm1 = vmor %vm3822_vm0, %vm3823_vm15 }
 0x52a   :  { %v3819_v21 = vsub.f32 1.0, %v3818_v17 }
 0x52b   :  { %v3840_v22 = vsel %vm3839_vm13, %v5996_v56, %v3836_v18 }
 0x52c   :  { %v3845_v25 = vsel %vm3842_vm14, %v3844_v19, %v3840_v22  ;;  %v3820_v26 = vmul.f32 %v5998_v13, %v3819_v21 }
 0x52d   :  { %3848 = vst [vmem:[%s6318_s10 + $0x8] sm:$0xff] %v3845_v25 }
 0x52e   :  { %v3821_v28 = vadd.f32 %v5998_v13, %v3820_v26 }
 0x530   :  { %v3825_v29 = vsel %vm3824_vm1, %v5998_v13, %v3821_v28 }
 0x531   :  { %v3830_v27 = vsel %vm3827_vm2, %v3829_v12, %v3825_v29 }
 0x532   :  { %3847 = vst [vmem:[%s6318_s10] sm:$0xff] %v3830_v27 }
 0x533   :  { %3853 = vsyncpa [#allocation3], 1 }
 0x534   :  { %3854 = vsyncpa [#allocation5], 1 }

</bundles_post_ra>
